<compile_context>
chip_gen: v7x
topology: tpu7x:2x2x1
jax: 0.10.0
libtpu: 0.0.40
codegen_flags: <defaults>
</compile_context>

<pallas_src>
import functools
import math

import jax
import jax.numpy as jnp
from jax.experimental import pallas as pl
from jax.experimental.pallas import tpu as pltpu


NUM_ANCHORS = 3
ANCHOR_SIZES = (4.0, 8.0, 16.0)
NUM_PROPOSALS = 4        # proposals kept per image (top-k objectness)
POOL_SIZE = 7
REPR_SIZE = 64
NUM_CLASSES = 5
FEAT_CH = 32

RPN_HEAD_CH = NUM_ANCHORS * 5      # 3 objectness + 12 bbox deltas
RPN_HEAD_PAD = 16                  # RPN head output padded width
HEAD_OUT_CH = NUM_CLASSES * 5      # 5 cls + 20 box regression
HEAD_OUT_PAD = 128                 # lane-dense RoI head output width

BBOX_XFORM_CLIP = math.log(1000.0 / 16.0)   # torchvision clamp


def _round_up(a, b):
    return (a + b - 1) // b * b


def _vmem_limit():
    """Generation-aware scoped-VMEM cap (v7x has 64 MiB, v5e/v6e 128 MiB)."""
    try:
        cap = int(pltpu.get_tpu_info().vmem_capacity_bytes)
        return min(cap * 3 // 4, 112 * 1024 * 1024)
    except Exception:
        return 32 * 1024 * 1024


# -----------------------------------------------------------------------------
# Fused backbone + RPN kernel (shifted-dot 3x3 convs, features resident in VMEM)
# -----------------------------------------------------------------------------
def _conv3x3_shifted(src, w, b, hh, ww, cin):
    """Valid 3x3 conv of a zero-padded [hh+2, ww+2, cin] bf16 value.

    Nine shifted [hh*ww, cin] x [cin, cout] bf16 MXU dots accumulated in f32.
    Returns f32 [hh*ww, cout] (bias added, no activation).
    """
    acc = None
    for o in range(9):
        dh, dw = o // 3, o % 3
        patch = src[dh:dh + hh, dw:dw + ww, :].reshape(hh * ww, cin)
        term = jnp.dot(patch, w[o * cin:(o + 1) * cin, :],
                       preferred_element_type=jnp.float32)
        acc = term if acc is None else acc + term
    return acc + b


def _backbone_rpn_kernel(xpad_ref, w1_ref, b1_ref, w2_ref, b2_ref,
                         w3_ref, b3_ref, wh_ref, bh_ref,
                         feat_ref, rpn_ref, pad1_ref, pad2_ref,
                         *, hh, ww, cin):
    c = FEAT_CH

    # ---- backbone conv1 (transform normalization pre-folded into w1/b1) ----
    f1 = _conv3x3_shifted(xpad_ref[0], w1_ref[...], b1_ref[...], hh, ww, cin)
    f1 = jnp.maximum(f1, 0.0)
    pad1_ref[...] = jnp.zeros_like(pad1_ref)             # zero halo
    pad1_ref[1:hh + 1, 1:ww + 1, :] = f1.reshape(hh, ww, c)

    # ---- backbone conv2 ----
    f2 = _conv3x3_shifted(pad1_ref[...].astype(jnp.bfloat16),
                          w2_ref[...], b2_ref[...], hh, ww, c)
    f2 = jnp.maximum(f2, 0.0)
    feat_ref[0] = f2.reshape(hh, ww, c).astype(jnp.bfloat16)   # bf16 features out
    pad2_ref[...] = jnp.zeros_like(pad2_ref)
    pad2_ref[1:hh + 1, 1:ww + 1, :] = f2.reshape(hh, ww, c)

    # ---- RPN 3x3 conv ----
    t = _conv3x3_shifted(pad2_ref[...].astype(jnp.bfloat16),
                         w3_ref[...], b3_ref[...], hh, ww, c)
    t = jnp.maximum(t, 0.0)

    # ---- fused RPN 1x1 head (objectness | bbox deltas), f32 output ----
    head = jnp.dot(t.astype(jnp.bfloat16), wh_ref[...],
                   preferred_element_type=jnp.float32) + bh_ref[...]
    rpn_ref[0] = head.reshape(hh, ww, RPN_HEAD_PAD)


def backbone_rpn(images_nhwc, pp):
    """One pallas_call per forward: conv1 -> conv2 -> rpn_conv -> rpn head."""
    n, h, w, cin = images_nhwc.shape
    xpad = jnp.pad(images_nhwc,
                   ((0, 0), (1, 1), (1, 1), (0, 0))).astype(jnp.bfloat16)

    feat, rpn = pl.pallas_call(
        functools.partial(_backbone_rpn_kernel, hh=h, ww=w, cin=cin),
        out_shape=(
            jax.ShapeDtypeStruct((n, h, w, FEAT_CH), jnp.bfloat16),
            jax.ShapeDtypeStruct((n, h, w, RPN_HEAD_PAD), jnp.float32),
        ),
        grid_spec=pltpu.PrefetchScalarGridSpec(
            num_scalar_prefetch=0,
            grid=(n,),                     # >=2 parallel steps -> both v7x TCs
            in_specs=[
                pl.BlockSpec((1, h + 2, w + 2, cin), lambda i: (i, 0, 0, 0)),
                pl.BlockSpec(pp["bb1_w"].shape, lambda i: (0, 0)),
                pl.BlockSpec(pp["bb1_b"].shape, lambda i: (0, 0)),
                pl.BlockSpec(pp["bb2_w"].shape, lambda i: (0, 0)),
                pl.BlockSpec(pp["bb2_b"].shape, lambda i: (0, 0)),
                pl.BlockSpec(pp["rpn_conv_w"].shape, lambda i: (0, 0)),
                pl.BlockSpec(pp["rpn_conv_b"].shape, lambda i: (0, 0)),
                pl.BlockSpec(pp["rpn_head_w"].shape, lambda i: (0, 0)),
                pl.BlockSpec(pp["rpn_head_b"].shape, lambda i: (0, 0)),
            ],
            out_specs=[
                pl.BlockSpec((1, h, w, FEAT_CH), lambda i: (i, 0, 0, 0)),
                pl.BlockSpec((1, h, w, RPN_HEAD_PAD), lambda i: (i, 0, 0, 0)),
            ],
            scratch_shapes=[
                pltpu.VMEM((h + 2, w + 2, FEAT_CH), jnp.float32),
                pltpu.VMEM((h + 2, w + 2, FEAT_CH), jnp.float32),
            ],
        ),
        compiler_params=pltpu.CompilerParams(
            dimension_semantics=("parallel",),
            vmem_limit_bytes=_vmem_limit(),
        ),
    )(xpad, pp["bb1_w"], pp["bb1_b"], pp["bb2_w"], pp["bb2_b"],
      pp["rpn_conv_w"], pp["rpn_conv_b"], pp["rpn_head_w"], pp["rpn_head_b"])

    objectness = rpn[..., :NUM_ANCHORS]
    bbox_deltas = rpn[..., NUM_ANCHORS:RPN_HEAD_CH]
    return feat, objectness, bbox_deltas


# -----------------------------------------------------------------------------
# Fused RoI box head (TwoMLPHead + FastRCNNPredictor) in one pallas_call
# -----------------------------------------------------------------------------
def _roi_head_kernel(x_ref, w1_ref, b1_ref, w2_ref, b2_ref, w3_ref, b3_ref,
                     o_ref):
    # fc1 -> relu -> fc2 -> relu -> [cls | box] heads, bf16 MXU / f32 acc.
    h = jnp.dot(x_ref[...], w1_ref[...], preferred_element_type=jnp.float32)
    h = jnp.maximum(h + b1_ref[...], 0.0)
    h = jnp.dot(h.astype(jnp.bfloat16), w2_ref[...],
                preferred_element_type=jnp.float32)
    h = jnp.maximum(h + b2_ref[...], 0.0)
    o_ref[...] = jnp.dot(h.astype(jnp.bfloat16), w3_ref[...],
                         preferred_element_type=jnp.float32) + b3_ref[...]


def roi_box_head(flat, pp):
    m, k = flat.shape
    tm = 16                                    # bf16 (16,128) sublane tile
    m_pad = max(_round_up(m, tm), 2 * tm)      # >=2 parallel steps for v7x
    if m_pad != m:
        flat = jnp.pad(flat, ((0, m_pad - m), (0, 0)))
    nout = pp["head_w3"].shape[1]              # 128, lane-dense store

    out = pl.pallas_call(
        _roi_head_kernel,
        out_shape=jax.ShapeDtypeStruct((m_pad, nout), jnp.float32),
        grid_spec=pltpu.PrefetchScalarGridSpec(
            num_scalar_prefetch=0,
            grid=(m_pad // tm,),
            in_specs=[
                pl.BlockSpec((tm, k), lambda i: (i, 0)),
                pl.BlockSpec(pp["head_w1"].shape, lambda i: (0, 0)),
                pl.BlockSpec(pp["head_b1"].shape, lambda i: (0, 0)),
                pl.BlockSpec(pp["head_w2"].shape, lambda i: (0, 0)),
                pl.BlockSpec(pp["head_b2"].shape, lambda i: (0, 0)),
                pl.BlockSpec(pp["head_w3"].shape, lambda i: (0, 0)),
                pl.BlockSpec(pp["head_b3"].shape, lambda i: (0, 0)),
            ],
            out_specs=pl.BlockSpec((tm, nout), lambda i: (i, 0)),
        ),
        compiler_params=pltpu.CompilerParams(
            dimension_semantics=("parallel",),
            vmem_limit_bytes=_vmem_limit(),
        ),
    )(flat.astype(jnp.bfloat16), pp["head_w1"], pp["head_b1"],
      pp["head_w2"], pp["head_b2"], pp["head_w3"], pp["head_b3"])

    out = out[:m]
    return out[:, :NUM_CLASSES], out[:, NUM_CLASSES:HEAD_OUT_CH]


# -----------------------------------------------------------------------------
# One-time parameter preparation (hoisted out of the per-forward trace)
# -----------------------------------------------------------------------------
def fold_normalization(w_oihw, b, mean, std):
    """Fold (x - mean) / std of GeneralizedRCNNTransform into conv1."""
    inv_std = 1.0 / std
    w_f = w_oihw * inv_std[None, :, None, None]
    b_f = b - jnp.sum(w_oihw * (mean * inv_std)[None, :, None, None],
                      axis=(1, 2, 3))
    return w_f, b_f


def prepare_params(params):
    """Fold normalization, reshape convs to [9*Cin, Cout], pad heads, cast bf16."""
    def conv_mat(w_oihw):
        cin = w_oihw.shape[1]
        return jnp.transpose(w_oihw, (2, 3, 1, 0)).reshape(
            9 * cin, w_oihw.shape[0]).astype(jnp.bfloat16)

    bb1_w, bb1_b = fold_normalization(params["bb1_w"], params["bb1_b"],
                                      params["img_mean"], params["img_std"])

    # fused RPN 1x1 head: [Cin, 15] padded to [Cin, 16]
    rpn_w = jnp.concatenate([params["rpn_cls_w"], params["rpn_bbox_w"]], axis=0)
    rpn_w = jnp.transpose(rpn_w, (2, 3, 1, 0)).reshape(FEAT_CH, RPN_HEAD_CH)
    rpn_w = jnp.pad(rpn_w, ((0, 0), (0, RPN_HEAD_PAD - RPN_HEAD_CH)))
    rpn_b = jnp.pad(jnp.concatenate([params["rpn_cls_b"], params["rpn_bbox_b"]]),
                    (0, RPN_HEAD_PAD - RPN_HEAD_CH))

    # fused RoI predictor head: [R, 25] padded to [R, 128] (lane-dense output)
    w3 = jnp.concatenate([params["cls_w"], params["box_w"]], axis=1)
    b3 = jnp.concatenate([params["cls_b"], params["box_b"]])
    w3 = jnp.pad(w3, ((0, 0), (0, HEAD_OUT_PAD - HEAD_OUT_CH)))
    b3 = jnp.pad(b3, (0, HEAD_OUT_PAD - HEAD_OUT_CH))

    f32 = jnp.float32
    return {
        "bb1_w": conv_mat(bb1_w),
        "bb1_b": bb1_b.reshape(1, -1).astype(f32),
        "bb2_w": conv_mat(params["bb2_w"]),
        "bb2_b": params["bb2_b"].reshape(1, -1).astype(f32),
        "rpn_conv_w": conv_mat(params["rpn_conv_w"]),
        "rpn_conv_b": params["rpn_conv_b"].reshape(1, -1).astype(f32),
        "rpn_head_w": rpn_w.astype(jnp.bfloat16),
        "rpn_head_b": rpn_b.reshape(1, -1).astype(f32),
        "head_w1": params["fc1_w"].astype(jnp.bfloat16),
        "head_b1": params["fc1_b"].reshape(1, -1).astype(f32),
        "head_w2": params["fc2_w"].astype(jnp.bfloat16),
        "head_b2": params["fc2_b"].reshape(1, -1).astype(f32),
        "head_w3": w3.astype(jnp.bfloat16),
        "head_b3": b3.reshape(1, -1).astype(f32),
    }


# -----------------------------------------------------------------------------
# Model pieces
# -----------------------------------------------------------------------------
def init_params(key):
    ks = jax.random.split(key, 16)

    def conv_w(k, cout, cin, kh, kw):
        fan_in = cin * kh * kw
        return jax.random.normal(k, (cout, cin, kh, kw), jnp.float32) / jnp.sqrt(
            jnp.float32(fan_in))

    def fc_w(k, cin, cout):
        return jax.random.normal(k, (cin, cout), jnp.float32) / jnp.sqrt(
            jnp.float32(cin))

    return {
        "bb1_w": conv_w(ks[0], FEAT_CH, 3, 3, 3),
        "bb1_b": jnp.zeros((FEAT_CH,), jnp.float32),
        "bb2_w": conv_w(ks[1], FEAT_CH, FEAT_CH, 3, 3),
        "bb2_b": jnp.zeros((FEAT_CH,), jnp.float32),
        "rpn_conv_w": conv_w(ks[2], FEAT_CH, FEAT_CH, 3, 3),
        "rpn_conv_b": jnp.zeros((FEAT_CH,), jnp.float32),
        "rpn_cls_w": conv_w(ks[3], NUM_ANCHORS, FEAT_CH, 1, 1),
        "rpn_cls_b": jnp.zeros((NUM_ANCHORS,), jnp.float32),
        "rpn_bbox_w": conv_w(ks[4], NUM_ANCHORS * 4, FEAT_CH, 1, 1),
        "rpn_bbox_b": jnp.zeros((NUM_ANCHORS * 4,), jnp.float32),
        "fc1_w": fc_w(ks[5], POOL_SIZE * POOL_SIZE * FEAT_CH, REPR_SIZE),
        "fc1_b": jnp.zeros((REPR_SIZE,), jnp.float32),
        "fc2_w": fc_w(ks[6], REPR_SIZE, REPR_SIZE),
        "fc2_b": jnp.zeros((REPR_SIZE,), jnp.float32),
        "cls_w": fc_w(ks[7], REPR_SIZE, NUM_CLASSES),
        "cls_b": jnp.zeros((NUM_CLASSES,), jnp.float32),
        "box_w": fc_w(ks[8], REPR_SIZE, NUM_CLASSES * 4),
        "box_b": jnp.zeros((NUM_CLASSES * 4,), jnp.float32),
        "img_mean": jnp.array([0.485, 0.456, 0.406], jnp.float32),
        "img_std": jnp.array([0.229, 0.224, 0.225], jnp.float32),
    }


def _make_proposals(objectness, bbox_deltas, feat_hw):
    """Top-k anchor selection + box decoding (JAX glue; NMS omitted)."""
    n, h, w, a = objectness.shape
    sizes = jnp.array(ANCHOR_SIZES, jnp.float32)

    ys = jnp.arange(h, dtype=jnp.float32) + 0.5
    xs = jnp.arange(w, dtype=jnp.float32) + 0.5
    cy = jnp.broadcast_to(ys[:, None, None], (h, w, a))
    cx = jnp.broadcast_to(xs[None, :, None], (h, w, a))
    sz = jnp.broadcast_to(sizes[None, None, :], (h, w, a))

    obj_flat = objectness.reshape(n, h * w * a)
    deltas = bbox_deltas.reshape(n, h * w * a, 4)
    cx_f = cx.reshape(h * w * a)
    cy_f = cy.reshape(h * w * a)
    sz_f = sz.reshape(h * w * a)

    _, top_idx = jax.lax.top_k(obj_flat, NUM_PROPOSALS)          # [N, R]

    def decode_one(idx, d):
        acx, acy, asz = cx_f[idx], cy_f[idx], sz_f[idx]
        dx, dy, dw, dh = d[:, 0], d[:, 1], d[:, 2], d[:, 3]
        ncx = acx + dx * asz
        ncy = acy + dy * asz
        nw = asz * jnp.exp(jnp.clip(dw, -BBOX_XFORM_CLIP, BBOX_XFORM_CLIP))
        nh = asz * jnp.exp(jnp.clip(dh, -BBOX_XFORM_CLIP, BBOX_XFORM_CLIP))
        x1 = jnp.clip(ncx - nw / 2, 0.0, float(feat_hw[1]))
        y1 = jnp.clip(ncy - nh / 2, 0.0, float(feat_hw[0]))
        x2 = jnp.clip(ncx + nw / 2, 0.0, float(feat_hw[1]))
        y2 = jnp.clip(ncy + nh / 2, 0.0, float(feat_hw[0]))
        return jnp.stack([x1, y1, x2, y2], axis=-1)               # [R, 4]

    top_deltas = jnp.take_along_axis(deltas, top_idx[:, :, None], axis=1)
    proposals = jax.vmap(decode_one)(top_idx, top_deltas)         # [N, R, 4]
    return proposals


def _roi_pool_nearest(feats, boxes):
    """Nearest-neighbor RoI pooling to POOL_SIZE x POOL_SIZE (JAX gather glue)."""
    n, h, w, c = feats.shape
    grid = (jnp.arange(POOL_SIZE, dtype=jnp.float32) + 0.5) / POOL_SIZE

    def per_image(f, b):
        x1, y1, x2, y2 = b[:, 0], b[:, 1], b[:, 2], b[:, 3]
        xs = x1[:, None] + grid[None, :] * (x2 - x1)[:, None]     # [R, P]
        ys = y1[:, None] + grid[None, :] * (y2 - y1)[:, None]
        xi = jnp.clip(jnp.round(xs - 0.5).astype(jnp.int32), 0, w - 1)
        yi = jnp.clip(jnp.round(ys - 0.5).astype(jnp.int32), 0, h - 1)
        return f[yi[:, :, None], xi[:, None, :], :]               # [R, P, P, C]

    return jax.vmap(per_image)(feats, boxes)                      # [N, R, P, P, C]


def generalized_rcnn_forward(images_nchw, pp):
    """Inference forward pass of GeneralizedRCNN (targets=None)."""
    n, c, h, w = images_nchw.shape
    original_image_sizes = [(h, w)] * n  # recorded before transform

    # transform normalization is folded into conv1 weights (prepare_params);
    # only the NCHW -> NHWC relayout happens here.
    x = jnp.transpose(images_nchw.astype(jnp.float32), (0, 2, 3, 1))  # NHWC

    # ---- backbone + rpn: single fused Pallas kernel ----
    feats, objectness, bbox_deltas = backbone_rpn(x, pp)
    proposals = _make_proposals(objectness, bbox_deltas, (h, w))

    # ---- roi_heads: gather glue + single fused Pallas kernel ----
    pooled = _roi_pool_nearest(feats, proposals)                  # [N,R,P,P,C] bf16
    flat = pooled.reshape(n * NUM_PROPOSALS, POOL_SIZE * POOL_SIZE * FEAT_CH)
    class_logits, box_regression = roi_box_head(flat, pp)

    return {
        "original_image_sizes": original_image_sizes,
        "features": feats,                                        # [N,H,W,32] bf16
        "objectness": objectness,                                 # [N,H,W,3]  f32
        "rpn_bbox_deltas": bbox_deltas,                           # [N,H,W,12] f32
        "proposals": proposals,                                   # [N,4,4]
        "class_logits": class_logits.reshape(n, NUM_PROPOSALS, NUM_CLASSES),
        "box_regression": box_regression.reshape(n, NUM_PROPOSALS,
                                                 NUM_CLASSES * 4),
    }


if __name__ == "__main__":
    key = jax.random.PRNGKey(0)
    k_img, k_par = jax.random.split(key)
    images = jax.random.uniform(k_img, (2, 3, 16, 16), jnp.float32)  # NCHW
    params = init_params(k_par)
    prepared = prepare_params(params)        # one-time weight prep (hoisted)

    out = generalized_rcnn_forward(images, prepared)
    jax.block_until_ready(out)

    assert out["features"].shape == (2, 16, 16, FEAT_CH)
    assert out["objectness"].shape == (2, 16, 16, NUM_ANCHORS)
    assert out["rpn_bbox_deltas"].shape == (2, 16, 16, NUM_ANCHORS * 4)
    assert out["proposals"].shape == (2, NUM_PROPOSALS, 4)
    assert out["class_logits"].shape == (2, NUM_PROPOSALS, NUM_CLASSES)
    assert out["box_regression"].shape == (2, NUM_PROPOSALS, NUM_CLASSES * 4)
    assert bool(jnp.all(jnp.isfinite(out["class_logits"])))
    assert bool(jnp.all(jnp.isfinite(out["box_regression"])))
    print("KERNEL_OK")
</pallas_src>

<mosaic_0001>
module attributes {stable_mosaic.version = 11 : i64} {
  func.func @_backbone_rpn_kernel(%arg0: i32, %arg1: memref<1x18x18x3xbf16, #tpu.memory_space<vmem>>, %arg2: memref<27x32xbf16, #tpu.memory_space<vmem>>, %arg3: memref<1x32xf32, #tpu.memory_space<vmem>>, %arg4: memref<288x32xbf16, #tpu.memory_space<vmem>>, %arg5: memref<1x32xf32, #tpu.memory_space<vmem>>, %arg6: memref<288x32xbf16, #tpu.memory_space<vmem>>, %arg7: memref<1x32xf32, #tpu.memory_space<vmem>>, %arg8: memref<32x16xbf16, #tpu.memory_space<vmem>>, %arg9: memref<1x16xf32, #tpu.memory_space<vmem>>, %arg10: memref<1x16x16x32xbf16, #tpu.memory_space<vmem>>, %arg11: memref<1x16x16x16xf32, #tpu.memory_space<vmem>>, %arg12: memref<18x18x32xf32, #tpu.memory_space<vmem>>, %arg13: memref<18x18x32xf32, #tpu.memory_space<vmem>>) attributes {dimension_semantics = [#tpu.dimension_semantics<parallel>], iteration_bounds = array<i64: 2>, scalar_prefetch = 0 : i64, scratch_operands = 2 : i64, tpu.core_type = #tpu.core_type<tc>, window_params = [{transform_indices = @transform_0, window_bounds = array<i64: 1, 18, 18, 3>}, {pipeline_mode = #tpu.pipeline_mode<synchronous>, transform_indices = @transform_1, window_bounds = array<i64: 27, 32>}, {pipeline_mode = #tpu.pipeline_mode<synchronous>, transform_indices = @transform_2, window_bounds = array<i64: 1, 32>}, {pipeline_mode = #tpu.pipeline_mode<synchronous>, transform_indices = @transform_3, window_bounds = array<i64: 288, 32>}, {pipeline_mode = #tpu.pipeline_mode<synchronous>, transform_indices = @transform_4, window_bounds = array<i64: 1, 32>}, {pipeline_mode = #tpu.pipeline_mode<synchronous>, transform_indices = @transform_5, window_bounds = array<i64: 288, 32>}, {pipeline_mode = #tpu.pipeline_mode<synchronous>, transform_indices = @transform_6, window_bounds = array<i64: 1, 32>}, {pipeline_mode = #tpu.pipeline_mode<synchronous>, transform_indices = @transform_7, window_bounds = array<i64: 32, 16>}, {pipeline_mode = #tpu.pipeline_mode<synchronous>, transform_indices = @transform_8, window_bounds = array<i64: 1, 16>}, {transform_indices = @transform_9, window_bounds = array<i64: 1, 16, 16, 32>}, {transform_indices = @transform_10, window_bounds = array<i64: 1, 16, 16, 16>}]} {
    %c0 = arith.constant 0 : index
    %c0_0 = arith.constant 0 : index
    %c0_1 = arith.constant 0 : index
    %c0_2 = arith.constant 0 : index
    %0 = vector.load %arg1[%c0, %c0_0, %c0_1, %c0_2] : memref<1x18x18x3xbf16, #tpu.memory_space<vmem>>, vector<1x18x18x3xbf16>
    %1 = vector.shape_cast %0 : vector<1x18x18x3xbf16> to vector<18x18x3xbf16>
    %c0_3 = arith.constant 0 : index
    %c0_4 = arith.constant 0 : index
    %2 = vector.load %arg2[%c0_3, %c0_4] : memref<27x32xbf16, #tpu.memory_space<vmem>>, vector<27x32xbf16>
    %c0_5 = arith.constant 0 : index
    %c0_6 = arith.constant 0 : index
    %3 = vector.load %arg3[%c0_5, %c0_6] : memref<1x32xf32, #tpu.memory_space<vmem>>, vector<1x32xf32>
    %4 = vector.extract_strided_slice %1 {offsets = [0, 0, 0], sizes = [16, 16, 3], strides = [1, 1, 1]} : vector<18x18x3xbf16> to vector<16x16x3xbf16>
    %5 = vector.shape_cast %4 : vector<16x16x3xbf16> to vector<256x3xbf16>
    %6 = vector.extract_strided_slice %2 {offsets = [0, 0], sizes = [3, 32], strides = [1, 1]} : vector<27x32xbf16> to vector<3x32xbf16>
    %cst = arith.constant dense<0.000000e+00> : vector<256x32xf32>
    %7 = tpu.matmul %5, %6, %cst {dimension_numbers = #tpu.dot_dimension_numbers<[1], [0], [0], [1], [0, 0, 1, 1], [], []>} : vector<256x3xbf16>, vector<3x32xbf16>, vector<256x32xf32> -> vector<256x32xf32>
    %8 = vector.extract_strided_slice %1 {offsets = [0, 1, 0], sizes = [16, 16, 3], strides = [1, 1, 1]} : vector<18x18x3xbf16> to vector<16x16x3xbf16>
    %9 = vector.shape_cast %8 : vector<16x16x3xbf16> to vector<256x3xbf16>
    %10 = vector.extract_strided_slice %2 {offsets = [3, 0], sizes = [3, 32], strides = [1, 1]} : vector<27x32xbf16> to vector<3x32xbf16>
    %cst_7 = arith.constant dense<0.000000e+00> : vector<256x32xf32>
    %11 = tpu.matmul %9, %10, %cst_7 {dimension_numbers = #tpu.dot_dimension_numbers<[1], [0], [0], [1], [0, 0, 1, 1], [], []>} : vector<256x3xbf16>, vector<3x32xbf16>, vector<256x32xf32> -> vector<256x32xf32>
    %12 = arith.addf %7, %11 : vector<256x32xf32>
    %13 = vector.extract_strided_slice %1 {offsets = [0, 2, 0], sizes = [16, 16, 3], strides = [1, 1, 1]} : vector<18x18x3xbf16> to vector<16x16x3xbf16>
    %14 = vector.shape_cast %13 : vector<16x16x3xbf16> to vector<256x3xbf16>
    %15 = vector.extract_strided_slice %2 {offsets = [6, 0], sizes = [3, 32], strides = [1, 1]} : vector<27x32xbf16> to vector<3x32xbf16>
    %cst_8 = arith.constant dense<0.000000e+00> : vector<256x32xf32>
    %16 = tpu.matmul %14, %15, %cst_8 {dimension_numbers = #tpu.dot_dimension_numbers<[1], [0], [0], [1], [0, 0, 1, 1], [], []>} : vector<256x3xbf16>, vector<3x32xbf16>, vector<256x32xf32> -> vector<256x32xf32>
    %17 = arith.addf %12, %16 : vector<256x32xf32>
    %18 = vector.extract_strided_slice %1 {offsets = [1, 0, 0], sizes = [16, 16, 3], strides = [1, 1, 1]} : vector<18x18x3xbf16> to vector<16x16x3xbf16>
    %19 = vector.shape_cast %18 : vector<16x16x3xbf16> to vector<256x3xbf16>
    %20 = vector.extract_strided_slice %2 {offsets = [9, 0], sizes = [3, 32], strides = [1, 1]} : vector<27x32xbf16> to vector<3x32xbf16>
    %cst_9 = arith.constant dense<0.000000e+00> : vector<256x32xf32>
    %21 = tpu.matmul %19, %20, %cst_9 {dimension_numbers = #tpu.dot_dimension_numbers<[1], [0], [0], [1], [0, 0, 1, 1], [], []>} : vector<256x3xbf16>, vector<3x32xbf16>, vector<256x32xf32> -> vector<256x32xf32>
    %22 = arith.addf %17, %21 : vector<256x32xf32>
    %23 = vector.extract_strided_slice %1 {offsets = [1, 1, 0], sizes = [16, 16, 3], strides = [1, 1, 1]} : vector<18x18x3xbf16> to vector<16x16x3xbf16>
    %24 = vector.shape_cast %23 : vector<16x16x3xbf16> to vector<256x3xbf16>
    %25 = vector.extract_strided_slice %2 {offsets = [12, 0], sizes = [3, 32], strides = [1, 1]} : vector<27x32xbf16> to vector<3x32xbf16>
    %cst_10 = arith.constant dense<0.000000e+00> : vector<256x32xf32>
    %26 = tpu.matmul %24, %25, %cst_10 {dimension_numbers = #tpu.dot_dimension_numbers<[1], [0], [0], [1], [0, 0, 1, 1], [], []>} : vector<256x3xbf16>, vector<3x32xbf16>, vector<256x32xf32> -> vector<256x32xf32>
    %27 = arith.addf %22, %26 : vector<256x32xf32>
    %28 = vector.extract_strided_slice %1 {offsets = [1, 2, 0], sizes = [16, 16, 3], strides = [1, 1, 1]} : vector<18x18x3xbf16> to vector<16x16x3xbf16>
    %29 = vector.shape_cast %28 : vector<16x16x3xbf16> to vector<256x3xbf16>
    %30 = vector.extract_strided_slice %2 {offsets = [15, 0], sizes = [3, 32], strides = [1, 1]} : vector<27x32xbf16> to vector<3x32xbf16>
    %cst_11 = arith.constant dense<0.000000e+00> : vector<256x32xf32>
    %31 = tpu.matmul %29, %30, %cst_11 {dimension_numbers = #tpu.dot_dimension_numbers<[1], [0], [0], [1], [0, 0, 1, 1], [], []>} : vector<256x3xbf16>, vector<3x32xbf16>, vector<256x32xf32> -> vector<256x32xf32>
    %32 = arith.addf %27, %31 : vector<256x32xf32>
    %33 = vector.extract_strided_slice %1 {offsets = [2, 0, 0], sizes = [16, 16, 3], strides = [1, 1, 1]} : vector<18x18x3xbf16> to vector<16x16x3xbf16>
    %34 = vector.shape_cast %33 : vector<16x16x3xbf16> to vector<256x3xbf16>
    %35 = vector.extract_strided_slice %2 {offsets = [18, 0], sizes = [3, 32], strides = [1, 1]} : vector<27x32xbf16> to vector<3x32xbf16>
    %cst_12 = arith.constant dense<0.000000e+00> : vector<256x32xf32>
    %36 = tpu.matmul %34, %35, %cst_12 {dimension_numbers = #tpu.dot_dimension_numbers<[1], [0], [0], [1], [0, 0, 1, 1], [], []>} : vector<256x3xbf16>, vector<3x32xbf16>, vector<256x32xf32> -> vector<256x32xf32>
    %37 = arith.addf %32, %36 : vector<256x32xf32>
    %38 = vector.extract_strided_slice %1 {offsets = [2, 1, 0], sizes = [16, 16, 3], strides = [1, 1, 1]} : vector<18x18x3xbf16> to vector<16x16x3xbf16>
    %39 = vector.shape_cast %38 : vector<16x16x3xbf16> to vector<256x3xbf16>
    %40 = vector.extract_strided_slice %2 {offsets = [21, 0], sizes = [3, 32], strides = [1, 1]} : vector<27x32xbf16> to vector<3x32xbf16>
    %cst_13 = arith.constant dense<0.000000e+00> : vector<256x32xf32>
    %41 = tpu.matmul %39, %40, %cst_13 {dimension_numbers = #tpu.dot_dimension_numbers<[1], [0], [0], [1], [0, 0, 1, 1], [], []>} : vector<256x3xbf16>, vector<3x32xbf16>, vector<256x32xf32> -> vector<256x32xf32>
    %42 = arith.addf %37, %41 : vector<256x32xf32>
    %43 = vector.extract_strided_slice %1 {offsets = [2, 2, 0], sizes = [16, 16, 3], strides = [1, 1, 1]} : vector<18x18x3xbf16> to vector<16x16x3xbf16>
    %44 = vector.shape_cast %43 : vector<16x16x3xbf16> to vector<256x3xbf16>
    %45 = vector.extract_strided_slice %2 {offsets = [24, 0], sizes = [3, 32], strides = [1, 1]} : vector<27x32xbf16> to vector<3x32xbf16>
    %cst_14 = arith.constant dense<0.000000e+00> : vector<256x32xf32>
    %46 = tpu.matmul %44, %45, %cst_14 {dimension_numbers = #tpu.dot_dimension_numbers<[1], [0], [0], [1], [0, 0, 1, 1], [], []>} : vector<256x3xbf16>, vector<3x32xbf16>, vector<256x32xf32> -> vector<256x32xf32>
    %47 = arith.addf %42, %46 : vector<256x32xf32>
    %48 = vector.broadcast %3 : vector<1x32xf32> to vector<256x32xf32>
    %49 = arith.addf %47, %48 : vector<256x32xf32>
    %cst_15 = arith.constant 0.000000e+00 : f32
    %50 = vector.broadcast %cst_15 : f32 to vector<256x32xf32>
    %51 = arith.maximumf %49, %50 : vector<256x32xf32>
    %cst_16 = arith.constant 0.000000e+00 : f32
    %52 = vector.broadcast %cst_16 : f32 to vector<18x18x32xf32>
    %c0_17 = arith.constant 0 : index
    %c0_18 = arith.constant 0 : index
    %c0_19 = arith.constant 0 : index
    %53 = vector.load %arg12[%c0_17, %c0_18, %c0_19] : memref<18x18x32xf32, #tpu.memory_space<vmem>>, vector<18x18x32xf32>
    tpu.vector_store %arg12[%c0_17, %c0_18, %c0_19], %52 {strides = array<i32>} : memref<18x18x32xf32, #tpu.memory_space<vmem>>, vector<18x18x32xf32>,
    %54 = vector.shape_cast %51 : vector<256x32xf32> to vector<16x16x32xf32>
    %c1 = arith.constant 1 : index
    %c1_20 = arith.constant 1 : index
    %c0_21 = arith.constant 0 : index
    %55 = vector.load %arg12[%c1, %c1_20, %c0_21] : memref<18x18x32xf32, #tpu.memory_space<vmem>>, vector<16x16x32xf32>
    tpu.vector_store %arg12[%c1, %c1_20, %c0_21], %54 {strides = array<i32>} : memref<18x18x32xf32, #tpu.memory_space<vmem>>, vector<16x16x32xf32>,
    %c0_22 = arith.constant 0 : index
    %c0_23 = arith.constant 0 : index
    %c0_24 = arith.constant 0 : index
    %56 = vector.load %arg12[%c0_22, %c0_23, %c0_24] : memref<18x18x32xf32, #tpu.memory_space<vmem>>, vector<18x18x32xf32>
    %57 = arith.truncf %56 : vector<18x18x32xf32> to vector<18x18x32xbf16>
    %c0_25 = arith.constant 0 : index
    %c0_26 = arith.constant 0 : index
    %58 = vector.load %arg4[%c0_25, %c0_26] : memref<288x32xbf16, #tpu.memory_space<vmem>>, vector<288x32xbf16>
    %c0_27 = arith.constant 0 : index
    %c0_28 = arith.constant 0 : index
    %59 = vector.load %arg5[%c0_27, %c0_28] : memref<1x32xf32, #tpu.memory_space<vmem>>, vector<1x32xf32>
    %60 = vector.extract_strided_slice %57 {offsets = [0, 0, 0], sizes = [16, 16, 32], strides = [1, 1, 1]} : vector<18x18x32xbf16> to vector<16x16x32xbf16>
    %61 = vector.shape_cast %60 : vector<16x16x32xbf16> to vector<256x32xbf16>
    %62 = vector.extract_strided_slice %58 {offsets = [0, 0], sizes = [32, 32], strides = [1, 1]} : vector<288x32xbf16> to vector<32x32xbf16>
    %cst_29 = arith.constant dense<0.000000e+00> : vector<256x32xf32>
    %63 = tpu.matmul %61, %62, %cst_29 {dimension_numbers = #tpu.dot_dimension_numbers<[1], [0], [0], [1], [0, 0, 1, 1], [], []>} : vector<256x32xbf16>, vector<32x32xbf16>, vector<256x32xf32> -> vector<256x32xf32>
    %64 = vector.extract_strided_slice %57 {offsets = [0, 1, 0], sizes = [16, 16, 32], strides = [1, 1, 1]} : vector<18x18x32xbf16> to vector<16x16x32xbf16>
    %65 = vector.shape_cast %64 : vector<16x16x32xbf16> to vector<256x32xbf16>
    %66 = vector.extract_strided_slice %58 {offsets = [32, 0], sizes = [32, 32], strides = [1, 1]} : vector<288x32xbf16> to vector<32x32xbf16>
    %cst_30 = arith.constant dense<0.000000e+00> : vector<256x32xf32>
    %67 = tpu.matmul %65, %66, %cst_30 {dimension_numbers = #tpu.dot_dimension_numbers<[1], [0], [0], [1], [0, 0, 1, 1], [], []>} : vector<256x32xbf16>, vector<32x32xbf16>, vector<256x32xf32> -> vector<256x32xf32>
    %68 = arith.addf %63, %67 : vector<256x32xf32>
    %69 = vector.extract_strided_slice %57 {offsets = [0, 2, 0], sizes = [16, 16, 32], strides = [1, 1, 1]} : vector<18x18x32xbf16> to vector<16x16x32xbf16>
    %70 = vector.shape_cast %69 : vector<16x16x32xbf16> to vector<256x32xbf16>
    %71 = vector.extract_strided_slice %58 {offsets = [64, 0], sizes = [32, 32], strides = [1, 1]} : vector<288x32xbf16> to vector<32x32xbf16>
    %cst_31 = arith.constant dense<0.000000e+00> : vector<256x32xf32>
    %72 = tpu.matmul %70, %71, %cst_31 {dimension_numbers = #tpu.dot_dimension_numbers<[1], [0], [0], [1], [0, 0, 1, 1], [], []>} : vector<256x32xbf16>, vector<32x32xbf16>, vector<256x32xf32> -> vector<256x32xf32>
    %73 = arith.addf %68, %72 : vector<256x32xf32>
    %74 = vector.extract_strided_slice %57 {offsets = [1, 0, 0], sizes = [16, 16, 32], strides = [1, 1, 1]} : vector<18x18x32xbf16> to vector<16x16x32xbf16>
    %75 = vector.shape_cast %74 : vector<16x16x32xbf16> to vector<256x32xbf16>
    %76 = vector.extract_strided_slice %58 {offsets = [96, 0], sizes = [32, 32], strides = [1, 1]} : vector<288x32xbf16> to vector<32x32xbf16>
    %cst_32 = arith.constant dense<0.000000e+00> : vector<256x32xf32>
    %77 = tpu.matmul %75, %76, %cst_32 {dimension_numbers = #tpu.dot_dimension_numbers<[1], [0], [0], [1], [0, 0, 1, 1], [], []>} : vector<256x32xbf16>, vector<32x32xbf16>, vector<256x32xf32> -> vector<256x32xf32>
    %78 = arith.addf %73, %77 : vector<256x32xf32>
    %79 = vector.extract_strided_slice %57 {offsets = [1, 1, 0], sizes = [16, 16, 32], strides = [1, 1, 1]} : vector<18x18x32xbf16> to vector<16x16x32xbf16>
    %80 = vector.shape_cast %79 : vector<16x16x32xbf16> to vector<256x32xbf16>
    %81 = vector.extract_strided_slice %58 {offsets = [128, 0], sizes = [32, 32], strides = [1, 1]} : vector<288x32xbf16> to vector<32x32xbf16>
    %cst_33 = arith.constant dense<0.000000e+00> : vector<256x32xf32>
    %82 = tpu.matmul %80, %81, %cst_33 {dimension_numbers = #tpu.dot_dimension_numbers<[1], [0], [0], [1], [0, 0, 1, 1], [], []>} : vector<256x32xbf16>, vector<32x32xbf16>, vector<256x32xf32> -> vector<256x32xf32>
    %83 = arith.addf %78, %82 : vector<256x32xf32>
    %84 = vector.extract_strided_slice %57 {offsets = [1, 2, 0], sizes = [16, 16, 32], strides = [1, 1, 1]} : vector<18x18x32xbf16> to vector<16x16x32xbf16>
    %85 = vector.shape_cast %84 : vector<16x16x32xbf16> to vector<256x32xbf16>
    %86 = vector.extract_strided_slice %58 {offsets = [160, 0], sizes = [32, 32], strides = [1, 1]} : vector<288x32xbf16> to vector<32x32xbf16>
    %cst_34 = arith.constant dense<0.000000e+00> : vector<256x32xf32>
    %87 = tpu.matmul %85, %86, %cst_34 {dimension_numbers = #tpu.dot_dimension_numbers<[1], [0], [0], [1], [0, 0, 1, 1], [], []>} : vector<256x32xbf16>, vector<32x32xbf16>, vector<256x32xf32> -> vector<256x32xf32>
    %88 = arith.addf %83, %87 : vector<256x32xf32>
    %89 = vector.extract_strided_slice %57 {offsets = [2, 0, 0], sizes = [16, 16, 32], strides = [1, 1, 1]} : vector<18x18x32xbf16> to vector<16x16x32xbf16>
    %90 = vector.shape_cast %89 : vector<16x16x32xbf16> to vector<256x32xbf16>
    %91 = vector.extract_strided_slice %58 {offsets = [192, 0], sizes = [32, 32], strides = [1, 1]} : vector<288x32xbf16> to vector<32x32xbf16>
    %cst_35 = arith.constant dense<0.000000e+00> : vector<256x32xf32>
    %92 = tpu.matmul %90, %91, %cst_35 {dimension_numbers = #tpu.dot_dimension_numbers<[1], [0], [0], [1], [0, 0, 1, 1], [], []>} : vector<256x32xbf16>, vector<32x32xbf16>, vector<256x32xf32> -> vector<256x32xf32>
    %93 = arith.addf %88, %92 : vector<256x32xf32>
    %94 = vector.extract_strided_slice %57 {offsets = [2, 1, 0], sizes = [16, 16, 32], strides = [1, 1, 1]} : vector<18x18x32xbf16> to vector<16x16x32xbf16>
    %95 = vector.shape_cast %94 : vector<16x16x32xbf16> to vector<256x32xbf16>
    %96 = vector.extract_strided_slice %58 {offsets = [224, 0], sizes = [32, 32], strides = [1, 1]} : vector<288x32xbf16> to vector<32x32xbf16>
    %cst_36 = arith.constant dense<0.000000e+00> : vector<256x32xf32>
    %97 = tpu.matmul %95, %96, %cst_36 {dimension_numbers = #tpu.dot_dimension_numbers<[1], [0], [0], [1], [0, 0, 1, 1], [], []>} : vector<256x32xbf16>, vector<32x32xbf16>, vector<256x32xf32> -> vector<256x32xf32>
    %98 = arith.addf %93, %97 : vector<256x32xf32>
    %99 = vector.extract_strided_slice %57 {offsets = [2, 2, 0], sizes = [16, 16, 32], strides = [1, 1, 1]} : vector<18x18x32xbf16> to vector<16x16x32xbf16>
    %100 = vector.shape_cast %99 : vector<16x16x32xbf16> to vector<256x32xbf16>
    %101 = vector.extract_strided_slice %58 {offsets = [256, 0], sizes = [32, 32], strides = [1, 1]} : vector<288x32xbf16> to vector<32x32xbf16>
    %cst_37 = arith.constant dense<0.000000e+00> : vector<256x32xf32>
    %102 = tpu.matmul %100, %101, %cst_37 {dimension_numbers = #tpu.dot_dimension_numbers<[1], [0], [0], [1], [0, 0, 1, 1], [], []>} : vector<256x32xbf16>, vector<32x32xbf16>, vector<256x32xf32> -> vector<256x32xf32>
    %103 = arith.addf %98, %102 : vector<256x32xf32>
    %104 = vector.broadcast %59 : vector<1x32xf32> to vector<256x32xf32>
    %105 = arith.addf %103, %104 : vector<256x32xf32>
    %cst_38 = arith.constant 0.000000e+00 : f32
    %106 = vector.broadcast %cst_38 : f32 to vector<256x32xf32>
    %107 = arith.maximumf %105, %106 : vector<256x32xf32>
    %108 = vector.shape_cast %107 : vector<256x32xf32> to vector<16x16x32xf32>
    %109 = arith.truncf %108 : vector<16x16x32xf32> to vector<16x16x32xbf16>
    %c0_39 = arith.constant 0 : index
    %c0_40 = arith.constant 0 : index
    %c0_41 = arith.constant 0 : index
    %c0_42 = arith.constant 0 : index
    %110 = vector.load %arg10[%c0_39, %c0_40, %c0_41, %c0_42] : memref<1x16x16x32xbf16, #tpu.memory_space<vmem>>, vector<1x16x16x32xbf16>
    %111 = vector.shape_cast %110 : vector<1x16x16x32xbf16> to vector<16x16x32xbf16>
    %112 = vector.shape_cast %109 : vector<16x16x32xbf16> to vector<1x16x16x32xbf16>
    tpu.vector_store %arg10[%c0_39, %c0_40, %c0_41, %c0_42], %112 {strides = array<i32>} : memref<1x16x16x32xbf16, #tpu.memory_space<vmem>>, vector<1x16x16x32xbf16>,
    %cst_43 = arith.constant 0.000000e+00 : f32
    %113 = vector.broadcast %cst_43 : f32 to vector<18x18x32xf32>
    %c0_44 = arith.constant 0 : index
    %c0_45 = arith.constant 0 : index
    %c0_46 = arith.constant 0 : index
    %114 = vector.load %arg13[%c0_44, %c0_45, %c0_46] : memref<18x18x32xf32, #tpu.memory_space<vmem>>, vector<18x18x32xf32>
    tpu.vector_store %arg13[%c0_44, %c0_45, %c0_46], %113 {strides = array<i32>} : memref<18x18x32xf32, #tpu.memory_space<vmem>>, vector<18x18x32xf32>,
    %115 = vector.shape_cast %107 : vector<256x32xf32> to vector<16x16x32xf32>
    %c1_47 = arith.constant 1 : index
    %c1_48 = arith.constant 1 : index
    %c0_49 = arith.constant 0 : index
    %116 = vector.load %arg13[%c1_47, %c1_48, %c0_49] : memref<18x18x32xf32, #tpu.memory_space<vmem>>, vector<16x16x32xf32>
    tpu.vector_store %arg13[%c1_47, %c1_48, %c0_49], %115 {strides = array<i32>} : memref<18x18x32xf32, #tpu.memory_space<vmem>>, vector<16x16x32xf32>,
    %c0_50 = arith.constant 0 : index
    %c0_51 = arith.constant 0 : index
    %c0_52 = arith.constant 0 : index
    %117 = vector.load %arg13[%c0_50, %c0_51, %c0_52] : memref<18x18x32xf32, #tpu.memory_space<vmem>>, vector<18x18x32xf32>
    %118 = arith.truncf %117 : vector<18x18x32xf32> to vector<18x18x32xbf16>
    %c0_53 = arith.constant 0 : index
    %c0_54 = arith.constant 0 : index
    %119 = vector.load %arg6[%c0_53, %c0_54] : memref<288x32xbf16, #tpu.memory_space<vmem>>, vector<288x32xbf16>
    %c0_55 = arith.constant 0 : index
    %c0_56 = arith.constant 0 : index
    %120 = vector.load %arg7[%c0_55, %c0_56] : memref<1x32xf32, #tpu.memory_space<vmem>>, vector<1x32xf32>
    %121 = vector.extract_strided_slice %118 {offsets = [0, 0, 0], sizes = [16, 16, 32], strides = [1, 1, 1]} : vector<18x18x32xbf16> to vector<16x16x32xbf16>
    %122 = vector.shape_cast %121 : vector<16x16x32xbf16> to vector<256x32xbf16>
    %123 = vector.extract_strided_slice %119 {offsets = [0, 0], sizes = [32, 32], strides = [1, 1]} : vector<288x32xbf16> to vector<32x32xbf16>
    %cst_57 = arith.constant dense<0.000000e+00> : vector<256x32xf32>
    %124 = tpu.matmul %122, %123, %cst_57 {dimension_numbers = #tpu.dot_dimension_numbers<[1], [0], [0], [1], [0, 0, 1, 1], [], []>} : vector<256x32xbf16>, vector<32x32xbf16>, vector<256x32xf32> -> vector<256x32xf32>
    %125 = vector.extract_strided_slice %118 {offsets = [0, 1, 0], sizes = [16, 16, 32], strides = [1, 1, 1]} : vector<18x18x32xbf16> to vector<16x16x32xbf16>
    %126 = vector.shape_cast %125 : vector<16x16x32xbf16> to vector<256x32xbf16>
    %127 = vector.extract_strided_slice %119 {offsets = [32, 0], sizes = [32, 32], strides = [1, 1]} : vector<288x32xbf16> to vector<32x32xbf16>
    %cst_58 = arith.constant dense<0.000000e+00> : vector<256x32xf32>
    %128 = tpu.matmul %126, %127, %cst_58 {dimension_numbers = #tpu.dot_dimension_numbers<[1], [0], [0], [1], [0, 0, 1, 1], [], []>} : vector<256x32xbf16>, vector<32x32xbf16>, vector<256x32xf32> -> vector<256x32xf32>
    %129 = arith.addf %124, %128 : vector<256x32xf32>
    %130 = vector.extract_strided_slice %118 {offsets = [0, 2, 0], sizes = [16, 16, 32], strides = [1, 1, 1]} : vector<18x18x32xbf16> to vector<16x16x32xbf16>
    %131 = vector.shape_cast %130 : vector<16x16x32xbf16> to vector<256x32xbf16>
    %132 = vector.extract_strided_slice %119 {offsets = [64, 0], sizes = [32, 32], strides = [1, 1]} : vector<288x32xbf16> to vector<32x32xbf16>
    %cst_59 = arith.constant dense<0.000000e+00> : vector<256x32xf32>
    %133 = tpu.matmul %131, %132, %cst_59 {dimension_numbers = #tpu.dot_dimension_numbers<[1], [0], [0], [1], [0, 0, 1, 1], [], []>} : vector<256x32xbf16>, vector<32x32xbf16>, vector<256x32xf32> -> vector<256x32xf32>
    %134 = arith.addf %129, %133 : vector<256x32xf32>
    %135 = vector.extract_strided_slice %118 {offsets = [1, 0, 0], sizes = [16, 16, 32], strides = [1, 1, 1]} : vector<18x18x32xbf16> to vector<16x16x32xbf16>
    %136 = vector.shape_cast %135 : vector<16x16x32xbf16> to vector<256x32xbf16>
    %137 = vector.extract_strided_slice %119 {offsets = [96, 0], sizes = [32, 32], strides = [1, 1]} : vector<288x32xbf16> to vector<32x32xbf16>
    %cst_60 = arith.constant dense<0.000000e+00> : vector<256x32xf32>
    %138 = tpu.matmul %136, %137, %cst_60 {dimension_numbers = #tpu.dot_dimension_numbers<[1], [0], [0], [1], [0, 0, 1, 1], [], []>} : vector<256x32xbf16>, vector<32x32xbf16>, vector<256x32xf32> -> vector<256x32xf32>
    %139 = arith.addf %134, %138 : vector<256x32xf32>
    %140 = vector.extract_strided_slice %118 {offsets = [1, 1, 0], sizes = [16, 16, 32], strides = [1, 1, 1]} : vector<18x18x32xbf16> to vector<16x16x32xbf16>
    %141 = vector.shape_cast %140 : vector<16x16x32xbf16> to vector<256x32xbf16>
    %142 = vector.extract_strided_slice %119 {offsets = [128, 0], sizes = [32, 32], strides = [1, 1]} : vector<288x32xbf16> to vector<32x32xbf16>
    %cst_61 = arith.constant dense<0.000000e+00> : vector<256x32xf32>
    %143 = tpu.matmul %141, %142, %cst_61 {dimension_numbers = #tpu.dot_dimension_numbers<[1], [0], [0], [1], [0, 0, 1, 1], [], []>} : vector<256x32xbf16>, vector<32x32xbf16>, vector<256x32xf32> -> vector<256x32xf32>
    %144 = arith.addf %139, %143 : vector<256x32xf32>
    %145 = vector.extract_strided_slice %118 {offsets = [1, 2, 0], sizes = [16, 16, 32], strides = [1, 1, 1]} : vector<18x18x32xbf16> to vector<16x16x32xbf16>
    %146 = vector.shape_cast %145 : vector<16x16x32xbf16> to vector<256x32xbf16>
    %147 = vector.extract_strided_slice %119 {offsets = [160, 0], sizes = [32, 32], strides = [1, 1]} : vector<288x32xbf16> to vector<32x32xbf16>
    %cst_62 = arith.constant dense<0.000000e+00> : vector<256x32xf32>
    %148 = tpu.matmul %146, %147, %cst_62 {dimension_numbers = #tpu.dot_dimension_numbers<[1], [0], [0], [1], [0, 0, 1, 1], [], []>} : vector<256x32xbf16>, vector<32x32xbf16>, vector<256x32xf32> -> vector<256x32xf32>
    %149 = arith.addf %144, %148 : vector<256x32xf32>
    %150 = vector.extract_strided_slice %118 {offsets = [2, 0, 0], sizes = [16, 16, 32], strides = [1, 1, 1]} : vector<18x18x32xbf16> to vector<16x16x32xbf16>
    %151 = vector.shape_cast %150 : vector<16x16x32xbf16> to vector<256x32xbf16>
    %152 = vector.extract_strided_slice %119 {offsets = [192, 0], sizes = [32, 32], strides = [1, 1]} : vector<288x32xbf16> to vector<32x32xbf16>
    %cst_63 = arith.constant dense<0.000000e+00> : vector<256x32xf32>
    %153 = tpu.matmul %151, %152, %cst_63 {dimension_numbers = #tpu.dot_dimension_numbers<[1], [0], [0], [1], [0, 0, 1, 1], [], []>} : vector<256x32xbf16>, vector<32x32xbf16>, vector<256x32xf32> -> vector<256x32xf32>
    %154 = arith.addf %149, %153 : vector<256x32xf32>
    %155 = vector.extract_strided_slice %118 {offsets = [2, 1, 0], sizes = [16, 16, 32], strides = [1, 1, 1]} : vector<18x18x32xbf16> to vector<16x16x32xbf16>
    %156 = vector.shape_cast %155 : vector<16x16x32xbf16> to vector<256x32xbf16>
    %157 = vector.extract_strided_slice %119 {offsets = [224, 0], sizes = [32, 32], strides = [1, 1]} : vector<288x32xbf16> to vector<32x32xbf16>
    %cst_64 = arith.constant dense<0.000000e+00> : vector<256x32xf32>
    %158 = tpu.matmul %156, %157, %cst_64 {dimension_numbers = #tpu.dot_dimension_numbers<[1], [0], [0], [1], [0, 0, 1, 1], [], []>} : vector<256x32xbf16>, vector<32x32xbf16>, vector<256x32xf32> -> vector<256x32xf32>
    %159 = arith.addf %154, %158 : vector<256x32xf32>
    %160 = vector.extract_strided_slice %118 {offsets = [2, 2, 0], sizes = [16, 16, 32], strides = [1, 1, 1]} : vector<18x18x32xbf16> to vector<16x16x32xbf16>
    %161 = vector.shape_cast %160 : vector<16x16x32xbf16> to vector<256x32xbf16>
    %162 = vector.extract_strided_slice %119 {offsets = [256, 0], sizes = [32, 32], strides = [1, 1]} : vector<288x32xbf16> to vector<32x32xbf16>
    %cst_65 = arith.constant dense<0.000000e+00> : vector<256x32xf32>
    %163 = tpu.matmul %161, %162, %cst_65 {dimension_numbers = #tpu.dot_dimension_numbers<[1], [0], [0], [1], [0, 0, 1, 1], [], []>} : vector<256x32xbf16>, vector<32x32xbf16>, vector<256x32xf32> -> vector<256x32xf32>
    %164 = arith.addf %159, %163 : vector<256x32xf32>
    %165 = vector.broadcast %120 : vector<1x32xf32> to vector<256x32xf32>
    %166 = arith.addf %164, %165 : vector<256x32xf32>
    %cst_66 = arith.constant 0.000000e+00 : f32
    %167 = vector.broadcast %cst_66 : f32 to vector<256x32xf32>
    %168 = arith.maximumf %166, %167 : vector<256x32xf32>
    %169 = arith.truncf %168 : vector<256x32xf32> to vector<256x32xbf16>
    %c0_67 = arith.constant 0 : index
    %c0_68 = arith.constant 0 : index
    %170 = vector.load %arg8[%c0_67, %c0_68] : memref<32x16xbf16, #tpu.memory_space<vmem>>, vector<32x16xbf16>
    %cst_69 = arith.constant dense<0.000000e+00> : vector<256x16xf32>
    %171 = tpu.matmul %169, %170, %cst_69 {dimension_numbers = #tpu.dot_dimension_numbers<[1], [0], [0], [1], [0, 0, 1, 1], [], []>} : vector<256x32xbf16>, vector<32x16xbf16>, vector<256x16xf32> -> vector<256x16xf32>
    %c0_70 = arith.constant 0 : index
    %c0_71 = arith.constant 0 : index
    %172 = vector.load %arg9[%c0_70, %c0_71] : memref<1x16xf32, #tpu.memory_space<vmem>>, vector<1x16xf32>
    %173 = vector.broadcast %172 : vector<1x16xf32> to vector<256x16xf32>
    %174 = arith.addf %171, %173 : vector<256x16xf32>
    %175 = vector.shape_cast %174 : vector<256x16xf32> to vector<16x16x16xf32>
    %c0_72 = arith.constant 0 : index
    %c0_73 = arith.constant 0 : index
    %c0_74 = arith.constant 0 : index
    %c0_75 = arith.constant 0 : index
    %176 = vector.load %arg11[%c0_72, %c0_73, %c0_74, %c0_75] : memref<1x16x16x16xf32, #tpu.memory_space<vmem>>, vector<1x16x16x16xf32>
    %177 = vector.shape_cast %176 : vector<1x16x16x16xf32> to vector<16x16x16xf32>
    %178 = vector.shape_cast %175 : vector<16x16x16xf32> to vector<1x16x16x16xf32>
    tpu.vector_store %arg11[%c0_72, %c0_73, %c0_74, %c0_75], %178 {strides = array<i32>} : memref<1x16x16x16xf32, #tpu.memory_space<vmem>>, vector<1x16x16x16xf32>,
    return
  }
  func.func @transform_0(%arg0: i32) -> (i32, i32, i32, i32) {
    %c0_i32 = arith.constant 0 : i32
    %c0_i32_0 = arith.constant 0 : i32
    %c0_i32_1 = arith.constant 0 : i32
    %c0_i32_2 = arith.constant 0 : i32
    return %arg0, %c0_i32, %c0_i32_0, %c0_i32_1 : i32, i32, i32, i32
  }
  func.func @transform_1(%arg0: i32) -> (i32, i32) {
    %c0_i32 = arith.constant 0 : i32
    %c0_i32_0 = arith.constant 0 : i32
    %c0_i32_1 = arith.constant 0 : i32
    return %c0_i32, %c0_i32_0 : i32, i32
  }
  func.func @transform_2(%arg0: i32) -> (i32, i32) {
    %c0_i32 = arith.constant 0 : i32
    %c0_i32_0 = arith.constant 0 : i32
    %c0_i32_1 = arith.constant 0 : i32
    return %c0_i32, %c0_i32_0 : i32, i32
  }
  func.func @transform_3(%arg0: i32) -> (i32, i32) {
    %c0_i32 = arith.constant 0 : i32
    %c0_i32_0 = arith.constant 0 : i32
    %c0_i32_1 = arith.constant 0 : i32
    return %c0_i32, %c0_i32_0 : i32, i32
  }
  func.func @transform_4(%arg0: i32) -> (i32, i32) {
    %c0_i32 = arith.constant 0 : i32
    %c0_i32_0 = arith.constant 0 : i32
    %c0_i32_1 = arith.constant 0 : i32
    return %c0_i32, %c0_i32_0 : i32, i32
  }
  func.func @transform_5(%arg0: i32) -> (i32, i32) {
    %c0_i32 = arith.constant 0 : i32
    %c0_i32_0 = arith.constant 0 : i32
    %c0_i32_1 = arith.constant 0 : i32
    return %c0_i32, %c0_i32_0 : i32, i32
  }
  func.func @transform_6(%arg0: i32) -> (i32, i32) {
    %c0_i32 = arith.constant 0 : i32
    %c0_i32_0 = arith.constant 0 : i32
    %c0_i32_1 = arith.constant 0 : i32
    return %c0_i32, %c0_i32_0 : i32, i32
  }
  func.func @transform_7(%arg0: i32) -> (i32, i32) {
    %c0_i32 = arith.constant 0 : i32
    %c0_i32_0 = arith.constant 0 : i32
    %c0_i32_1 = arith.constant 0 : i32
    return %c0_i32, %c0_i32_0 : i32, i32
  }
  func.func @transform_8(%arg0: i32) -> (i32, i32) {
    %c0_i32 = arith.constant 0 : i32
    %c0_i32_0 = arith.constant 0 : i32
    %c0_i32_1 = arith.constant 0 : i32
    return %c0_i32, %c0_i32_0 : i32, i32
  }
  func.func @transform_9(%arg0: i32) -> (i32, i32, i32, i32) {
    %c0_i32 = arith.constant 0 : i32
    %c0_i32_0 = arith.constant 0 : i32
    %c0_i32_1 = arith.constant 0 : i32
    %c0_i32_2 = arith.constant 0 : i32
    return %arg0, %c0_i32, %c0_i32_0, %c0_i32_1 : i32, i32, i32, i32
  }
  func.func @transform_10(%arg0: i32) -> (i32, i32, i32, i32) {
    %c0_i32 = arith.constant 0 : i32
    %c0_i32_0 = arith.constant 0 : i32
    %c0_i32_1 = arith.constant 0 : i32
    %c0_i32_2 = arith.constant 0 : i32
    return %arg0, %c0_i32, %c0_i32_0, %c0_i32_1 : i32, i32, i32, i32
  }
}

</mosaic_0001>

<bundles_post_ra>
// kernel: tpu_custom_call.1
= control target key start
LH: loop header
LB: loop body
LE: loop exit
PB: predicated region body
PF: predicated region fallthrough
CT: control target
= control target key end

     0   :  { %s14880_s0 = inlined_call_operand.vmem [shape: bf16[2,18,18,3], index: 0, kind: input, shape index: {}]   ;;  %s14881_s1 = inlined_call_operand.vmem [shape: bf16[27,32], index: 1, kind: input, shape index: {}]   ;;  %s14882_s2 = inlined_call_operand.vmem [shape: f32[1,32], index: 2, kind: input, shape index: {}]   ;;  %s14883_s3 = inlined_call_operand.vmem [shape: bf16[288,32], index: 3, kind: input, shape index: {}]   ;;  %s14884_s4 = inlined_call_operand.vmem [shape: f32[1,32], index: 4, kind: input, shape index: {}]   ;;  %s14885_s5 = inlined_call_operand.vmem [shape: bf16[288,32], index: 5, kind: input, shape index: {}]   ;;  %s14886_s6 = inlined_call_operand.vmem [shape: f32[1,32], index: 6, kind: input, shape index: {}]   ;;  %s14887_s7 = inlined_call_operand.vmem [shape: bf16[32,16], index: 7, kind: input, shape index: {}]   ;;  %s14888_s8 = inlined_call_operand.vmem [shape: f32[1,16], index: 8, kind: input, shape index: {}]   ;;  %s14889_s9 = inlined_call_operand.hbm [shape: bf16[2,16,16,32], index: 9, kind: output, shape index: {0}]   ;;  %s14890_s10 = inlined_call_operand.hbm [shape: f32[2,16,16,16], index: 10, kind: output, shape index: {1}]  }
   0x1   :  { %14926 = sst [smem:[#allocation36_spill]] %s14880_s0 }
   0x2   :  { %16 = vsyncpa [#allocation5], 0 }
   0x3   :  { %18 = vsyncpa [#allocation5 + $0x1], 0 }
   0x4   :  { %19 = vsyncpa [#allocation7], 0 }
   0x5   :  { %21 = vsyncpa [#allocation7 + $0x1], 0  ;;  %s11973_s13 = smov 0   ;;  %s11975_s14 = smov 0  }
   0x6   :  { %s11977_s15 = smov 0   ;;  %s11979_s16 = smov 0  }
   0x7 LB: > { %s11994_s17 = sadd.s32 4294967295, %s11908_s16   ;;  %s8796_s18 = sadd.s32 4294967294, %s11908_s16   ;;  %s11908_s16 = sphi %s11979_s16, %s14994_s16   ;;  %s11904_s15 = sphi %s11977_s15, %s14993_s15   ;;  %s11900_s14 = sphi %s11975_s14, %s14992_s14   ;;  %s11896_s13 = sphi %s11973_s13, %s14991_s13  }
   0x8   : > { %s11998_s19 = sadd.s32 1, %s11908_s16   ;;  %s228_s20 = sadd.s32 1, %s11904_s15 }
   0x9   : > { %s225_s21 = ssub.s32 %s11908_s16, %s11998_s19  ;;  %p238_p0 = scmp.ne.s32.totalorder %s11904_s15, %s11900_s14 }
   0xa   : > { %p226_p1 = scmp.eq.s32.totalorder %s225_s21, 0  ;;  %p239_p2 = scmp.eq.s32.totalorder %s11994_s17, 1 }
   0xb   : > { %p244_p3 = scmp.ne.s32.totalorder %s11900_s14, %s11896_s13  ;;  %p245_p4 = scmp.eq.s32.totalorder %s8796_s18, 1 }
   0xc   : > { %s12009_s22 = scalar_select %p226_p1, %s11904_s15, %s228_s20  }
   0xd   : > { %p12011_p5 = por %p239_p2, %p238_p0  ;;  %p12015_p6 = por %p245_p4, %p244_p3 }
   0xe   : > { %p8799_p7 = scmp.ge.s32.totalorder %s11908_s16, 1  ;;  %p321_p8 = scmp.lt.s32.totalorder %s11908_s16, 3 }
  0x10   : > { %p322_p9 = pnand %p8799_p7, %p321_p8 }
  0x12   : > { %325 = sbr.rel (%p322_p9) target bundleno = 2327 (0x917), region = 56 }
  0x19   : > { %v425_v0 = vld [vmem:[%s14881_s1 + $0x4] sm:$0xf]  ;;  %vm924_vm0 = vcmask 1040384   ;;  %vm925_vm1 = vcmask 1041408   ;;  %p364_p10 = scmp.lt.s32.totalorder %s11994_s17, 1  ;;  %v11910_v1 = vmov 65535  }
  0x1a   : > { %v926_v2 = vsel %vm924_vm0, 4294967295, %v11910_v1  ;;  %v12025_v3 = vcombine.low %v425_v0, %v425_v0  ;;  %v424_v4 = vld [vmem:[%s14881_s1] sm:$0xf]  ;;  %vm429_vm2 = vsmask.f32 3328  ;;  %s14930_s0 = sld [smem:[#allocation36_spill]] }
  0x1b   : > { %v12030_v5 = vsel %vm925_vm1, %v926_v2, 0  ;;  %v8819_v6 = vcombine.low %v424_v4, %v424_v4  ;;  %s365_s29 = scalar_select %p364_p10, %s11994_s17, 1  ;;  %v426_v7 = vld [vmem:[%s14881_s1 + $0x8] sm:$0xf]  ;;  %vm430_vm3 = vsmask.f32 7440 }
  0x1c   : > { %14929 = vst [vmem:[#allocation10_spill] sm:$0xff] %v12025_v3  ;;  %v2050_v8 = vrot.slane %v12025_v3, 2  ;;  %v8954_v9 = vcombine.low %v425_v0, %v426_v7  ;;  %v12038_v13 = vcombine.low %v426_v7, %v426_v7  ;;  %v12053_v21 = vand.u32 %v12030_v5, %v424_v4  ;;  %vm12077_vm5 = vmor %vm429_vm2, %vm430_vm3  ;;  %v11771_v45 = vld [vmem:[%s14883_s3 + $0x10] sm:$0xff]   ;;  %s13923_s11 = sand.u32 1, %s11900_s14   ;;  %s9442_s25 = sshll.u32 %s11994_s17, 11 }
  0x1d   : > { %v868_v10 = vshrl.u32 %v8819_v6, 16  ;;  %v871_v11 = vshll.u32 %v8819_v6, 16  ;;  %s11697_s12 = smul.u32 216, %s365_s29  ;;  %vm875_vm4 = vcmask 23552   ;;  %vm1400_vm6 = vcmask 1042432   ;;  %s8800_s20 = sshll.u32 %s13923_s11, 7 }
  0x1e   : > { %v2055_v12 = vand.u32 %v2050_v8, %v12030_v5  ;;  %v2265_v16 = vshrl.u32 %v8954_v9, 16  ;;  %v2268_v17 = vshll.u32 %v8954_v9, 16  ;;  %vm1401_vm7 = vcmask 1046532   ;;  %s14697_s28 = scalar_lea.hbm %s14889_s9, %s9442_s25  ;;  %s8668_s30 = scalar_lea.sflag [#allocation5], %s13923_s11 }
  0x1f   : > { %v870_v14 = vrot.slane %v868_v10, 1  ;;  %v873_v15 = vrot.slane %v871_v11, 2  ;;  %vm12446_vm8 = vmor %vm1400_vm6, %vm1401_vm7  ;;  %vm3191_vm9 = vcmask 261120   ;;  %vm3194_vm10 = vcmask 254976   ;;  %s11912_s18 = smov [#allocation4]  }
  0x20   : > { %s12043_s21 = scalar_lea.vmem %s14930_s0, %s11697_s12  ;;  %10075 = vmatprep.subr.bf16.mxu0 %v2055_v12  ;;  %v2267_v58 = vrot.slane %v2265_v16, 3  ;;  %v2270_v59 = vrot.slane %v2268_v17, 4  ;;  %vm3407_vm11 = vsmask.f32 7424  ;;  %vm4058_vm12 = vcmask 1046528  }
  0x21   : > { %v12046_v18 = vld [vmem:[%s12043_s21] sm:$0xf]  ;;  %v12049_v19 = vld [vmem:[%s12043_s21 + $0x4] sm:$0xf]  ;;  %v372_v20 = vld [vmem:[%s12043_s21 + $0x8] sm:$0x1]  ;;  %v874_v22 = vor.u32 %v873_v15, %v870_v14  ;;  %10076 = vmatpush3.bf16.msra.mxu0 %v2055_v12 }
  0x22   : > { %v433_v23 = vshrl.u32 %v12046_v18, 16  ;;  %v436_v24 = vshll.u32 %v12046_v18, 16  ;;  %v442_v25 = vshll.u32 %v12049_v19, 16  ;;  %v12059_v26 = vld [vmem:[%s12043_s21 + $0xc] sm:$0xf]  ;;  %v446_v27 = vshrl.u32 %v12049_v19, 16 }
  0x23   : > { %v452_v28 = vshll.u32 %v372_v20, 16  ;;  %v12063_v29 = vld [vmem:[%s12043_s21 + $0x10] sm:$0xf]  ;;  %v457_v30 = vshrl.u32 %v12059_v26, 16  ;;  %v929_v32 = vand.u32 %v12030_v5, %v874_v22  ;;  %v12069_v36 = vld [vmem:[%s12043_s21 + $0x14] sm:$0x1]  ;;  %v2271_v2 = vor.u32 %v2270_v59, %v2267_v58 }
  0x24   : > { %v435_v33 = vrot.slane %v433_v23, 4  ;;  %v438_v34 = vrot.slane %v436_v24, 5  ;;  %v444_v35 = vrot.slane %v442_v25, 5  ;;  %v448_v37 = vrot.slane %v446_v27, 4  ;;  %v12087_v50 = vld [vmem:[%s12043_s21 + $0x18] sm:$0xf] }
  0x25   : > { %v454_v38 = vrot.slane %v452_v28, 5  ;;  %v459_v39 = vrot.slane %v457_v30, 4  ;;  %v460_v40 = vshll.u32 %v12059_v26, 16  ;;  %9939 = vmatprep.subr.bf16.mxu1 %v929_v32  ;;  %v466_v42 = vshll.u32 %v12063_v29, 16  ;;  %v12090_v55 = vld [vmem:[%s12043_s21 + $0x1c] sm:$0xf] }
  0x26   : > { %v439_v41 = vor.u32 %v438_v34, %v435_v33  ;;  %v470_v43 = vshrl.u32 %v12063_v29, 16  ;;  %v476_v44 = vshll.u32 %v12069_v36, 16  ;;  %9940 = vmatpush3.bf16.msra.mxu1 %v929_v32  ;;  %v449_v46 = vor.u32 %v448_v37, %v444_v35  ;;  %v12100_v4 = vld [vmem:[%s12043_s21 + $0x20] sm:$0x1]  ;;  %v12104_v11 = vld [vmem:[%s12043_s21 + $0x24] sm:$0xf] }
  0x27   : > { %v462_v47 = vrot.slane %v460_v40, 5  ;;  %v12083_v48 = vcombine.low %v12059_v26, %v12063_v29  ;;  %v468_v52 = vrot.slane %v466_v42, 5  ;;  %9973 = vmatprep.subr.bf16.mxu1 %v12053_v21  ;;  %v481_v62 = vshrl.u32 %v12087_v50, 16  ;;  %v12111_v17 = vld [vmem:[%s12043_s21 + $0x28] sm:$0xf] }
  0x28   : > { %v440_v51 = vrot.slane %v439_v41, 4  ;;  %v472_v53 = vrot.slane %v470_v43, 4  ;;  %v478_v54 = vrot.slane %v476_v44, 5  ;;  %v450_v56 = vrot.slane %v449_v46, 4  ;;  %v12119_v25 = vld [vmem:[%s12043_s21 + $0x2c] sm:$0x1] }
  0x29   : > { %v463_v57 = vor.u32 %v462_v47, %v459_v39  ;;  %v484_v63 = vshll.u32 %v12087_v50, 16  ;;  %v490_v6 = vshll.u32 %v12090_v55, 16  ;;  %v483_v9 = vrot.slane %v481_v62, 4  ;;  %v12124_v33 = vld [vmem:[%s12043_s21 + $0x30] sm:$0xf] }
  0x2a   : > { %v445_v60 = vsel %vm12077_vm5, %v440_v51, %v444_v35  ;;  %v473_v61 = vor.u32 %v472_v53, %v468_v52  ;;  %v455_v0 = vsel %vm12077_vm5, %v450_v56, %v454_v38  ;;  %v2276_v14 = vand.u32 %v2271_v2, %v12030_v5  ;;  %v12133_v43 = vld [vmem:[%s12043_s21 + $0x34] sm:$0xf]  ;;  %v12138_v51 = vld [vmem:[%s12043_s21 + $0x38] sm:$0x1]  ;;  %v12146_v62 = vld [vmem:[%s12043_s21 + $0x3c] sm:$0xf] }
  0x2b   : > { %v464_v1 = vrot.slane %v463_v57, 4  ;;  %v8803_v7 = vcombine.low %v445_v60, %v455_v0  ;;  %v486_v10 = vrot.slane %v484_v63, 5  ;;  %v492_v15 = vrot.slane %v490_v6, 5  ;;  %v12152_v2 = vld [vmem:[%s12043_s21 + $0x40] sm:$0xf] }
  0x2c   : > { %v474_v8 = vrot.slane %v473_v61, 4  ;;  %v494_v16 = vshrl.u32 %v12090_v55, 16  ;;  %v500_v23 = vshll.u32 %v12100_v4, 16  ;;  %10109 = vmatprep.subr.bf16.mxu0 %v2276_v14  ;;  %v505_v32 = vshrl.u32 %v12104_v11, 16 }
  0x2d   : > { %v469_v12 = vsel %vm12077_vm5, %v464_v1, %v468_v52  ;;  %9941 = vmatprep.mubr.msk.bf16.mxu1 %vm875_vm4, %v8803_v7  ;;  %v487_v22 = vor.u32 %v486_v10, %v483_v9  ;;  %v508_v37 = vshll.u32 %v12104_v11, 16  ;;  %v514_v38 = vshll.u32 %v12111_v17, 16 }
  0x2e   : > { %v479_v20 = vsel %vm12077_vm5, %v474_v8, %v478_v54  ;;  %v496_v28 = vrot.slane %v494_v16, 4  ;;  %v502_v35 = vrot.slane %v500_v23, 5  ;;  %v507_v40 = vrot.slane %v505_v32, 4  ;;  %v12164_v23 = vld [vmem:[%s12043_s21 + $0x44] sm:$0x1] }
  0x2f   : > { %v8804_v27 = vcombine.low %v469_v12, %v479_v20  ;;  %v488_v34 = vrot.slane %v487_v22, 4  ;;  %v518_v41 = vshrl.u32 %v12111_v17, 16  ;;  %v524_v42 = vshll.u32 %v12119_v25, 16  ;;  %v12169_v32 = vld [vmem:[%s12043_s21 + $0x48] sm:$0xf] }
  0x30   : > { %v497_v39 = vor.u32 %v496_v28, %v492_v15  ;;  %v510_v46 = vrot.slane %v508_v37, 5  ;;  %v516_v47 = vrot.slane %v514_v38, 5  ;;  %v529_v52 = vshrl.u32 %v12124_v33, 16 }
  0x31   : > { %10077 = vmatprep.mubr.msk.bf16.mxu0 %vm875_vm4, %v8804_v27  ;;  %9942 = vmatmul.mubr.msk.bf16.vlgmr.msra.gmra.mrb[0].mxu1 %vm875_vm4, %v8804_v27  ;;  %v493_v44 = vsel %vm12077_vm5, %v488_v34, %v492_v15  ;;  %v520_v54 = vrot.slane %v518_v41, 4  ;;  %v526_v56 = vrot.slane %v524_v42, 5  ;;  %v532_v57 = vshll.u32 %v12124_v33, 16 }
  0x32   : > { %9974 = vmatpush3.bf16.msra.mxu1 %v12053_v21  ;;  %v498_v53 = vrot.slane %v497_v39, 4  ;;  %v511_v58 = vor.u32 %v510_v46, %v507_v40  ;;  %v531_v59 = vrot.slane %v529_v52, 4  ;;  %v538_v60 = vshll.u32 %v12133_v43, 16  ;;  %v12175_v39 = vld [vmem:[%s12043_s21 + $0x4c] sm:$0xf] }
  0x33   : > { %v542_v61 = vshrl.u32 %v12133_v43, 16  ;;  %v521_v0 = vor.u32 %v520_v54, %v516_v47  ;;  %v534_v1 = vrot.slane %v532_v57, 5  ;;  %v548_v21 = vshll.u32 %v12138_v51, 16 }
  0x34   : > { %v503_v63 = vsel %vm12077_vm5, %v498_v53, %v502_v35  ;;  %v512_v7 = vrot.slane %v511_v58, 4  ;;  %v540_v8 = vrot.slane %v538_v60, 5  ;;  %v553_v16 = vshrl.u32 %v12146_v62, 16 }
  0x35   : > { %v12154_v6 = vcombine.low %v493_v44, %v503_v63  ;;  %v544_v9 = vrot.slane %v542_v61, 4  ;;  %v522_v10 = vrot.slane %v521_v0, 4  ;;  %v535_v12 = vor.u32 %v534_v1, %v531_v59  ;;  %v12195_v59 = vld [vmem:[%s12043_s21 + $0x54] sm:$0xf]  ;;  %v12200_v1 = vld [vmem:[%s12043_s21 + $0x58] sm:$0xf] }
  0x36   : > { %v550_v15 = vrot.slane %v548_v21, 5  ;;  %v517_v20 = vsel %vm12077_vm5, %v512_v7, %v516_v47  ;;  %v556_v27 = vshll.u32 %v12146_v62, 16  ;;  %v562_v28 = vshll.u32 %v12152_v2, 16 }
  0x37   : > { %14933 = vst [vmem:[#allocation11_spill] sm:$0xff] %v12154_v6  ;;  %10078 = vmatmul.mubr.msk.bf16.vlgmr.msra.gmra.mrb[0].mxu0 %vm875_vm4, %v12154_v6  ;;  %9945 = vmatprep.mubr.msk.bf16.mxu1 %vm875_vm4, %v12154_v6  ;;  %v545_v22 = vor.u32 %v544_v9, %v540_v8  ;;  %v527_v34 = vsel %vm12077_vm5, %v522_v10, %v526_v56  ;;  %v536_v35 = vrot.slane %v535_v12, 4  ;;  %v555_v37 = vrot.slane %v553_v16, 4  ;;  %v12190_v56 = vld [vmem:[%s12043_s21 + $0x50] sm:$0x1] }
  0x38   : > { %10110 = vmatpush3.bf16.msra.mxu0 %v2276_v14  ;;  %v566_v38 = vshrl.u32 %v12152_v2, 16  ;;  %v12177_v40 = vcombine.low %v517_v20, %v527_v34  ;;  %v558_v42 = vrot.slane %v556_v27, 5  ;;  %v564_v44 = vrot.slane %v562_v28, 5  ;;  %v12213_v28 = vld [vmem:[%s12043_s21 + $0x5c] sm:$0x1] }
  0x39   : > { %v546_v41 = vrot.slane %v545_v22, 4  ;;  %v541_v46 = vsel %vm12077_vm5, %v536_v35, %v540_v8  ;;  %v572_v47 = vshll.u32 %v12164_v23, 16  ;;  %v577_v52 = vshrl.u32 %v12169_v32, 16  ;;  %v12217_v35 = vld [vmem:[%s12043_s21 + $0x60] sm:$0xf] }
  0x3a   : > { %14934 = vst [vmem:[#allocation12_spill] sm:$0xff] %v12177_v40  ;;  %v568_v14 = vrot.slane %v566_v38, 4  ;;  %10081 = vmatprep.mubr.msk.bf16.mxu0 %vm875_vm4, %v12177_v40  ;;  %9946 = vmatmul.mubr.msk.bf16.gmra.mrb[4].mxu1 %vm875_vm4, %v12177_v40  ;;  %v559_v54 = vor.u32 %v558_v42, %v555_v37  ;;  %v580_v57 = vshll.u32 %v12169_v32, 16  ;;  %v586_v58 = vshll.u32 %v12175_v39, 16 }
  0x3b   : > { %v551_v53 = vsel %vm12077_vm5, %v546_v41, %v550_v15  ;;  %v574_v63 = vrot.slane %v572_v47, 5  ;;  %v579_v0 = vrot.slane %v577_v52, 4  ;;  %v590_v9 = vshrl.u32 %v12175_v39, 16 }
  0x3c   : > { %v12197_v60 = vcombine.low %v541_v46, %v551_v53  ;;  %v569_v61 = vor.u32 %v568_v14, %v564_v44  ;;  %v560_v21 = vrot.slane %v559_v54, 4  ;;  %v582_v7 = vrot.slane %v580_v57, 5  ;;  %v12222_v46 = vld [vmem:[%s12043_s21 + $0x64] sm:$0xf] }
  0x3d   : > { %v588_v8 = vrot.slane %v586_v58, 5  ;;  %v596_v12 = vshll.u32 %v12190_v56, 16  ;;  %v601_v15 = vshrl.u32 %v12195_v59, 16  ;;  %v604_v16 = vshll.u32 %v12195_v59, 16  ;;  %v12229_v58 = vld [vmem:[%s12043_s21 + $0x68] sm:$0x1] }
  0x3e   : > { %14935 = vst [vmem:[#allocation13_spill] sm:$0xff] %v12197_v60  ;;  %9949 = vmatprep.mubr.msk.bf16.mxu1 %vm875_vm4, %v12197_v60  ;;  %v570_v10 = vrot.slane %v569_v61, 4  ;;  %v565_v20 = vsel %vm12077_vm5, %v560_v21, %v564_v44  ;;  %v583_v22 = vor.u32 %v582_v7, %v579_v0  ;;  %v592_v27 = vrot.slane %v590_v9, 4  ;;  %v12241_v9 = vld [vmem:[%s12043_s21 + $0x6c] sm:$0xf] }
  0x3f   : > { %10082 = vmatmul.mubr.msk.bf16.gmra.mrb[4].mxu0 %vm875_vm4, %v12197_v60  ;;  %v610_v34 = vshll.u32 %v12200_v1, 16  ;;  %v598_v38 = vrot.slane %v596_v12, 5  ;;  %v603_v41 = vrot.slane %v601_v15, 4  ;;  %v606_v42 = vrot.slane %v604_v16, 5 }
  0x40   : > { %v575_v37 = vsel %vm12077_vm5, %v570_v10, %v574_v63  ;;  %v584_v44 = vrot.slane %v583_v22, 4  ;;  %v593_v47 = vor.u32 %v592_v27, %v588_v8  ;;  %v614_v54 = vshrl.u32 %v12200_v1, 16 }
  0x41   : > { %v12224_v14 = vcombine.low %v565_v20, %v575_v37  ;;  %v612_v52 = vrot.slane %v610_v34, 5  ;;  %v607_v53 = vor.u32 %v606_v42, %v603_v41  ;;  %v620_v57 = vshll.u32 %v12213_v28, 16  ;;  %v12244_v20 = vld [vmem:[%s12043_s21 + $0x70] sm:$0xf]  ;;  %v12250_v37 = vld [vmem:[%s12043_s21 + $0x74] sm:$0x1] }
  0x42   : > { %v625_v61 = vshrl.u32 %v12217_v35, 16  ;;  %v589_v63 = vsel %vm12077_vm5, %v584_v44, %v588_v8  ;;  %v594_v0 = vrot.slane %v593_v47, 4  ;;  %v628_v21 = vshll.u32 %v12217_v35, 16 }
  0x43   : > { %14936 = vst [vmem:[#allocation14_spill] sm:$0xff] %v12224_v14  ;;  %10085 = vmatprep.mubr.msk.bf16.mxu0 %vm875_vm4, %v12224_v14  ;;  %9950 = vmatmul.mubr.msk.bf16.gmra.mrb[8].mxu1 %vm875_vm4, %v12224_v14  ;;  %v634_v7 = vshll.u32 %v12222_v46, 16  ;;  %v608_v10 = vrot.slane %v607_v53, 4  ;;  %v616_v12 = vrot.slane %v614_v54, 4  ;;  %v622_v15 = vrot.slane %v620_v57, 5 }
  0x44   : > { %v627_v16 = vrot.slane %v625_v61, 4  ;;  %v599_v22 = vsel %vm12077_vm5, %v594_v0, %v598_v38  ;;  %v630_v27 = vrot.slane %v628_v21, 5  ;;  %v638_v8 = vshrl.u32 %v12222_v46, 16  ;;  %v12260_v61 = vld [vmem:[%s12043_s21 + $0x78] sm:$0xf] }
  0x45   : > { %v636_v34 = vrot.slane %v634_v7, 5  ;;  %v12252_v41 = vcombine.low %v589_v63, %v599_v22  ;;  %v613_v42 = vsel %vm12077_vm5, %v608_v10, %v612_v52  ;;  %v617_v44 = vor.u32 %v616_v12, %v612_v52  ;;  %v12269_v7 = vld [vmem:[%s12043_s21 + $0x7c] sm:$0xf] }
  0x46   : > { %v644_v47 = vshll.u32 %v12229_v58, 16  ;;  %v631_v53 = vor.u32 %v630_v27, %v627_v16  ;;  %v640_v54 = vrot.slane %v638_v8, 4  ;;  %v649_v57 = vshrl.u32 %v12241_v9, 16 }
  0x47   : > { %14937 = vst [vmem:[#allocation15_spill] sm:$0xff] %v12252_v41  ;;  %v652_v38 = vshll.u32 %v12241_v9, 16  ;;  %10086 = vmatmul.mubr.msk.bf16.gmra.mrb[8].mxu0 %vm875_vm4, %v12252_v41  ;;  %9953 = vmatprep.mubr.msk.bf16.mxu1 %vm875_vm4, %v12252_v41  ;;  %v618_v63 = vrot.slane %v617_v44, 4  ;;  %v658_v52 = vshll.u32 %v12244_v20, 16  ;;  %v662_v21 = vshrl.u32 %v12244_v20, 16 }
  0x48   : > { %v646_v0 = vrot.slane %v644_v47, 5  ;;  %v632_v10 = vrot.slane %v631_v53, 4  ;;  %v641_v12 = vor.u32 %v640_v54, %v636_v34  ;;  %v651_v16 = vrot.slane %v649_v57, 4  ;;  %v12275_v47 = vld [vmem:[%s12043_s21 + $0x80] sm:$0x1] }
  0x49   : > { %v654_v22 = vrot.slane %v652_v38, 5  ;;  %v623_v27 = vsel %vm12077_vm5, %v618_v63, %v622_v15  ;;  %v660_v8 = vrot.slane %v658_v52, 5  ;;  %v664_v30 = vrot.slane %v662_v21, 4  ;;  %v12282_v54 = vld [vmem:[%s12043_s21 + $0x84] sm:$0xf] }
  0x4a   : > { %v668_v44 = vshll.u32 %v12250_v37, 16  ;;  %v12277_v49 = vcombine.low %v613_v42, %v623_v27  ;;  %v637_v24 = vsel %vm12077_vm5, %v632_v10, %v636_v34  ;;  %v642_v31 = vrot.slane %v641_v12, 4  ;;  %v12287_v52 = vld [vmem:[%s12043_s21 + $0x88] sm:$0xf]  ;;  %v12300_v27 = vld [vmem:[%s12043_s21 + $0x8c] sm:$0x1] }
  0x4b   : > { %v655_v53 = vor.u32 %v654_v22, %v651_v16  ;;  %v665_v57 = vor.u32 %v664_v30, %v660_v8  ;;  %v673_v15 = vshrl.u32 %v12260_v61, 16  ;;  %v676_v63 = vshll.u32 %v12260_v61, 16  ;;  %14939 = vst [vmem:[#allocation17_spill] sm:$0xff] %v12287_v52  ;;  %14941 = vst [vmem:[#allocation19_spill] sm:$0xff] %v12300_v27 }
  0x4c   : > { %14938 = vst [vmem:[#allocation16_spill] sm:$0xff] %v12277_v49  ;;  %v670_v38 = vrot.slane %v668_v44, 5  ;;  %10089 = vmatprep.mubr.msk.bf16.mxu0 %vm875_vm4, %v12277_v49  ;;  %9954 = vmatmul.mubr.msk.bf16.gmra.mrb[12].mxu1 %vm875_vm4, %v12277_v49  ;;  %v647_v34 = vsel %vm12077_vm5, %v642_v31, %v646_v0  ;;  %v682_v30 = vshll.u32 %v12269_v7, 16  ;;  %v686_v21 = vshrl.u32 %v12269_v7, 16  ;;  %v12303_v44 = vld [vmem:[%s12043_s21 + $0x90] sm:$0xf] }
  0x4d   : > { %v656_v42 = vrot.slane %v655_v53, 4  ;;  %v12297_v10 = vcombine.low %v637_v24, %v647_v34  ;;  %v666_v12 = vrot.slane %v665_v57, 4  ;;  %v675_v16 = vrot.slane %v673_v15, 4  ;;  %14942 = vst [vmem:[#allocation20_spill] sm:$0xff] %v12303_v44  ;;  %v12317_v15 = vld [vmem:[%s12043_s21 + $0x94] sm:$0xf] }
  0x4e   : > { %v678_v22 = vrot.slane %v676_v63, 5  ;;  %v684_v41 = vrot.slane %v682_v30, 5  ;;  %v688_v31 = vrot.slane %v686_v21, 4  ;;  %v692_v0 = vshll.u32 %v12275_v47, 16  ;;  %14943 = vst [vmem:[#allocation21_spill] sm:$0xff] %v12317_v15 }
  0x4f   : > { %14940 = vst [vmem:[#allocation18_spill] sm:$0xff] %v12297_v10  ;;  %v661_v49 = vsel %vm12077_vm5, %v656_v42, %v660_v8  ;;  %10090 = vmatmul.mubr.msk.bf16.gmra.mrb[12].mxu0 %vm875_vm4, %v12297_v10  ;;  %9957 = vmatprep.mubr.msk.bf16.mxu1 %vm875_vm4, %v12297_v10  ;;  %v671_v24 = vsel %vm12077_vm5, %v666_v12, %v670_v38  ;;  %v697_v57 = vshrl.u32 %v12282_v54, 16  ;;  %v700_v8 = vshll.u32 %v12282_v54, 16  ;;  %v12324_v38 = vld [vmem:[%s12043_s21 + $0x98] sm:$0x1] }
  0x50   : > { %v679_v53 = vor.u32 %v678_v22, %v675_v16  ;;  %v12319_v63 = vcombine.low %v661_v49, %v671_v24  ;;  %v689_v34 = vor.u32 %v688_v31, %v684_v41  ;;  %v694_v42 = vrot.slane %v692_v0, 5  ;;  %14945 = vst [vmem:[#allocation23_spill] sm:$0xff] %v12324_v38  ;;  %v12327_v12 = vld [vmem:[%s12043_s21 + $0x9c] sm:$0xf] }
  0x51   : > { %v706_v30 = vshll.u32 %v12287_v52, 16  ;;  %v699_v14 = vrot.slane %v697_v57, 4  ;;  %v702_v10 = vrot.slane %v700_v8, 5  ;;  %v710_v60 = vshrl.u32 %v12287_v52, 16  ;;  %v12337_v8 = vld [vmem:[%s12043_s21 + $0xa0] sm:$0xf] }
  0x52   : > { %14944 = vst [vmem:[#allocation22_spill] sm:$0xff] %v12319_v63  ;;  %v680_v21 = vrot.slane %v679_v53, 4  ;;  %10093 = vmatprep.mubr.msk.bf16.mxu0 %vm875_vm4, %v12319_v63  ;;  %v690_v16 = vrot.slane %v689_v34, 4  ;;  %v716_v22 = vshll.u32 %v12300_v27, 16  ;;  %v721_v31 = vshrl.u32 %v12303_v44, 16  ;;  %14946 = vst [vmem:[#allocation24_spill] sm:$0xff] %v12337_v8 }
  0x53   : > { %v708_v49 = vrot.slane %v706_v30, 5  ;;  %v703_v24 = vor.u32 %v702_v10, %v699_v14  ;;  %v712_v53 = vrot.slane %v710_v60, 4  ;;  %v724_v57 = vshll.u32 %v12303_v44, 16  ;;  %v12347_v10 = vld [vmem:[%s12043_s21 + $0xa4] sm:$0x1] }
  0x54   : > { %v685_v0 = vsel %vm12077_vm5, %v680_v21, %v684_v41  ;;  %9958 = vmatmul.mubr.msk.bf16.gmra.mrb[16].mxu1 %vm875_vm4, %v12319_v63  ;;  %v695_v34 = vsel %vm12077_vm5, %v690_v16, %v694_v42  ;;  %v718_v30 = vrot.slane %v716_v22, 5  ;;  %v723_v40 = vrot.slane %v721_v31, 4  ;;  %14948 = vst [vmem:[#allocation26_spill] sm:$0xff] %v12347_v10  ;;  %v12353_v42 = vld [vmem:[%s12043_s21 + $0xa8] sm:$0xf] }
  0x55   : > { %v730_v6 = vshll.u32 %v12317_v15, 16  ;;  %v12344_v3 = vcombine.low %v685_v0, %v695_v34  ;;  %v704_v14 = vrot.slane %v703_v24, 4  ;;  %v713_v60 = vor.u32 %v712_v53, %v708_v49  ;;  %14949 = vst [vmem:[#allocation27_spill] sm:$0xff] %v12353_v42  ;;  %v12363_v0 = vld [vmem:[%s12043_s21 + $0xac] sm:$0xf] }
  0x56   : > { %v726_v41 = vrot.slane %v724_v57, 5  ;;  %v734_v44 = vshrl.u32 %v12317_v15, 16  ;;  %v740_v63 = vshll.u32 %v12324_v38, 16  ;;  %v745_v27 = vshrl.u32 %v12327_v12, 16  ;;  %14950 = vst [vmem:[#allocation28_spill] sm:$0xff] %v12363_v0 }
  0x57   : > { %14947 = vst [vmem:[#allocation25_spill] sm:$0xff] %v12344_v3  ;;  %v732_v21 = vrot.slane %v730_v6, 5  ;;  %10094 = vmatmul.mubr.msk.bf16.gmra.mrb[16].mxu0 %vm875_vm4, %v12344_v3  ;;  %9961 = vmatprep.mubr.msk.bf16.mxu1 %vm875_vm4, %v12344_v3  ;;  %v709_v16 = vsel %vm12077_vm5, %v704_v14, %v708_v49  ;;  %v714_v22 = vrot.slane %v713_v60, 4  ;;  %v748_v31 = vshll.u32 %v12327_v12, 16  ;;  %v12370_v49 = vld [vmem:[%s12043_s21 + $0xb0] sm:$0x1] }
  0x58   : > { %v727_v6 = vor.u32 %v726_v41, %v723_v40  ;;  %v736_v24 = vrot.slane %v734_v44, 4  ;;  %v742_v53 = vrot.slane %v740_v63, 5  ;;  %v747_v57 = vrot.slane %v745_v27, 4  ;;  %14951 = vst [vmem:[#allocation29_spill] sm:$0xff] %v12370_v49 }
  0x59   : > { %v754_v34 = vshll.u32 %v12337_v8, 16  ;;  %v719_v38 = vsel %vm12077_vm5, %v714_v22, %v718_v30  ;;  %v750_v3 = vrot.slane %v748_v31, 5  ;;  %v758_v52 = vshrl.u32 %v12337_v8, 16  ;;  %v12379_v22 = vld [vmem:[%s12043_s21 + $0xb4] sm:$0xf] }
  0x5a   : > { %v728_v15 = vrot.slane %v727_v6, 4  ;;  %v12372_v40 = vcombine.low %v709_v16, %v719_v38  ;;  %v737_v14 = vor.u32 %v736_v24, %v732_v21  ;;  %v764_v44 = vshll.u32 %v12347_v10, 16  ;;  %14953 = vst [vmem:[#allocation31_spill] sm:$0xff] %v12379_v22 }
  0x5b   : > { %v756_v60 = vrot.slane %v754_v34, 5  ;;  %v751_v63 = vor.u32 %v750_v3, %v747_v57  ;;  %v760_v41 = vrot.slane %v758_v52, 4  ;;  %v769_v30 = vshrl.u32 %v12353_v42, 16 }
  0x5c   : > { %14952 = vst [vmem:[#allocation30_spill] sm:$0xff] %v12372_v40  ;;  %v733_v27 = vsel %vm12077_vm5, %v728_v15, %v732_v21  ;;  %10097 = vmatprep.mubr.msk.bf16.mxu0 %vm875_vm4, %v12372_v40  ;;  %9962 = vmatmul.mubr.msk.bf16.gmra.mrb[20].mxu1 %vm875_vm4, %v12372_v40  ;;  %v738_v38 = vrot.slane %v737_v14, 4  ;;  %v766_v16 = vrot.slane %v764_v44, 5  ;;  %v772_v6 = vshll.u32 %v12353_v42, 16  ;;  %v12388_v15 = vld [vmem:[%s12043_s21 + $0xb8] sm:$0xf] }
  0x5d   : > { %v778_v31 = vshll.u32 %v12363_v0, 16  ;;  %14954 = vst [vmem:[#allocation32_spill] sm:$0xff] %v12388_v15  ;;  %v752_v3 = vrot.slane %v751_v63, 4  ;;  %v761_v52 = vor.u32 %v760_v41, %v756_v60  ;;  %v771_v21 = vrot.slane %v769_v30, 4  ;;  %v12395_v40 = vld [vmem:[%s12043_s21 + $0xbc] sm:$0x1] }
  0x5e   : > { %v782_v24 = vshrl.u32 %v12363_v0, 16  ;;  %v743_v57 = vsel %vm12077_vm5, %v738_v38, %v742_v53  ;;  %v774_v34 = vrot.slane %v772_v6, 5  ;;  %v788_v44 = vshll.u32 %v12370_v49, 16  ;;  %14955 = vst [vmem:[#allocation33_spill] sm:$0xff] %v12395_v40  ;;  %v12402_v0 = vld [vmem:[%s12043_s21 + $0xc0] sm:$0xf] }
  0x5f   : > { %v780_v14 = vrot.slane %v778_v31, 5  ;;  %v12397_v42 = vcombine.low %v733_v27, %v743_v57  ;;  %v757_v63 = vsel %vm12077_vm5, %v752_v3, %v756_v60  ;;  %v762_v41 = vrot.slane %v761_v52, 4  ;;  %v12407_v6 = vld [vmem:[%s12043_s21 + $0xc4] sm:$0xf] }
  0x60   : > { %v784_v30 = vrot.slane %v782_v24, 4  ;;  %v775_v10 = vor.u32 %v774_v34, %v771_v21  ;;  %v790_v8 = vrot.slane %v788_v44, 5  ;;  %v793_v53 = vshrl.u32 %v12379_v22, 16  ;;  %v12420_v34 = vld [vmem:[%s12043_s21 + $0xc8] sm:$0x1] }
  0x61   : > { %14956 = vst [vmem:[#allocation34_spill] sm:$0xff] %v12397_v42  ;;  %v796_v38 = vshll.u32 %v12379_v22, 16  ;;  %10098 = vmatmul.mubr.msk.bf16.gmra.mrb[20].mxu0 %vm875_vm4, %v12397_v42  ;;  %9965 = vmatprep.mubr.msk.bf16.mxu1 %vm875_vm4, %v12397_v42  ;;  %v767_v60 = vsel %vm12077_vm5, %v762_v41, %v766_v16  ;;  %v802_v31 = vshll.u32 %v12388_v15, 16  ;;  %v806_v3 = vshrl.u32 %v12388_v15, 16 }
  0x62   : > { %v785_v27 = vor.u32 %v784_v30, %v780_v14  ;;  %v12417_v52 = vcombine.low %v757_v63, %v767_v60  ;;  %v776_v21 = vrot.slane %v775_v10, 4  ;;  %v795_v24 = vrot.slane %v793_v53, 4 }
  0x63   : > { %v798_v57 = vrot.slane %v796_v38, 5  ;;  %v804_v22 = vrot.slane %v802_v31, 5  ;;  %v808_v49 = vrot.slane %v806_v3, 4  ;;  %v812_v42 = vshll.u32 %v12395_v40, 16 }
  0x64   : > { %14957 = vst [vmem:[#allocation35_spill] sm:$0xff] %v12417_v52  ;;  %v786_v44 = vrot.slane %v785_v27, 4  ;;  %10101 = vmatprep.mubr.msk.bf16.mxu0 %vm875_vm4, %v12417_v52  ;;  %9966 = vmatmul.mubr.msk.bf16.gmra.mrb[24].mxu1 %vm875_vm4, %v12417_v52  ;;  %v781_v16 = vsel %vm12077_vm5, %v776_v21, %v780_v14  ;;  %v2024_v10 = vshrl.u32 %v12402_v0, 16  ;;  %v2027_v41 = vshll.u32 %v12402_v0, 16 }
  0x65   : > { %v799_v63 = vor.u32 %v798_v57, %v795_v24  ;;  %v809_v53 = vor.u32 %v808_v49, %v804_v22  ;;  %v814_v38 = vrot.slane %v812_v42, 5  ;;  %v2033_v60 = vshll.u32 %v12407_v6, 16 }
  0x66   : > { %v791_v30 = vsel %vm12077_vm5, %v786_v44, %v790_v8  ;;  %v2026_v3 = vrot.slane %v2024_v10, 4  ;;  %v2029_v52 = vrot.slane %v2027_v41, 5  ;;  %v2037_v14 = vshrl.u32 %v12407_v6, 16 }
  0x67   : > { %v12434_v27 = vcombine.low %v781_v16, %v791_v30  ;;  %v800_v31 = vrot.slane %v799_v63, 4  ;;  %v810_v40 = vrot.slane %v809_v53, 4  ;;  %v2035_v15 = vrot.slane %v2033_v60, 5 }
  0x68   : > { %v2043_v21 = vshll.u32 %v12420_v34, 16  ;;  %v2030_v42 = vor.u32 %v2029_v52, %v2026_v3  ;;  %v8836_v49 = vcombine.low %v12046_v18, %v12049_v19  ;;  %v8869_v57 = vrot.slane %v12059_v26, 9 }
  0x69   : > { %9969 = vmatprep.mubr.msk.bf16.mxu1 %vm875_vm4, %v12434_v27  ;;  %v805_v8 = vsel %vm12077_vm5, %v800_v31, %v804_v22  ;;  %10102 = vmatmul.mubr.msk.bf16.gmra.mrb[24].mxu0 %vm875_vm4, %v12434_v27  ;;  %v815_v44 = vsel %vm12077_vm5, %v810_v40, %v814_v38  ;;  %v2039_v16 = vrot.slane %v2037_v14, 4  ;;  %v1412_v52 = vrot.slane %v12063_v29, 5 }
  0x6a   : > { %v2045_v22 = vrot.slane %v2043_v21, 5  ;;  %v12456_v63 = vcombine.low %v805_v8, %v815_v44  ;;  %v2031_v18 = vrot.slane %v2030_v42, 4  ;;  %v14960_v19 = vrot.slane %v12038_v13, 1 }
  0x6b   : > { %v8870_v26 = vrot.slane %v12087_v50, 9  ;;  %v2040_v41 = vor.u32 %v2039_v16, %v2035_v15  ;;  %v1413_v30 = vsel %vm12446_vm8, %v8869_v57, %v1412_v52  ;;  %v1414_v53 = vrot.slane %v1412_v52, 4 }
  0x6c   : > { %v12461_v10 = vand.u32 %v14960_v19, %v12030_v5  ;;  %v14961_v40 = vrot.slane %v12090_v55, 5  ;;  %10105 = vmatprep.mubr.msk.bf16.mxu0 %vm875_vm4, %v12456_v63  ;;  %9970 = vmatmul.mubr.msk.bf16.gmra.mrb[28].mxu1 %vm875_vm4, %v12456_v63  ;;  %v2036_v29 = vsel %vm12077_vm5, %v2031_v18, %v2035_v15  ;;  %v12480_v3 = vcombine.low %v12087_v50, %v12090_v55 }
  0x6d   : > { %v8871_v14 = vrot.slane %v12104_v11, 9  ;;  %v2041_v21 = vrot.slane %v2040_v41, 4  ;;  %9975 = vmatprep.mubr.msk.bf16.mxu1 %vm875_vm4, %v8836_v49  ;;  %v14963_v8 = vrot.slane %v12069_v36, 5  ;;  %v14964_v15 = vrot.slane %v12100_v4, 5 }
  0x6e   : > { %v1421_v38 = vrot.slane %v14961_v40, 4  ;;  %v14962_v60 = vmov %v14961_v40  ;;  %10143 = vmatprep.subr.bf16.mxu0 %v12461_v10  ;;  %v1426_v50 = vrot.slane %v12111_v17, 5  ;;  %v1429_v49 = vrot.slane %v12119_v25, 5 }
  0x6f   : > { %v1420_v31 = vsel %vm12446_vm8, %v8870_v26, %v14962_v60  ;;  %v1416_v42 = vsel %vm12446_vm8, %v1414_v53, %v14963_v8  ;;  %v12501_v36 = vcombine.low %v12104_v11, %v12111_v17  ;;  %v2046_v16 = vsel %vm12077_vm5, %v2041_v21, %v2045_v22 }
  0x70   : > { %v1423_v57 = vsel %vm12446_vm8, %v1421_v38, %v14964_v15  ;;  %v12494_v55 = vcombine.low %v1413_v30, %v1416_v42  ;;  %v1427_v4 = vsel %vm12446_vm8, %v8871_v14, %v1426_v50  ;;  %v1428_v52 = vrot.slane %v1426_v50, 4 }
  0x71   : > { %v12496_v44 = vcombine.low %v1420_v31, %v1423_v57  ;;  %v8872_v18 = vrot.slane %v12124_v33, 9  ;;  %v12508_v19 = vcombine.low %v2036_v29, %v2046_v16  ;;  %v1433_v26 = vrot.slane %v12133_v43, 5 }
  0x72   : > { %v1436_v41 = vrot.slane %v12138_v51, 5  ;;  %v12514_v25 = vcombine.low %v12124_v33, %v12133_v43  ;;  %v1430_v11 = vsel %vm12446_vm8, %v1428_v52, %v1429_v49  ;;  %v8873_v17 = vrot.slane %v12146_v62, 9 }
  0x73   : > { %v1440_v22 = vrot.slane %v12152_v2, 5  ;;  %v1443_v30 = vrot.slane %v12164_v23, 5  ;;  %10106 = vmatmul.mubr.msk.bf16.gmra.mrb[28].mxu0 %vm875_vm4, %v12508_v19  ;;  %v12523_v53 = vcombine.low %v1427_v4, %v1430_v11  ;;  %v1434_v51 = vsel %vm12446_vm8, %v8872_v18, %v1433_v26 }
  0x74   : > { %v1435_v40 = vrot.slane %v1433_v26, 4  ;;  %v12529_v33 = vcombine.low %v12146_v62, %v12152_v2  ;;  %10111 = vmatprep.mubr.msk.bf16.mxu0 %vm875_vm4, %v12494_v55  ;;  %v8874_v38 = vrot.slane %v12169_v32, 9  ;;  %v1447_v29 = vrot.slane %v12175_v39, 5  ;;  %9976 = vmatmul.mubr.msk.bf16.vlgmr.msra.gmra.mrb[0].mxu1 %vm875_vm4, %v12083_v48 }
  0x75   : > { %v1441_v43 = vsel %vm12446_vm8, %v8873_v17, %v1440_v22  ;;  %v1442_v23 = vrot.slane %v1440_v22, 4  ;;  %v1450_v62 = vrot.slane %v12190_v56, 5  ;;  %v12544_v2 = vcombine.low %v12169_v32, %v12175_v39  ;;  %9979 = vmatprep.mubr.msk.bf16.mxu1 %vm875_vm4, %v12480_v3 }
  0x76   : > { %v1437_v60 = vsel %vm12446_vm8, %v1435_v40, %v1436_v41  ;;  %v8875_v31 = vrot.slane %v12195_v59, 9  ;;  %v1448_v8 = vsel %vm12446_vm8, %v8874_v38, %v1447_v29  ;;  %v1449_v42 = vrot.slane %v1447_v29, 4  ;;  %v14966_v29 = vld [vmem:[#allocation19_spill] sm:$0xff] }
  0x77   : > { %v12549_v14 = vcombine.low %v1434_v51, %v1437_v60  ;;  %v1444_v21 = vsel %vm12446_vm8, %v1442_v23, %v1443_v30  ;;  %v1454_v56 = vrot.slane %v12200_v1, 5  ;;  %v1457_v32 = vrot.slane %v12213_v28, 5  ;;  %v14965_v23 = vld [vmem:[#allocation17_spill] sm:$0xff] }
  0x78   : > { %v12555_v15 = vcombine.low %v1441_v43, %v1444_v21  ;;  %v12561_v39 = vcombine.low %v12195_v59, %v12200_v1  ;;  %v1451_v57 = vsel %vm12446_vm8, %v1449_v42, %v1450_v62  ;;  %v8876_v50 = vrot.slane %v12217_v35, 9 }
  0x79   : > { %v1461_v49 = vrot.slane %v12222_v46, 5  ;;  %v1464_v16 = vrot.slane %v12229_v58, 5  ;;  %v12568_v4 = vcombine.low %v1448_v8, %v1451_v57  ;;  %v1455_v52 = vsel %vm12446_vm8, %v8875_v31, %v1454_v56  ;;  %v14967_v8 = vld [vmem:[#allocation20_spill] sm:$0xff] }
  0x7a   : > { %v1456_v18 = vrot.slane %v1454_v56, 4  ;;  %v12574_v28 = vcombine.low %v12217_v35, %v12222_v46  ;;  %v8877_v26 = vrot.slane %v12241_v9, 9  ;;  %v1468_v41 = vrot.slane %v12244_v20, 5  ;;  %v14968_v56 = vld [vmem:[#allocation21_spill] sm:$0xff] }
  0x7b   : > { %v1462_v59 = vsel %vm12446_vm8, %v8876_v50, %v1461_v49  ;;  %v1463_v1 = vrot.slane %v1461_v49, 4  ;;  %10112 = vmatmul.mubr.msk.bf16.vlgmr.msra.gmra.mrb[0].mxu0 %vm875_vm4, %v12496_v44  ;;  %v1471_v11 = vrot.slane %v12250_v37, 5  ;;  %v12587_v35 = vcombine.low %v12241_v9, %v12244_v20  ;;  %v14969_v50 = vld [vmem:[#allocation23_spill] sm:$0xff] }
  0x7c   : > { %v1458_v58 = vsel %vm12446_vm8, %v1456_v18, %v1457_v32  ;;  %v8878_v46 = vrot.slane %v12260_v61, 9  ;;  %10144 = vmatpush3.bf16.msra.mxu0 %v12461_v10  ;;  %10115 = vmatprep.mubr.msk.bf16.mxu0 %vm875_vm4, %v12523_v53  ;;  %v1469_v30 = vsel %vm12446_vm8, %v8877_v26, %v1468_v41  ;;  %v1470_v37 = vrot.slane %v1468_v41, 4  ;;  %v14970_v41 = vld [vmem:[#allocation24_spill] sm:$0xff] }
  0x7d   : > { %v12593_v17 = vcombine.low %v1455_v52, %v1458_v58  ;;  %v1465_v22 = vsel %vm12446_vm8, %v1463_v1, %v1464_v16  ;;  %9980 = vmatmul.mubr.msk.bf16.gmra.mrb[4].mxu1 %vm875_vm4, %v12501_v36  ;;  %v1475_v20 = vrot.slane %v12269_v7, 5  ;;  %v1478_v10 = vrot.slane %v12275_v47, 5 }
  0x7e   : > { %v12601_v9 = vcombine.low %v1462_v59, %v1465_v22  ;;  %v12607_v51 = vcombine.low %v12260_v61, %v12269_v7  ;;  %9983 = vmatprep.mubr.msk.bf16.mxu1 %vm875_vm4, %v12514_v25  ;;  %v1472_v40 = vsel %vm12446_vm8, %v1470_v37, %v1471_v11  ;;  %v8879_v43 = vrot.slane %v12282_v54, 9  ;;  %v14971_v11 = vld [vmem:[#allocation26_spill] sm:$0xff]  ;;  %v14972_v37 = vld [vmem:[#allocation27_spill] sm:$0xff] }
  0x7f   : > { %v1482_v38 = vrot.slane %v14965_v23, 5  ;;  %v1485_v60 = vrot.slane %v14966_v29, 5  ;;  %v12616_v62 = vcombine.low %v1469_v30, %v1472_v40  ;;  %v1476_v47 = vsel %vm12446_vm8, %v8878_v46, %v1475_v20 }
  0x80   : > { %v1477_v31 = vrot.slane %v1475_v20, 4  ;;  %v12622_v61 = vcombine.low %v12282_v54, %v14965_v23  ;;  %v8880_v42 = vrot.slane %v14967_v8, 9  ;;  %v1489_v32 = vrot.slane %v14968_v56, 5 }
  0x81   : > { %v1483_v7 = vsel %vm12446_vm8, %v8879_v43, %v1482_v38  ;;  %v1484_v21 = vrot.slane %v1482_v38, 4  ;;  %v1492_v49 = vrot.slane %v14969_v50, 5  ;;  %v12633_v16 = vcombine.low %v14967_v8, %v14968_v56  ;;  %v14974_v43 = vld [vmem:[#allocation29_spill] sm:$0xff]  ;;  %v14976_v8 = vld [vmem:[#allocation32_spill] sm:$0xff] }
  0x82   : > { %v1479_v57 = vsel %vm12446_vm8, %v1477_v31, %v1478_v10  ;;  %v8881_v54 = vrot.slane %v12327_v12, 9  ;;  %v1490_v59 = vsel %vm12446_vm8, %v8880_v42, %v1489_v32  ;;  %v1491_v1 = vrot.slane %v1489_v32, 4  ;;  %v14973_v10 = vld [vmem:[#allocation28_spill] sm:$0xff]  ;;  %v14977_v32 = vld [vmem:[#allocation33_spill] sm:$0xff] }
  0x83   : > { %v12636_v52 = vcombine.low %v1476_v47, %v1479_v57  ;;  %v1486_v18 = vsel %vm12446_vm8, %v1484_v21, %v1485_v60  ;;  %10116 = vmatmul.mubr.msk.bf16.gmra.mrb[4].mxu0 %vm875_vm4, %v12549_v14  ;;  %v1496_v58 = vrot.slane %v14970_v41, 5  ;;  %v1499_v46 = vrot.slane %v14971_v11, 5 }
  0x84   : > { %v12644_v26 = vcombine.low %v1483_v7, %v1486_v18  ;;  %v12650_v22 = vcombine.low %v12327_v12, %v14970_v41  ;;  %10119 = vmatprep.mubr.msk.bf16.mxu0 %vm875_vm4, %v12555_v15  ;;  %v1493_v30 = vsel %vm12446_vm8, %v1491_v1, %v1492_v49  ;;  %v8882_v20 = vrot.slane %v14972_v37, 9  ;;  %v14975_v7 = vld [vmem:[#allocation31_spill] sm:$0xff] }
  0x85   : > { %v1503_v40 = vrot.slane %v14973_v10, 5  ;;  %v1506_v23 = vrot.slane %v14974_v43, 5  ;;  %9984 = vmatmul.mubr.msk.bf16.gmra.mrb[8].mxu1 %vm875_vm4, %v12529_v33  ;;  %v12661_v38 = vcombine.low %v1490_v59, %v1493_v30  ;;  %v1497_v12 = vsel %vm12446_vm8, %v8881_v54, %v1496_v58  ;;  %v11810_v30 = vld [vmem:[%s14881_s1] sm:$0xf] }
  0x86   : > { %v1498_v29 = vrot.slane %v1496_v58, 4  ;;  %v12667_v60 = vcombine.low %v14972_v37, %v14973_v10  ;;  %9987 = vmatprep.mubr.msk.bf16.mxu1 %vm875_vm4, %v12544_v2  ;;  %v8883_v21 = vrot.slane %v14975_v7, 9  ;;  %v1510_v42 = vrot.slane %v14976_v8, 5 }
  0x87   : > { %v1504_v47 = vsel %vm12446_vm8, %v8882_v20, %v1503_v40  ;;  %v1505_v31 = vrot.slane %v1503_v40, 4  ;;  %v1513_v57 = vrot.slane %v14977_v32, 5  ;;  %v12680_v50 = vcombine.low %v14975_v7, %v14976_v8 }
  0x88   : > { %v1500_v56 = vsel %vm12446_vm8, %v1498_v29, %v1499_v46  ;;  %v8952_v49 = vrot.slane %v12402_v0, 9  ;;  %v1511_v59 = vsel %vm12446_vm8, %v8883_v21, %v1510_v42  ;;  %v1512_v1 = vrot.slane %v1510_v42, 4  ;;  %v11809_v46 = vld [vmem:[%s14881_s1 + $0x4] sm:$0xf] }
  0x89   : > { %v12683_v54 = vcombine.low %v1497_v12, %v1500_v56  ;;  %v1507_v18 = vsel %vm12446_vm8, %v1505_v31, %v1506_v23  ;;  %v2253_v58 = vrot.slane %v12407_v6, 5  ;;  %v2256_v11 = vrot.slane %v12420_v34, 5  ;;  %v14978_v42 = vld [vmem:[#allocation10_spill] sm:$0xff] }
  0x8a   : > { %v12689_v41 = vcombine.low %v1504_v47, %v1507_v18  ;;  %v8900_v37 = vcombine.low %v11810_v30, %v11809_v46  ;;  %v1514_v20 = vsel %vm12446_vm8, %v1512_v1, %v1513_v57  ;;  %v2705_v10 = vshrl.u32 %v12038_v13, 16  ;;  %v11811_v18 = vld [vmem:[%s12043_s21 + $0x4] sm:$0xf]  ;;  %v11812_v1 = vld [vmem:[%s12043_s21 + $0x8] sm:$0x1] }
  0x8b   : > { %10120 = vmatmul.mubr.msk.bf16.gmra.mrb[8].mxu0 %vm875_vm4, %v12568_v4  ;;  %v12704_v40 = vcombine.low %v1511_v59, %v1514_v20  ;;  %v2254_v34 = vsel %vm12446_vm8, %v8952_v49, %v2253_v58  ;;  %v2255_v43 = vrot.slane %v2253_v58, 4  ;;  %v2708_v29 = vshll.u32 %v12038_v13, 16 }
  0x8c   : > { %v1566_v23 = vrot.slane %v8900_v37, 3  ;;  %10123 = vmatprep.mubr.msk.bf16.mxu0 %vm875_vm4, %v12593_v17  ;;  %v2707_v12 = vrot.slane %v2705_v10, 2  ;;  %v12718_v7 = vcombine.low %v12402_v0, %v12407_v6  ;;  %v1818_v56 = vshrl.u32 %v14978_v42, 16 }
  0x8d   : > { %9988 = vmatmul.mubr.msk.bf16.gmra.mrb[12].mxu1 %vm875_vm4, %v12561_v39  ;;  %v2257_v47 = vsel %vm12446_vm8, %v2255_v43, %v2256_v11  ;;  %v2710_v8 = vrot.slane %v2708_v29, 3  ;;  %v1820_v32 = vshll.u32 %v14978_v42, 16  ;;  %v1405_v59 = vrot.slane %v11811_v18, 5  ;;  %v11813_v11 = vld [vmem:[%s12043_s21] sm:$0xf]  ;;  %v14980_v29 = vld [vmem:[#allocation12_spill] sm:$0xff] }
  0x8e   : > { %v1616_v31 = vand.u32 %v1566_v23, %v12030_v5  ;;  %9991 = vmatprep.mubr.msk.bf16.mxu1 %vm875_vm4, %v12574_v28  ;;  %v12722_v21 = vcombine.low %v2254_v34, %v2257_v47  ;;  %v1408_v58 = vrot.slane %v11812_v1, 5  ;;  %v8868_v46 = vrot.slane %v11813_v11, 9  ;;  %v427_v34 = vld [vmem:[%s14881_s1 + $0xc] sm:$0x3]  ;;  %v14981_v47 = vld [vmem:[#allocation13_spill] sm:$0xff] }
  0x8f   : > { %v2711_v13 = vor.u32 %v2710_v8, %v2707_v12  ;;  %v1822_v49 = vrot.slane %v1820_v32, 1  ;;  %v1407_v30 = vrot.slane %v1405_v59, 4  ;;  %v2926_v43 = vand.u32 %v12030_v5, %v427_v34  ;;  %v14979_v12 = vld [vmem:[#allocation11_spill] sm:$0xff]  ;;  %v14989_v8 = vld [vmem:[#allocation34_spill] sm:$0xff]  ;;  %v423_v32 = vld [vmem:[%s12043_s21 + $0xd4] sm:$0x1] }
  0x90   : > { %10007 = vmatprep.subr.bf16.mxu1 %v1616_v31  ;;  %v1406_v37 = vsel %vm12446_vm8, %v8868_v46, %v1405_v59  ;;  %vm5838_vm13 = vcmask 257024  }
  0x91   : > { %10008 = vmatpush3.bf16.msra.mxu1 %v1616_v31  ;;  %v2716_v57 = vand.u32 %v2711_v13, %v12030_v5  ;;  %v1823_v0 = vor.u32 %v1822_v49, %v1818_v56  ;;  %v1409_v20 = vsel %vm12446_vm8, %v1407_v30, %v1408_v58  ;;  %v14985_v31 = vld [vmem:[#allocation18_spill] sm:$0xff] }
  0x92   : > { %v8884_v10 = vcombine.low %v1406_v37, %v1409_v20  ;;  %v13184_v58 = vld [vmem:[%s14883_s3] sm:$0xff]  }
  0x93   : > { %10124 = vmatmul.mubr.msk.bf16.gmra.mrb[12].mxu0 %vm875_vm4, %v12601_v9  ;;  %10177 = vmatprep.subr.bf16.mxu0 %v2716_v57  ;;  %v1828_v6 = vand.u32 %v1823_v0, %v12030_v5  ;;  %v12831_v5 = vld [vmem:[%s12043_s21 + $0xcc] sm:$0xf] }
  0x94   : > { %10127 = vmatprep.mubr.msk.bf16.mxu0 %vm875_vm4, %v12616_v62 }
  0x95   : > { %9992 = vmatmul.mubr.msk.bf16.gmra.mrb[16].mxu1 %vm875_vm4, %v12587_v35  ;;  %10041 = vmatprep.subr.bf16.mxu1 %v1828_v6 }
  0x96   : > { %9995 = vmatprep.mubr.msk.bf16.mxu1 %vm875_vm4, %v12607_v51 }
  0x9b   : > { %10128 = vmatmul.mubr.msk.bf16.gmra.mrb[16].mxu0 %vm875_vm4, %v12636_v52 }
  0x9c   : > { %10131 = vmatprep.mubr.msk.bf16.mxu0 %vm875_vm4, %v12644_v26 }
  0x9d   : > { %9996 = vmatmul.mubr.msk.bf16.gmra.mrb[20].mxu1 %vm875_vm4, %v12622_v61 }
  0x9e   : > { %9999 = vmatprep.mubr.msk.bf16.mxu1 %vm875_vm4, %v12633_v16 }
  0xa3   : > { %10132 = vmatmul.mubr.msk.bf16.gmra.mrb[20].mxu0 %vm875_vm4, %v12661_v38 }
  0xa4   : > { %10135 = vmatprep.mubr.msk.bf16.mxu0 %vm875_vm4, %v12683_v54 }
  0xa5   : > { %10000 = vmatmul.mubr.msk.bf16.gmra.mrb[24].mxu1 %vm875_vm4, %v12650_v22 }
  0xa6   : > { %10003 = vmatprep.mubr.msk.bf16.mxu1 %vm875_vm4, %v12667_v60 }
  0xab   : > { %10136 = vmatmul.mubr.msk.bf16.gmra.mrb[24].mxu0 %vm875_vm4, %v12689_v41 }
  0xac   : > { %10139 = vmatprep.mubr.msk.bf16.mxu0 %vm875_vm4, %v12704_v40 }
  0xad   : > { %10004 = vmatmul.mubr.msk.bf16.gmra.mrb[28].mxu1 %vm875_vm4, %v12680_v50 }
  0xae   : > { %10009 = vmatprep.mubr.msk.bf16.mxu1 %vm875_vm4, %v8884_v10 }
  0xb3   : > { %10140 = vmatmul.mubr.msk.bf16.gmra.mrb[28].mxu0 %vm875_vm4, %v12722_v21 }
  0xb4   : > { %10145 = vmatprep.mubr.msk.bf16.mxu0 %vm875_vm4, %v12480_v3 }
  0xb5   : > { %10010 = vmatmul.mubr.msk.bf16.vlgmr.msra.gmra.mrb[0].mxu1 %vm875_vm4, %v12494_v55  ;;  %v12834_v55 = vld [vmem:[%s12043_s21 + $0xd0] sm:$0xf]  ;;  %s13937_s21 = scalar_lea.vmem [#allocation4], %s8800_s20  ;;  %s11818_s20 = sshll.u32 %s11912_s18, 4  ;;  %s11819_s20 = int_to_ptr.vmem [resolvable:$false] %s11818_s20 }
  0xb6   : > { %10013 = vmatprep.mubr.msk.bf16.mxu1 %vm875_vm4, %v12496_v44  ;;  %10042 = vmatpush3.bf16.msra.mxu1 %v1828_v6  ;;  %v8971_v23 = vcombine.low %v12831_v5, %v12834_v55  ;;  %v2687_v13 = vshll.u32 %v12834_v55, 16  ;;  %v2697_v6 = vshll.u32 %v423_v32, 16  ;;  %s8686_s29 = sshll.u32 %s13937_s21, 4  ;;  %s11820_s0 = scalar_lea.vmem %s11819_s20, 4096  ;;  %s14700_s29 = int_to_ptr.vmem [resolvable:$true] %s8686_s29 }
  0xb7   : > { %10245 = vmatprep.subr.bf16.mxu1 %v11771_v45  ;;  %s11814_s12 = scalar_lea.vmem %s14700_s29, 2048  ;;  %p11821_p0 = scmp.lt.s32.totalorder %s14700_s29, %s11819_s20 }
  0xb8   : > { %v2689_v42 = vrot.slane %v2687_v13, 5  ;;  %v2699_v18 = vrot.slane %v2697_v6, 5  ;;  %p11815_p11 = scmp.ne.s32.totalorder %s14700_s29, %s11814_s12  ;;  %p11822_p1 = scmp.lt.s32.totalorder %s11820_s0, %s11814_s12 }
  0xba   : > { %p11816_p12 = pnand %p11815_p11, %p12011_p5  ;;  %p11823_p2 = por %p11822_p1, %p11821_p0 }
  0xbb   : > { %10146 = vmatmul.mubr.msk.bf16.vlgmr.msra.gmra.mrb[0].mxu0 %vm875_vm4, %v12501_v36 }
  0xbc   : > { %10178 = vmatpush3.bf16.msra.mxu0 %v2716_v57  ;;  %10149 = vmatprep.mubr.msk.bf16.mxu0 %vm875_vm4, %v12514_v25  ;;  %v14990_v57 = vld [vmem:[#allocation35_spill] sm:$0xff]  ;;  %p11817_p13 = pneg %p11816_p12 }
  0xbd   : > { %10014 = vmatmul.mubr.msk.bf16.gmra.mrb[4].mxu1 %vm875_vm4, %v12523_v53  ;;  %10211 = vmatprep.subr.bf16.mxu0 %v2926_v43 }
  0xbe   : > { %10017 = vmatprep.mubr.msk.bf16.mxu1 %vm875_vm4, %v12549_v14  ;;  %p11824_p3 = pnand %p11823_p2, %p11817_p13 }
  0xc3   : > { %10150 = vmatmul.mubr.msk.bf16.gmra.mrb[4].mxu0 %vm875_vm4, %v12529_v33 }
  0xc4   : > { %10153 = vmatprep.mubr.msk.bf16.mxu0 %vm875_vm4, %v12544_v2 }
  0xc5   : > { %10018 = vmatmul.mubr.msk.bf16.gmra.mrb[8].mxu1 %vm875_vm4, %v12555_v15 }
  0xc6   : > { %10021 = vmatprep.mubr.msk.bf16.mxu1 %vm875_vm4, %v12568_v4 }
  0xcb   : > { %10154 = vmatmul.mubr.msk.bf16.gmra.mrb[8].mxu0 %vm875_vm4, %v12561_v39 }
  0xcc   : > { %10157 = vmatprep.mubr.msk.bf16.mxu0 %vm875_vm4, %v12574_v28 }
  0xcd   : > { %10022 = vmatmul.mubr.msk.bf16.gmra.mrb[12].mxu1 %vm875_vm4, %v12593_v17 }
  0xce   : > { %10025 = vmatprep.mubr.msk.bf16.mxu1 %vm875_vm4, %v12601_v9 }
  0xd3   : > { %10158 = vmatmul.mubr.msk.bf16.gmra.mrb[12].mxu0 %vm875_vm4, %v12587_v35 }
  0xd4   : > { %10161 = vmatprep.mubr.msk.bf16.mxu0 %vm875_vm4, %v12607_v51 }
  0xd5   : > { %10026 = vmatmul.mubr.msk.bf16.gmra.mrb[16].mxu1 %vm875_vm4, %v12616_v62 }
  0xd6   : > { %10029 = vmatprep.mubr.msk.bf16.mxu1 %vm875_vm4, %v12636_v52 }
  0xdb   : > { %10162 = vmatmul.mubr.msk.bf16.gmra.mrb[16].mxu0 %vm875_vm4, %v12622_v61 }
  0xdc   : > { %10165 = vmatprep.mubr.msk.bf16.mxu0 %vm875_vm4, %v12633_v16 }
  0xdd   : > { %10030 = vmatmul.mubr.msk.bf16.gmra.mrb[20].mxu1 %vm875_vm4, %v12644_v26 }
  0xde   : > { %10033 = vmatprep.mubr.msk.bf16.mxu1 %vm875_vm4, %v12661_v38 }
  0xe3   : > { %10166 = vmatmul.mubr.msk.bf16.gmra.mrb[20].mxu0 %vm875_vm4, %v12650_v22 }
  0xe4   : > { %10169 = vmatprep.mubr.msk.bf16.mxu0 %vm875_vm4, %v12667_v60 }
  0xe5   : > { %10034 = vmatmul.mubr.msk.bf16.gmra.mrb[24].mxu1 %vm875_vm4, %v12683_v54 }
  0xe6   : > { %10037 = vmatprep.mubr.msk.bf16.mxu1 %vm875_vm4, %v12689_v41 }
  0xeb   : > { %10170 = vmatmul.mubr.msk.bf16.gmra.mrb[24].mxu0 %vm875_vm4, %v12680_v50 }
  0xec   : > { %10173 = vmatprep.mubr.msk.bf16.mxu0 %vm875_vm4, %v12718_v7 }
  0xed   : > { %10038 = vmatmul.mubr.msk.bf16.gmra.mrb[28].mxu1 %vm875_vm4, %v12704_v40 }
  0xee   : > { %10043 = vmatprep.mubr.msk.bf16.mxu1 %vm875_vm4, %v12083_v48  ;;  %v14982_v48 = vld [vmem:[#allocation14_spill] sm:$0xff] }
  0xf3   : > { %10174 = vmatmul.mubr.msk.bf16.gmra.mrb[28].mxu0 %vm875_vm4, %v8971_v23 }
  0xf4   : > { %10179 = vmatprep.mubr.msk.bf16.mxu0 %vm875_vm4, %v14979_v12 }
  0xf5   : > { %10044 = vmatmul.mubr.msk.bf16.vlgmr.msra.gmra.mrb[0].mxu1 %vm875_vm4, %v12480_v3  ;;  %v14983_v3 = vld [vmem:[#allocation15_spill] sm:$0xff] }
  0xf6   : > { %10047 = vmatprep.mubr.msk.bf16.mxu1 %vm875_vm4, %v12501_v36  ;;  %v14984_v36 = vld [vmem:[#allocation16_spill] sm:$0xff]  ;;  %10246 = vmatpush3.bf16.msra.mxu1 %v11771_v45 }
  0xfb   : > { %10180 = vmatmul.mubr.msk.bf16.vlgmr.msra.gmra.mrb[0].mxu0 %vm875_vm4, %v14980_v29 }
  0xfc   : > { %10212 = vmatpush3.bf16.msra.mxu0 %v2926_v43  ;;  %10183 = vmatprep.mubr.msk.bf16.mxu0 %vm875_vm4, %v14981_v47 }
  0xfd   : > { %10048 = vmatmul.mubr.msk.bf16.gmra.mrb[4].mxu1 %vm875_vm4, %v12514_v25  ;;  %v14986_v25 = vld [vmem:[#allocation22_spill] sm:$0xff] }
  0xfe   : > { %10051 = vmatprep.mubr.msk.bf16.mxu1 %vm875_vm4, %v12529_v33  ;;  %v14987_v33 = vld [vmem:[#allocation25_spill] sm:$0xff] }
 0x103   : > { %10184 = vmatmul.mubr.msk.bf16.gmra.mrb[4].mxu0 %vm875_vm4, %v14982_v48 }
 0x104   : > { %10187 = vmatprep.mubr.msk.bf16.mxu0 %vm875_vm4, %v14983_v3 }
 0x105   : > { %10052 = vmatmul.mubr.msk.bf16.gmra.mrb[8].mxu1 %vm875_vm4, %v12544_v2  ;;  %v14988_v2 = vld [vmem:[#allocation30_spill] sm:$0xff] }
 0x106   : > { %10055 = vmatprep.mubr.msk.bf16.mxu1 %vm875_vm4, %v12561_v39  ;;  %v2678_v39 = vshrl.u32 %v12831_v5, 16 }
 0x10b   : > { %10188 = vmatmul.mubr.msk.bf16.gmra.mrb[8].mxu0 %vm875_vm4, %v14984_v36 }
 0x10c   : > { %10191 = vmatprep.mubr.msk.bf16.mxu0 %vm875_vm4, %v14985_v31 }
 0x10d   : > { %10056 = vmatmul.mubr.msk.bf16.gmra.mrb[12].mxu1 %vm875_vm4, %v12574_v28  ;;  %v2681_v28 = vshll.u32 %v12831_v5, 16 }
 0x10e   : > { %10059 = vmatprep.mubr.msk.bf16.mxu1 %vm875_vm4, %v12587_v35  ;;  %v2691_v35 = vshrl.u32 %v12834_v55, 16 }
 0x110   : > { %v2693_v56 = vrot.slane %v2691_v35, 4 }
 0x112   : > { %v2694_v0 = vor.u32 %v2693_v56, %v2689_v42 }
 0x113   : > { %10192 = vmatmul.mubr.msk.bf16.gmra.mrb[12].mxu0 %vm875_vm4, %v14986_v25 }
 0x114   : > { %10195 = vmatprep.mubr.msk.bf16.mxu0 %vm875_vm4, %v14987_v33 }
 0x115   : > { %10060 = vmatmul.mubr.msk.bf16.gmra.mrb[16].mxu1 %vm875_vm4, %v12607_v51  ;;  %v2680_v51 = vrot.slane %v2678_v39, 4 }
 0x116   : > { %10063 = vmatprep.mubr.msk.bf16.mxu1 %vm875_vm4, %v12622_v61  ;;  %v2683_v61 = vrot.slane %v2681_v28, 5 }
 0x118   : > { %v2684_v49 = vor.u32 %v2683_v61, %v2680_v51 }
 0x11b   : > { %10196 = vmatmul.mubr.msk.bf16.gmra.mrb[16].mxu0 %vm875_vm4, %v14988_v2 }
 0x11c   : > { %10199 = vmatprep.mubr.msk.bf16.mxu0 %vm875_vm4, %v14989_v8 }
 0x11d   : > { %10064 = vmatmul.mubr.msk.bf16.gmra.mrb[20].mxu1 %vm875_vm4, %v12633_v16  ;;  %v2685_v16 = vrot.slane %v2684_v49, 4  ;;  %v13238_v49 = vld [vmem:[%s14882_s2] ss:$0 sm:$0xff] }
 0x11e   : > { %10067 = vmatprep.mubr.msk.bf16.mxu1 %vm875_vm4, %v12650_v22  ;;  %v2695_v22 = vrot.slane %v2694_v0, 4 }
 0x120   : > { %v2700_v59 = vsel %vm12077_vm5, %v2695_v22, %v2699_v18 }
 0x123   : > { %10200 = vmatmul.mubr.msk.bf16.gmra.mrb[20].mxu0 %vm875_vm4, %v14990_v57 }
 0x124   : > { %10203 = vmatprep.mubr.msk.bf16.mxu0 %vm875_vm4, %v12434_v27  ;;  %v2690_v27 = vsel %vm12077_vm5, %v2685_v16, %v2689_v42 }
 0x125   : > { %10068 = vmatmul.mubr.msk.bf16.gmra.mrb[24].mxu1 %vm875_vm4, %v12667_v60  ;;  %v8989_v60 = vcombine.low %v2690_v27, %v2700_v59 }
 0x126   : > { %10071 = vmatprep.mubr.msk.bf16.mxu1 %vm875_vm4, %v12680_v50 }
 0x12b   : > { %10204 = vmatmul.mubr.msk.bf16.gmra.mrb[24].mxu0 %vm875_vm4, %v12456_v63  ;;  %v2914_v63 = vrot.slane %v12834_v55, 5 }
 0x12c   : > { %10207 = vmatprep.mubr.msk.bf16.mxu0 %vm875_vm4, %v12508_v19 }
 0x12d   : > { %10072 = vmatmul.mubr.msk.bf16.gmra.mrb[28].mxu1 %vm875_vm4, %v12718_v7  ;;  %v2916_v19 = vrot.slane %v2914_v63, 4 }
 0x133   : > { %10208 = vmatmul.mubr.msk.bf16.gmra.mrb[28].mxu0 %vm875_vm4, %v8989_v60 }
 0x134   : > { %10213 = vmatprep.mubr.msk.bf16.mxu0 %vm875_vm4, %v12496_v44  ;;  %v9006_v44 = vrot.slane %v12831_v5, 9 }
 0x13b   : > { %10214 = vmatmul.mubr.msk.bf16.vlgmr.msra.gmra.mrb[0].mxu0 %vm875_vm4, %v12523_v53  ;;  %v2917_v53 = vrot.slane %v423_v32, 5 }
 0x13c   : > { %10217 = vmatprep.mubr.msk.bf16.mxu0 %vm875_vm4, %v12549_v14  ;;  %v2915_v14 = vsel %vm12446_vm8, %v9006_v44, %v2914_v63 }
 0x143   : > { %10218 = vmatmul.mubr.msk.bf16.gmra.mrb[4].mxu0 %vm875_vm4, %v12555_v15  ;;  %v2918_v15 = vsel %vm12446_vm8, %v2916_v19, %v2917_v53 }
 0x144   : > { %10221 = vmatprep.mubr.msk.bf16.mxu0 %vm875_vm4, %v12568_v4  ;;  %v9007_v4 = vcombine.low %v2915_v14, %v2918_v15 }
 0x14b   : > { %10222 = vmatmul.mubr.msk.bf16.gmra.mrb[8].mxu0 %vm875_vm4, %v12593_v17  ;;  %v11772_v17 = vld [vmem:[%s14883_s3 + $0x18] sm:$0xff]  }
 0x14c   : > { %10225 = vmatprep.mubr.msk.bf16.mxu0 %vm875_vm4, %v12601_v9  ;;  %10247 = vmatprep.subr.bf16.mxu1 %v11772_v17  ;;  %v11911_v9 = vmov 0.0  }
 0x14d   : > { %10248 = vmatpush3.bf16.msra.mxu1 %v11772_v17  ;;  %3199 = vst.msk [vmem:[#allocation2 + $0x30] sm:$0xff] %vm3191_vm9, %v11911_v9  ;;  %3200 = vst.msk [vmem:[#allocation2 + $0x38] sm:$0xff] %vm3191_vm9, %v11911_v9 }
 0x14e   : > { %3192 = vst.msk [vmem:[#allocation2] sm:$0xff] %vm3191_vm9, %v11911_v9  ;;  %3193 = vst.msk [vmem:[#allocation2 + $0x8] sm:$0xff] %vm3191_vm9, %v11911_v9  ;;  %10281 = vmatprep.subr.bf16.mxu1 %v13184_v58 }
 0x14f   : > { %3196 = vst.msk [vmem:[#allocation2 + $0x18] sm:$0xff] %vm3191_vm9, %v11911_v9  ;;  %3197 = vst.msk [vmem:[#allocation2 + $0x20] sm:$0xff] %vm3191_vm9, %v11911_v9 }
 0x150   : > { %3202 = vst.msk [vmem:[#allocation2 + $0x48] sm:$0xff] %vm3191_vm9, %v11911_v9  ;;  %3203 = vst.msk [vmem:[#allocation2 + $0x50] sm:$0xff] %vm3191_vm9, %v11911_v9 }
 0x151   : > { %3205 = vst.msk [vmem:[#allocation2 + $0x60] sm:$0xff] %vm3191_vm9, %v11911_v9  ;;  %3206 = vst.msk [vmem:[#allocation2 + $0x68] sm:$0xff] %vm3191_vm9, %v11911_v9 }
 0x152   : > { %3208 = vst.msk [vmem:[#allocation2 + $0x78] sm:$0xff] %vm3191_vm9, %v11911_v9  ;;  %3209 = vst.msk [vmem:[#allocation2 + $0x80] sm:$0xff] %vm3191_vm9, %v11911_v9 }
 0x153   : > { %10226 = vmatmul.mubr.msk.bf16.gmra.mrb[12].mxu0 %vm875_vm4, %v12616_v62  ;;  %3211 = vst.msk [vmem:[#allocation2 + $0x90] sm:$0xff] %vm3191_vm9, %v11911_v9  ;;  %3212 = vst.msk [vmem:[#allocation2 + $0x98] sm:$0xff] %vm3191_vm9, %v11911_v9 }
 0x154   : > { %10229 = vmatprep.mubr.msk.bf16.mxu0 %vm875_vm4, %v12636_v52  ;;  %3214 = vst.msk [vmem:[#allocation2 + $0xa8] sm:$0xff] %vm3191_vm9, %v11911_v9  ;;  %3215 = vst.msk [vmem:[#allocation2 + $0xb0] sm:$0xff] %vm3191_vm9, %v11911_v9 }
 0x155   : > { %3217 = vst.msk [vmem:[#allocation2 + $0xc0] sm:$0xff] %vm3191_vm9, %v11911_v9  ;;  %3218 = vst.msk [vmem:[#allocation2 + $0xc8] sm:$0xff] %vm3191_vm9, %v11911_v9  ;;  %v3280_v24 = vld [vmem:[#allocation2] sm:$0xff]  ;;  %v3281_v62 = vld [vmem:[#allocation2 + $0x8] sm:$0xff] }
 0x156   : > { %3220 = vst.msk [vmem:[#allocation2 + $0xd8] sm:$0xff] %vm3191_vm9, %v11911_v9  ;;  %3221 = vst.msk [vmem:[#allocation2 + $0xe0] sm:$0xff] %vm3191_vm9, %v11911_v9  ;;  %v13172_v52 = vpack.c.bf16 %v3281_v62, %v3280_v24 }
 0x157   : > { %3223 = vst.msk [vmem:[#allocation2 + $0xf0] sm:$0xff] %vm3191_vm9, %v11911_v9  ;;  %3224 = vst.msk [vmem:[#allocation2 + $0xf8] sm:$0xff] %vm3191_vm9, %v11911_v9 }
 0x158   : > { %3226 = vst.msk [vmem:[#allocation2 + $0x108] sm:$0xff] %vm3191_vm9, %v11911_v9  ;;  %3227 = vst.msk [vmem:[#allocation2 + $0x110] sm:$0xff] %vm3191_vm9, %v11911_v9  ;;  %v3411_v50 = vshll.u32 %v13172_v52, 16 }
 0x159   : > { %3229 = vst.msk [vmem:[#allocation2 + $0x120] sm:$0xff] %vm3191_vm9, %v11911_v9  ;;  %3230 = vst.msk [vmem:[#allocation2 + $0x128] sm:$0xff] %vm3191_vm9, %v11911_v9 }
 0x15a   : > { %3232 = vst.msk [vmem:[#allocation2 + $0x138] sm:$0xff] %vm3191_vm9, %v11911_v9  ;;  %3233 = vst.msk [vmem:[#allocation2 + $0x140] sm:$0xff] %vm3191_vm9, %v11911_v9 }
 0x15b   : > { %10230 = vmatmul.mubr.msk.bf16.gmra.mrb[16].mxu0 %vm875_vm4, %v12644_v26  ;;  %3235 = vst.msk [vmem:[#allocation2 + $0x150] sm:$0xff] %vm3191_vm9, %v11911_v9  ;;  %3236 = vst.msk [vmem:[#allocation2 + $0x158] sm:$0xff] %vm3191_vm9, %v11911_v9 }
 0x15c   : > { %10233 = vmatprep.mubr.msk.bf16.mxu0 %vm875_vm4, %v12661_v38  ;;  %3238 = vst.msk [vmem:[#allocation2 + $0x168] sm:$0xff] %vm3191_vm9, %v11911_v9  ;;  %3239 = vst.msk [vmem:[#allocation2 + $0x170] sm:$0xff] %vm3191_vm9, %v11911_v9 }
 0x15d   : > { %3241 = vst.msk [vmem:[#allocation2 + $0x180] sm:$0xff] %vm3191_vm9, %v11911_v9  ;;  %3242 = vst.msk [vmem:[#allocation2 + $0x188] sm:$0xff] %vm3191_vm9, %v11911_v9 }
 0x15e   : > { %3244 = vst.msk [vmem:[#allocation2 + $0x198] sm:$0xff] %vm3191_vm9, %v11911_v9  ;;  %3245 = vst.msk [vmem:[#allocation2 + $0x1a0] sm:$0xff] %vm3191_vm9, %v11911_v9 }
 0x15f   : > { %5871 = vst.msk [vmem:[#allocation3] sm:$0xff] %vm3191_vm9, %v11911_v9  ;;  %5872 = vst.msk [vmem:[#allocation3 + $0x8] sm:$0xff] %vm3191_vm9, %v11911_v9 }
 0x160   : > { %5874 = vst.msk [vmem:[#allocation3 + $0x18] sm:$0xff] %vm3191_vm9, %v11911_v9  ;;  %5875 = vst.msk [vmem:[#allocation3 + $0x20] sm:$0xff] %vm3191_vm9, %v11911_v9 }
 0x161   : > { %5877 = vst.msk [vmem:[#allocation3 + $0x30] sm:$0xff] %vm3191_vm9, %v11911_v9  ;;  %5878 = vst.msk [vmem:[#allocation3 + $0x38] sm:$0xff] %vm3191_vm9, %v11911_v9 }
 0x162   : > { %5880 = vst.msk [vmem:[#allocation3 + $0x48] sm:$0xff] %vm3191_vm9, %v11911_v9  ;;  %5881 = vst.msk [vmem:[#allocation3 + $0x50] sm:$0xff] %vm3191_vm9, %v11911_v9 }
 0x163   : > { %10234 = vmatmul.mubr.msk.bf16.gmra.mrb[20].mxu0 %vm875_vm4, %v12683_v54  ;;  %5883 = vst.msk [vmem:[#allocation3 + $0x60] sm:$0xff] %vm3191_vm9, %v11911_v9  ;;  %5884 = vst.msk [vmem:[#allocation3 + $0x68] sm:$0xff] %vm3191_vm9, %v11911_v9  ;;  %v3409_v54 = vshrl.u32 %v13172_v52, 16 }
 0x164   : > { %10237 = vmatprep.mubr.msk.bf16.mxu0 %vm875_vm4, %v12689_v41  ;;  %5886 = vst.msk [vmem:[#allocation3 + $0x78] sm:$0xff] %vm3191_vm9, %v11911_v9  ;;  %5887 = vst.msk [vmem:[#allocation3 + $0x80] sm:$0xff] %vm3191_vm9, %v11911_v9  ;;  %v3413_v41 = vrot.slane %v3411_v50, 1 }
 0x165   : > { %5889 = vst.msk [vmem:[#allocation3 + $0x90] sm:$0xff] %vm3191_vm9, %v11911_v9  ;;  %5890 = vst.msk [vmem:[#allocation3 + $0x98] sm:$0xff] %vm3191_vm9, %v11911_v9 }
 0x166   : > { %5892 = vst.msk [vmem:[#allocation3 + $0xa8] sm:$0xff] %vm3191_vm9, %v11911_v9  ;;  %5893 = vst.msk [vmem:[#allocation3 + $0xb0] sm:$0xff] %vm3191_vm9, %v11911_v9  ;;  %v3414_v7 = vor.u32 %v3413_v41, %v3409_v54 }
 0x167   : > { %5895 = vst.msk [vmem:[#allocation3 + $0xc0] sm:$0xff] %vm3191_vm9, %v11911_v9  ;;  %5896 = vst.msk [vmem:[#allocation3 + $0xc8] sm:$0xff] %vm3191_vm9, %v11911_v9 }
 0x168   : > { %5898 = vst.msk [vmem:[#allocation3 + $0xd8] sm:$0xff] %vm3191_vm9, %v11911_v9  ;;  %5899 = vst.msk [vmem:[#allocation3 + $0xe0] sm:$0xff] %vm3191_vm9, %v11911_v9 }
 0x169   : > { %5901 = vst.msk [vmem:[#allocation3 + $0xf0] sm:$0xff] %vm3191_vm9, %v11911_v9  ;;  %5902 = vst.msk [vmem:[#allocation3 + $0xf8] sm:$0xff] %vm3191_vm9, %v11911_v9 }
 0x16a   : > { %5904 = vst.msk [vmem:[#allocation3 + $0x108] sm:$0xff] %vm3191_vm9, %v11911_v9  ;;  %5905 = vst.msk [vmem:[#allocation3 + $0x110] sm:$0xff] %vm3191_vm9, %v11911_v9 }
 0x16b   : > { %10238 = vmatmul.mubr.msk.bf16.gmra.mrb[24].mxu0 %vm875_vm4, %v12704_v40  ;;  %5907 = vst.msk [vmem:[#allocation3 + $0x120] sm:$0xff] %vm3191_vm9, %v11911_v9  ;;  %5908 = vst.msk [vmem:[#allocation3 + $0x128] sm:$0xff] %vm3191_vm9, %v11911_v9 }
 0x16c   : > { %10241 = vmatprep.mubr.msk.bf16.mxu0 %vm875_vm4, %v12722_v21  ;;  %5910 = vst.msk [vmem:[#allocation3 + $0x138] sm:$0xff] %vm3191_vm9, %v11911_v9  ;;  %5911 = vst.msk [vmem:[#allocation3 + $0x140] sm:$0xff] %vm3191_vm9, %v11911_v9 }
 0x16d   : > { %5913 = vst.msk [vmem:[#allocation3 + $0x150] sm:$0xff] %vm3191_vm9, %v11911_v9  ;;  %5914 = vst.msk [vmem:[#allocation3 + $0x158] sm:$0xff] %vm3191_vm9, %v11911_v9 }
 0x16e   : > { %5916 = vst.msk [vmem:[#allocation3 + $0x168] sm:$0xff] %vm3191_vm9, %v11911_v9  ;;  %5917 = vst.msk [vmem:[#allocation3 + $0x170] sm:$0xff] %vm3191_vm9, %v11911_v9 }
 0x16f   : > { %5919 = vst.msk [vmem:[#allocation3 + $0x180] sm:$0xff] %vm3191_vm9, %v11911_v9  ;;  %5920 = vst.msk [vmem:[#allocation3 + $0x188] sm:$0xff] %vm3191_vm9, %v11911_v9 }
 0x170   : > { %5922 = vst.msk [vmem:[#allocation3 + $0x198] sm:$0xff] %vm3191_vm9, %v11911_v9  ;;  %5923 = vst.msk [vmem:[#allocation3 + $0x1a0] sm:$0xff] %vm3191_vm9, %v11911_v9 }
 0x171   : > { %3201 = vst.msk [vmem:[#allocation2 + $0x40] sm:$0x3] %vm3194_vm10, %v11911_v9  ;;  %3195 = vst.msk [vmem:[#allocation2 + $0x10] sm:$0x3] %vm3194_vm10, %v11911_v9 }
 0x172   : > { %3198 = vst.msk [vmem:[#allocation2 + $0x28] sm:$0x3] %vm3194_vm10, %v11911_v9  ;;  %3204 = vst.msk [vmem:[#allocation2 + $0x58] sm:$0x3] %vm3194_vm10, %v11911_v9 }
 0x173   : > { %10242 = vmatmul.mubr.msk.bf16.gmra.mrb[28].mxu0 %vm875_vm4, %v9007_v4  ;;  %3207 = vst.msk [vmem:[#allocation2 + $0x70] sm:$0x3] %vm3194_vm10, %v11911_v9  ;;  %3210 = vst.msk [vmem:[#allocation2 + $0x88] sm:$0x3] %vm3194_vm10, %v11911_v9 }
 0x174   : > { %3213 = vst.msk [vmem:[#allocation2 + $0xa0] sm:$0x3] %vm3194_vm10, %v11911_v9  ;;  %3216 = vst.msk [vmem:[#allocation2 + $0xb8] sm:$0x3] %vm3194_vm10, %v11911_v9 }
 0x175   : > { %3219 = vst.msk [vmem:[#allocation2 + $0xd0] sm:$0x3] %vm3194_vm10, %v11911_v9  ;;  %3222 = vst.msk [vmem:[#allocation2 + $0xe8] sm:$0x3] %vm3194_vm10, %v11911_v9 }
 0x176   : > { %3225 = vst.msk [vmem:[#allocation2 + $0x100] sm:$0x3] %vm3194_vm10, %v11911_v9  ;;  %3228 = vst.msk [vmem:[#allocation2 + $0x118] sm:$0x3] %vm3194_vm10, %v11911_v9 }
 0x177   : > { %3231 = vst.msk [vmem:[#allocation2 + $0x130] sm:$0x3] %vm3194_vm10, %v11911_v9  ;;  %3234 = vst.msk [vmem:[#allocation2 + $0x148] sm:$0x3] %vm3194_vm10, %v11911_v9 }
 0x178   : > { %3237 = vst.msk [vmem:[#allocation2 + $0x160] sm:$0x3] %vm3194_vm10, %v11911_v9  ;;  %3240 = vst.msk [vmem:[#allocation2 + $0x178] sm:$0x3] %vm3194_vm10, %v11911_v9  ;;  %v3282_v26 = vld [vmem:[#allocation2 + $0x10] sm:$0x3] }
 0x179   : > { %3243 = vst.msk [vmem:[#allocation2 + $0x190] sm:$0x3] %vm3194_vm10, %v11911_v9  ;;  %3246 = vst.msk [vmem:[#allocation2 + $0x1a8] sm:$0x3] %vm3194_vm10, %v11911_v9  ;;  %v13174_v38 = vpack.c.bf16 %v3282_v26, %v3282_v26 }
 0x17a   : > { %5873 = vst.msk [vmem:[#allocation3 + $0x10] sm:$0x3] %vm3194_vm10, %v11911_v9  ;;  %5876 = vst.msk [vmem:[#allocation3 + $0x28] sm:$0x3] %vm3194_vm10, %v11911_v9 }
 0x17b   : > { %5879 = vst.msk [vmem:[#allocation3 + $0x40] sm:$0x3] %vm3194_vm10, %v11911_v9  ;;  %5882 = vst.msk [vmem:[#allocation3 + $0x58] sm:$0x3] %vm3194_vm10, %v11911_v9  ;;  %v3416_v40 = vshll.u32 %v13174_v38, 16 }
 0x17c   : > { %5885 = vst.msk [vmem:[#allocation3 + $0x70] sm:$0x3] %vm3194_vm10, %v11911_v9  ;;  %5888 = vst.msk [vmem:[#allocation3 + $0x88] sm:$0x3] %vm3194_vm10, %v11911_v9 }
 0x17d   : > { %5891 = vst.msk [vmem:[#allocation3 + $0xa0] sm:$0x3] %vm3194_vm10, %v11911_v9  ;;  %5894 = vst.msk [vmem:[#allocation3 + $0xb8] sm:$0x3] %vm3194_vm10, %v11911_v9  ;;  %v3418_v21 = vrot.slane %v3416_v40, 1 }
 0x17e   : > { %5897 = vst.msk [vmem:[#allocation3 + $0xd0] sm:$0x3] %vm3194_vm10, %v11911_v9  ;;  %5900 = vst.msk [vmem:[#allocation3 + $0xe8] sm:$0x3] %vm3194_vm10, %v11911_v9 }
 0x17f   : > { %5903 = vst.msk [vmem:[#allocation3 + $0x100] sm:$0x3] %vm3194_vm10, %v11911_v9  ;;  %5906 = vst.msk [vmem:[#allocation3 + $0x118] sm:$0x3] %vm3194_vm10, %v11911_v9  ;;  %v3419_v1 = vsel %vm3407_vm11, %v3414_v7, %v3418_v21 }
 0x180   : > { %5909 = vst.msk [vmem:[#allocation3 + $0x130] sm:$0x3] %vm3194_vm10, %v11911_v9  ;;  %5912 = vst.msk [vmem:[#allocation3 + $0x148] sm:$0x3] %vm3194_vm10, %v11911_v9  ;;  %10249 = vmatprep.mubr.msk.bf16.mxu1 %vm3191_vm9, %v3419_v1 }
 0x181   : > { %5915 = vst.msk [vmem:[#allocation3 + $0x160] sm:$0x3] %vm3194_vm10, %v11911_v9  ;;  %5918 = vst.msk [vmem:[#allocation3 + $0x178] sm:$0x3] %vm3194_vm10, %v11911_v9 }
 0x182   : > { %5921 = vst.msk [vmem:[#allocation3 + $0x190] sm:$0x3] %vm3194_vm10, %v11911_v9  ;;  %5924 = vst.msk [vmem:[#allocation3 + $0x1a8] sm:$0x3] %vm3194_vm10, %v11911_v9 }
 0x1c8   : > { %v10045_v11 = vpop.f32.mrb[0].mxu1 }
 0x1c9   : > { %v1864_v46 = vpop.f32.mrb[1].mxu1 }
 0x1ca   : > { %v10046_v30 = vpop.f32.mrb[2].mxu1 }
 0x1cb   : > { %v1867_v37 = vpop.f32.mrb[3].mxu1 }
 0x1d0   : > { %v10049_v20 = vpop.f32.mrb[4].mxu1 }
 0x1d1   : > { %v1880_v10 = vpop.f32.mrb[5].mxu1 }
 0x1d2   : > { %v10050_v34 = vpop.f32.mrb[6].mxu1 }
 0x1d3   : > { %v1883_v43 = vpop.f32.mrb[7].mxu1 }
 0x1d8   : > { %v13187_v5 = vpop.f32.mrb[8].mxu1 }
 0x1d9   : > { %v13189_v55 = vpop.f32.mrb[9].mxu1 }
 0x1da   : > { %v13191_v23 = vpop.f32.mrb[10].mxu1 }
 0x1db   : > { %v13193_v12 = vpop.f32.mrb[11].mxu1 }
 0x1e0   : > { %v13195_v29 = vpop.f32.mrb[12].mxu1 }
 0x1e1   : > { %v13197_v47 = vpop.f32.mrb[13].mxu1 }
 0x1e2   : > { %v13199_v48 = vpop.f32.mrb[14].mxu1 }
 0x1e3   : > { %v13201_v3 = vpop.f32.mrb[15].mxu1 }
 0x1e8   : > { %v13203_v36 = vpop.f32.mrb[16].mxu1 }
 0x1e9   : > { %v13205_v31 = vpop.f32.mrb[17].mxu1 }
 0x1ea   : > { %v13207_v25 = vpop.f32.mrb[18].mxu1 }
 0x1eb   : > { %v13209_v33 = vpop.f32.mrb[19].mxu1 }
 0x1f0   : > { %v13211_v2 = vpop.f32.mrb[20].mxu1 }
 0x1f1   : > { %v13213_v39 = vpop.f32.mrb[21].mxu1 }
 0x1f2   : > { %v13215_v28 = vpop.f32.mrb[22].mxu1 }
 0x1f3   : > { %v13217_v35 = vpop.f32.mrb[23].mxu1 }
 0x1f8   : > { %v13219_v8 = vpop.f32.mrb[24].mxu1 }
 0x1f9   : > { %v13221_v13 = vpop.f32.mrb[25].mxu1 }
 0x1fa   : > { %v13223_v51 = vpop.f32.mrb[26].mxu1 }
 0x1fb   : > { %v13225_v61 = vpop.f32.mrb[27].mxu1 }
 0x200   : > { %v13227_v42 = vpop.f32.mrb[28].mxu1 }
 0x201   : > { %v13229_v56 = vpop.f32.mrb[29].mxu1 }
 0x202   : > { %v13231_v32 = vpop.f32.mrb[30].mxu1 }
 0x203   : > { %v13233_v57 = vpop.f32.mrb[31].mxu1 }
 0x20e   : > { %v10215_v0 = vpop.f32.mrb[0].mxu0 }
 0x20f   : > { %v10929_v6 = vadd.f32 %v10215_v0, %v10045_v11  ;;  %v2962_v16 = vpop.f32.mrb[1].mxu0 }
 0x210   : > { %v10930_v22 = vadd.f32 %v2962_v16, %v1864_v46  ;;  %v10216_v18 = vpop.f32.mrb[2].mxu0 }
 0x211   : > { %v3129_v27 = vadd.f32 %v10929_v6, %v13238_v49  ;;  %v10931_v59 = vadd.f32 %v10216_v18, %v10046_v30  ;;  %v2965_v60 = vpop.f32.mrb[3].mxu0 }
 0x212   : > { %v3127_v45 = vadd.f32 %v10930_v22, %v13238_v49  ;;  %v10932_v63 = vadd.f32 %v2965_v60, %v1867_v37 }
 0x213   : > { %v3161_v44 = vmax.f32 %v3129_v27, 0.0  ;;  %v3130_v19 = vadd.f32 %v10931_v59, %v13238_v49 }
 0x214   : > { %v3159_v53 = vmax.f32 %v3127_v45, 0.0  ;;  %v3128_v14 = vadd.f32 %v10932_v63, %v13238_v49 }
 0x215   : > { %3250 = vst.msk [vmem:[#allocation2 + $0x31] sm:$0xff] %vm3191_vm9, %v3161_v44  ;;  %v3162_v15 = vmax.f32 %v3130_v19, 0.0 }
 0x216   : > { %3248 = vst.msk [vmem:[#allocation2 + $0x19] sm:$0xff] %vm3191_vm9, %v3159_v53  ;;  %v3160_v4 = vmax.f32 %v3128_v14, 0.0  ;;  %v10219_v17 = vpop.f32.mrb[4].mxu0 }
 0x217   : > { %3251 = vst.msk [vmem:[#allocation2 + $0x39] sm:$0xff] %vm3191_vm9, %v3162_v15  ;;  %v10933_v9 = vadd.f32 %v10219_v17, %v10049_v20  ;;  %v2978_v24 = vpop.f32.mrb[5].mxu0 }
 0x218   : > { %3249 = vst.msk [vmem:[#allocation2 + $0x21] sm:$0xff] %vm3191_vm9, %v3160_v4  ;;  %v10934_v62 = vadd.f32 %v2978_v24, %v1880_v10  ;;  %v10220_v26 = vpop.f32.mrb[6].mxu0 }
 0x219   : > { %v3133_v50 = vadd.f32 %v10933_v9, %v13238_v49  ;;  %v10935_v54 = vadd.f32 %v10220_v26, %v10050_v34  ;;  %v2981_v41 = vpop.f32.mrb[7].mxu0 }
 0x21a   : > { %v3131_v40 = vadd.f32 %v10934_v62, %v13238_v49  ;;  %v10936_v7 = vadd.f32 %v2981_v41, %v1883_v43 }
 0x21b   : > { %v3165_v21 = vmax.f32 %v3133_v50, 0.0  ;;  %v3134_v1 = vadd.f32 %v10935_v54, %v13238_v49 }
 0x21c   : > { %v3163_v11 = vmax.f32 %v3131_v40, 0.0  ;;  %v3132_v46 = vadd.f32 %v10936_v7, %v13238_v49  ;;  %v3286_v10 = vld [vmem:[#allocation2 + $0x30] sm:$0xff] }
 0x21d   : > { %3254 = vst.msk [vmem:[#allocation2 + $0x61] sm:$0xff] %vm3191_vm9, %v3165_v21  ;;  %v3166_v30 = vmax.f32 %v3134_v1, 0.0  ;;  %v3283_v16 = vld [vmem:[#allocation2 + $0x18] sm:$0xff]  ;;  %v11774_v1 = vld [vmem:[%s14883_s3 + $0x8] sm:$0xff]  }
 0x21e   : > { %3252 = vst.msk [vmem:[#allocation2 + $0x49] sm:$0xff] %vm3191_vm9, %v3163_v11  ;;  %v3164_v37 = vmax.f32 %v3132_v46, 0.0  ;;  %v10223_v20 = vpop.f32.mrb[8].mxu0  ;;  %v3287_v0 = vld [vmem:[#allocation2 + $0x38] sm:$0xff]  ;;  %v3288_v34 = vld [vmem:[#allocation2 + $0x40] sm:$0x3] }
 0x21f   : > { %3255 = vst.msk [vmem:[#allocation2 + $0x69] sm:$0xff] %vm3191_vm9, %v3166_v30  ;;  %v10937_v43 = vadd.f32 %v10223_v20, %v13187_v5  ;;  %v2994_v6 = vpop.f32.mrb[9].mxu0  ;;  %v3284_v22 = vld [vmem:[#allocation2 + $0x20] sm:$0xff]  ;;  %v3285_v18 = vld [vmem:[#allocation2 + $0x28] sm:$0x3]  ;;  %v13256_v27 = vpack.c.bf16 %v3287_v0, %v3286_v10  ;;  %v13264_v44 = vpack.c.bf16 %v3288_v34, %v3288_v34 }
 0x220   : > { %3253 = vst.msk [vmem:[#allocation2 + $0x51] sm:$0xff] %vm3191_vm9, %v3164_v37  ;;  %v10938_v59 = vadd.f32 %v2994_v6, %v13189_v55  ;;  %v10224_v60 = vpop.f32.mrb[10].mxu0  ;;  %v13260_v45 = vpack.c.bf16 %v3284_v22, %v3283_v16  ;;  %v13262_v63 = vpack.c.bf16 %v3285_v18, %v3285_v18 }
 0x221   : > { %v3137_v19 = vadd.f32 %v10937_v43, %v13238_v49  ;;  %v10939_v5 = vadd.f32 %v10224_v60, %v13191_v23  ;;  %v2997_v53 = vpop.f32.mrb[11].mxu0  ;;  %v3433_v14 = vshrl.u32 %v13256_v27, 16  ;;  %v3435_v15 = vshll.u32 %v13256_v27, 16 }
 0x222   : > { %v3135_v4 = vadd.f32 %v10938_v59, %v13238_v49  ;;  %v10940_v55 = vadd.f32 %v2997_v53, %v13193_v12  ;;  %v3421_v17 = vshrl.u32 %v13260_v45, 16  ;;  %v3423_v9 = vshll.u32 %v13260_v45, 16 }
 0x223   : > { %v3169_v24 = vmax.f32 %v3137_v19, 0.0  ;;  %v3138_v62 = vadd.f32 %v10939_v5, %v13238_v49  ;;  %v3428_v26 = vshll.u32 %v13262_v63, 16  ;;  %v3437_v50 = vrot.slane %v3435_v15, 1 }
 0x224   : > { %v3167_v23 = vmax.f32 %v3135_v4, 0.0  ;;  %v3136_v54 = vadd.f32 %v10940_v55, %v13238_v49  ;;  %v3425_v41 = vrot.slane %v3423_v9, 1  ;;  %v3440_v40 = vshll.u32 %v13264_v44, 16  ;;  %v3292_v21 = vld [vmem:[#allocation2 + $0x60] sm:$0xff] }
 0x225   : > { %3258 = vst.msk [vmem:[#allocation2 + $0x91] sm:$0xff] %vm3191_vm9, %v3169_v24  ;;  %v3170_v7 = vmax.f32 %v3138_v62, 0.0  ;;  %v3438_v12 = vor.u32 %v3437_v50, %v3433_v14  ;;  %v3430_v37 = vrot.slane %v3428_v26, 1  ;;  %v3289_v6 = vld [vmem:[#allocation2 + $0x48] sm:$0xff] }
 0x226   : > { %3256 = vst.msk [vmem:[#allocation2 + $0x79] sm:$0xff] %vm3191_vm9, %v3167_v23  ;;  %v3168_v11 = vmax.f32 %v3136_v54, 0.0  ;;  %v10227_v46 = vpop.f32.mrb[12].mxu0  ;;  %v3426_v30 = vor.u32 %v3425_v41, %v3421_v17  ;;  %v3293_v20 = vld [vmem:[#allocation2 + $0x68] sm:$0xff]  ;;  %v3294_v10 = vld [vmem:[#allocation2 + $0x70] sm:$0x3] }
 0x227   : > { %3259 = vst.msk [vmem:[#allocation2 + $0x99] sm:$0xff] %vm3191_vm9, %v3170_v7  ;;  %v10941_v0 = vadd.f32 %v10227_v46, %v13195_v29  ;;  %v3010_v34 = vpop.f32.mrb[13].mxu0  ;;  %v3442_v43 = vrot.slane %v3440_v40, 1  ;;  %v3290_v16 = vld [vmem:[#allocation2 + $0x50] sm:$0xff]  ;;  %v3291_v22 = vld [vmem:[#allocation2 + $0x58] sm:$0x3]  ;;  %v13285_v18 = vpack.c.bf16 %v3293_v20, %v3292_v21  ;;  %v13294_v53 = vpack.c.bf16 %v3294_v10, %v3294_v10 }
 0x228   : > { %3257 = vst.msk [vmem:[#allocation2 + $0x81] sm:$0xff] %vm3191_vm9, %v3168_v11  ;;  %v10942_v59 = vadd.f32 %v3010_v34, %v13197_v47  ;;  %v10228_v60 = vpop.f32.mrb[14].mxu0  ;;  %v13290_v19 = vsel %vm3407_vm11, %v3426_v30, %v3430_v37  ;;  %v13292_v5 = vpack.c.bf16 %v3290_v16, %v3289_v6  ;;  %v13303_v47 = vpack.c.bf16 %v3291_v22, %v3291_v22 }
 0x229   : > { %v3141_v29 = vadd.f32 %v10941_v0, %v13238_v49  ;;  %v10943_v14 = vadd.f32 %v10228_v60, %v13199_v48  ;;  %v3013_v15 = vpop.f32.mrb[15].mxu0  ;;  %10250 = vmatmul.mubr.msk.bf16.vlgmr.msra.gmra.mrb[32].mxu1 %vm3191_vm9, %v13290_v19  ;;  %v13301_v4 = vsel %vm3407_vm11, %v3438_v12, %v3442_v43  ;;  %v3459_v50 = vshll.u32 %v13285_v18, 16 }
 0x22a   : > { %v3139_v55 = vadd.f32 %v10942_v59, %v13238_v49  ;;  %v10944_v17 = vadd.f32 %v3013_v15, %v13201_v3  ;;  %10282 = vmatpush3.bf16.msra.mxu1 %v13184_v58  ;;  %10253 = vmatprep.mubr.msk.bf16.mxu1 %vm3191_vm9, %v13301_v4  ;;  %v3445_v48 = vshrl.u32 %v13292_v5, 16  ;;  %v3447_v9 = vshll.u32 %v13292_v5, 16  ;;  %v13318_v3 = vld [vmem:[%s14883_s3 + $0x20] sm:$0xff]  }
 0x22b   : > { %v3173_v24 = vmax.f32 %v3141_v29, 0.0  ;;  %v3142_v62 = vadd.f32 %v10943_v14, %v13238_v49  ;;  %v3452_v26 = vshll.u32 %v13303_v47, 16  ;;  %10283 = vmatprep.subr.bf16.mxu1 %v11774_v1  ;;  %v3464_v41 = vshll.u32 %v13294_v53, 16 }
 0x22c   : > { %v3171_v58 = vmax.f32 %v3139_v55, 0.0  ;;  %v3140_v23 = vadd.f32 %v10944_v17, %v13238_v49  ;;  %v3449_v54 = vrot.slane %v3447_v9, 1  ;;  %v3457_v12 = vshrl.u32 %v13285_v18, 16  ;;  %v3298_v11 = vld [vmem:[#allocation2 + $0x90] sm:$0xff] }
 0x22d   : > { %3262 = vst.msk [vmem:[#allocation2 + $0xc1] sm:$0xff] %vm3191_vm9, %v3173_v24  ;;  %v3174_v40 = vmax.f32 %v3142_v62, 0.0  ;;  %v3454_v7 = vrot.slane %v3452_v26, 1  ;;  %v3461_v21 = vrot.slane %v3459_v50, 1  ;;  %v3466_v20 = vrot.slane %v3464_v41, 1  ;;  %v3295_v16 = vld [vmem:[#allocation2 + $0x78] sm:$0xff] }
 0x22e   : > { %3260 = vst.msk [vmem:[#allocation2 + $0xa9] sm:$0xff] %vm3191_vm9, %v3171_v58  ;;  %v3172_v46 = vmax.f32 %v3140_v23, 0.0  ;;  %v10231_v30 = vpop.f32.mrb[16].mxu0  ;;  %v3450_v37 = vor.u32 %v3449_v54, %v3445_v48  ;;  %v3299_v10 = vld [vmem:[#allocation2 + $0x98] sm:$0xff]  ;;  %v3300_v0 = vld [vmem:[#allocation2 + $0xa0] sm:$0x3]  ;;  %10284 = vmatpush3.bf16.msra.mxu1 %v11774_v1 }
 0x22f   : > { %3263 = vst.msk [vmem:[#allocation2 + $0xc9] sm:$0xff] %vm3191_vm9, %v3174_v40  ;;  %v10945_v34 = vadd.f32 %v10231_v30, %v13203_v36  ;;  %v3026_v43 = vpop.f32.mrb[17].mxu0  ;;  %v3462_v6 = vor.u32 %v3461_v21, %v3457_v12  ;;  %v3296_v22 = vld [vmem:[#allocation2 + $0x80] sm:$0xff]  ;;  %v3297_v59 = vld [vmem:[#allocation2 + $0x88] sm:$0x3]  ;;  %v13327_v60 = vpack.c.bf16 %v3299_v10, %v3298_v11  ;;  %v13329_v29 = vpack.c.bf16 %v3300_v0, %v3300_v0 }
 0x230   : > { %10317 = vmatprep.subr.bf16.mxu1 %v13318_v3  ;;  %3261 = vst.msk [vmem:[#allocation2 + $0xb1] sm:$0xff] %vm3191_vm9, %v3172_v46  ;;  %v10946_v14 = vadd.f32 %v3026_v43, %v13205_v31  ;;  %v10232_v1 = vpop.f32.mrb[18].mxu0  ;;  %v13335_v15 = vsel %vm3407_vm11, %v3450_v37, %v3454_v7  ;;  %v13337_v36 = vpack.c.bf16 %v3296_v22, %v3295_v16 }
 0x231   : > { %v13339_v55 = vpack.c.bf16 %v3297_v59, %v3297_v59  ;;  %v3145_v17 = vadd.f32 %v10945_v34, %v13238_v49  ;;  %v10947_v48 = vadd.f32 %v10232_v1, %v13207_v25  ;;  %v3029_v9 = vpop.f32.mrb[19].mxu0  ;;  %10254 = vmatmul.mubr.msk.bf16.gmra.mrb[36].mxu1 %vm3191_vm9, %v13335_v15  ;;  %v13346_v24 = vsel %vm3407_vm11, %v3462_v6, %v3466_v20 }
 0x232   : > { %v3143_v31 = vadd.f32 %v10946_v14, %v13238_v49  ;;  %v10948_v62 = vadd.f32 %v3029_v9, %v13209_v33  ;;  %10257 = vmatprep.mubr.msk.bf16.mxu1 %vm3191_vm9, %v13346_v24  ;;  %v3469_v26 = vshrl.u32 %v13337_v36, 16  ;;  %v3471_v50 = vshll.u32 %v13337_v36, 16 }
 0x233   : > { %v3177_v58 = vmax.f32 %v3145_v17, 0.0  ;;  %v3146_v25 = vadd.f32 %v10947_v48, %v13238_v49  ;;  %v3476_v23 = vshll.u32 %v13339_v55, 16  ;;  %v3483_v54 = vshll.u32 %v13327_v60, 16 }
 0x234   : > { %v3175_v41 = vmax.f32 %v3143_v31, 0.0  ;;  %v3144_v40 = vadd.f32 %v10948_v62, %v13238_v49  ;;  %v3473_v7 = vrot.slane %v3471_v50, 1  ;;  %v3488_v33 = vshll.u32 %v13329_v29, 16  ;;  %v3304_v30 = vld [vmem:[#allocation2 + $0xc0] sm:$0xff] }
 0x235   : > { %3266 = vst.msk [vmem:[#allocation2 + $0xf1] sm:$0xff] %vm3191_vm9, %v3177_v58  ;;  %v3178_v12 = vmax.f32 %v3146_v25, 0.0  ;;  %v3478_v21 = vrot.slane %v3476_v23, 1  ;;  %v3481_v11 = vshrl.u32 %v13327_v60, 16  ;;  %v3485_v46 = vrot.slane %v3483_v54, 1  ;;  %v3301_v59 = vld [vmem:[#allocation2 + $0xa8] sm:$0xff] }
 0x236   : > { %3264 = vst.msk [vmem:[#allocation2 + $0xd9] sm:$0xff] %vm3191_vm9, %v3175_v41  ;;  %v3176_v37 = vmax.f32 %v3144_v40, 0.0  ;;  %v10235_v20 = vpop.f32.mrb[20].mxu0  ;;  %v3474_v10 = vor.u32 %v3473_v7, %v3469_v26  ;;  %v3490_v0 = vrot.slane %v3488_v33, 1  ;;  %v3305_v34 = vld [vmem:[#allocation2 + $0xc8] sm:$0xff] }
 0x237   : > { %v3306_v43 = vld [vmem:[#allocation2 + $0xd0] sm:$0x3]  ;;  %3267 = vst.msk [vmem:[#allocation2 + $0xf9] sm:$0xff] %vm3191_vm9, %v3178_v12  ;;  %v10949_v6 = vadd.f32 %v10235_v20, %v13211_v2  ;;  %v3042_v16 = vpop.f32.mrb[21].mxu0  ;;  %v3486_v22 = vor.u32 %v3485_v46, %v3481_v11  ;;  %v3303_v1 = vld [vmem:[#allocation2 + $0xb8] sm:$0x3]  ;;  %v13364_v17 = vpack.c.bf16 %v3305_v34, %v3304_v30 }
 0x238   : > { %v3302_v14 = vld [vmem:[#allocation2 + $0xb0] sm:$0xff]  ;;  %v13366_v48 = vpack.c.bf16 %v3306_v43, %v3306_v43  ;;  %3265 = vst.msk [vmem:[#allocation2 + $0xe1] sm:$0xff] %vm3191_vm9, %v3176_v37  ;;  %v10950_v9 = vadd.f32 %v3042_v16, %v13213_v39  ;;  %v10236_v31 = vpop.f32.mrb[22].mxu0  ;;  %v13371_v62 = vsel %vm3407_vm11, %v3474_v10, %v3478_v21  ;;  %v13375_v2 = vpack.c.bf16 %v3303_v1, %v3303_v1 }
 0x239   : > { %v13373_v26 = vpack.c.bf16 %v3302_v14, %v3301_v59  ;;  %v3149_v50 = vadd.f32 %v10949_v6, %v13238_v49  ;;  %v10951_v58 = vadd.f32 %v10236_v31, %v13215_v28  ;;  %v3045_v25 = vpop.f32.mrb[23].mxu0  ;;  %10258 = vmatmul.mubr.msk.bf16.gmra.mrb[40].mxu1 %vm3191_vm9, %v13371_v62  ;;  %v13382_v23 = vsel %vm3407_vm11, %v3486_v22, %v3490_v0 }
 0x23a   : > { %v3147_v39 = vadd.f32 %v10950_v9, %v13238_v49  ;;  %v10952_v54 = vadd.f32 %v3045_v25, %v13217_v35  ;;  %10261 = vmatprep.mubr.msk.bf16.mxu1 %vm3191_vm9, %v13382_v23  ;;  %v3500_v33 = vshll.u32 %v13375_v2, 16  ;;  %v3507_v12 = vshll.u32 %v13364_v17, 16 }
 0x23b   : > { %v3493_v41 = vshrl.u32 %v13373_v26, 16  ;;  %v3495_v40 = vshll.u32 %v13373_v26, 16  ;;  %v3181_v7 = vmax.f32 %v3149_v50, 0.0  ;;  %v3150_v28 = vadd.f32 %v10951_v58, %v13238_v49 }
 0x23c   : > { %v3179_v21 = vmax.f32 %v3147_v39, 0.0  ;;  %v3148_v11 = vadd.f32 %v10952_v54, %v13238_v49  ;;  %v3512_v35 = vshll.u32 %v13366_v48, 16  ;;  %v3502_v37 = vrot.slane %v3500_v33, 1  ;;  %v3310_v0 = vld [vmem:[#allocation2 + $0xf0] sm:$0xff] }
 0x23d   : > { %v3497_v46 = vrot.slane %v3495_v40, 1  ;;  %3270 = vst.msk [vmem:[#allocation2 + $0x121] sm:$0xff] %vm3191_vm9, %v3181_v7  ;;  %v3182_v30 = vmax.f32 %v3150_v28, 0.0  ;;  %v3505_v20 = vshrl.u32 %v13364_v17, 16  ;;  %v3509_v10 = vrot.slane %v3507_v12, 1  ;;  %v3307_v31 = vld [vmem:[#allocation2 + $0xd8] sm:$0xff] }
 0x23e   : > { %3268 = vst.msk [vmem:[#allocation2 + $0x109] sm:$0xff] %vm3191_vm9, %v3179_v21  ;;  %v3180_v34 = vmax.f32 %v3148_v11, 0.0  ;;  %v10239_v43 = vpop.f32.mrb[24].mxu0  ;;  %v3514_v16 = vrot.slane %v3512_v35, 1  ;;  %v3311_v22 = vld [vmem:[#allocation2 + $0xf8] sm:$0xff] }
 0x23f   : > { %v3498_v6 = vor.u32 %v3497_v46, %v3493_v41  ;;  %v3312_v59 = vld [vmem:[#allocation2 + $0x100] sm:$0x3]  ;;  %3271 = vst.msk [vmem:[#allocation2 + $0x129] sm:$0xff] %vm3191_vm9, %v3182_v30  ;;  %v10953_v14 = vadd.f32 %v10239_v43, %v13219_v8  ;;  %v3058_v1 = vpop.f32.mrb[25].mxu0  ;;  %v3510_v9 = vor.u32 %v3509_v10, %v3505_v20  ;;  %v3309_v58 = vld [vmem:[#allocation2 + $0xe8] sm:$0x3]  ;;  %v13400_v25 = vpack.c.bf16 %v3311_v22, %v3310_v0 }
 0x240   : > { %v3308_v50 = vld [vmem:[#allocation2 + $0xe0] sm:$0xff]  ;;  %v13402_v39 = vpack.c.bf16 %v3312_v59, %v3312_v59  ;;  %3269 = vst.msk [vmem:[#allocation2 + $0x111] sm:$0xff] %vm3191_vm9, %v3180_v34  ;;  %v10954_v54 = vadd.f32 %v3058_v1, %v13221_v13  ;;  %v10240_v41 = vpop.f32.mrb[26].mxu0  ;;  %v13411_v8 = vpack.c.bf16 %v3309_v58, %v3309_v58 }
 0x241   : > { %v13407_v40 = vsel %vm3407_vm11, %v3498_v6, %v3502_v37  ;;  %v13409_v7 = vpack.c.bf16 %v3308_v50, %v3307_v31  ;;  %v3153_v28 = vadd.f32 %v10953_v14, %v13238_v49  ;;  %v10955_v33 = vadd.f32 %v10240_v41, %v13223_v51  ;;  %v3061_v12 = vpop.f32.mrb[27].mxu0 }
 0x242   : > { %10262 = vmatmul.mubr.msk.bf16.gmra.mrb[44].mxu1 %vm3191_vm9, %v13407_v40  ;;  %v13418_v21 = vsel %vm3407_vm11, %v3510_v9, %v3514_v16  ;;  %v3151_v13 = vadd.f32 %v10954_v54, %v13238_v49  ;;  %v10956_v11 = vadd.f32 %v3061_v12, %v13225_v61  ;;  %v3524_v37 = vshll.u32 %v13411_v8, 16 }
 0x243   : > { %10265 = vmatprep.mubr.msk.bf16.mxu1 %vm3191_vm9, %v13418_v21  ;;  %v3517_v46 = vshrl.u32 %v13409_v7, 16  ;;  %v3519_v35 = vshll.u32 %v13409_v7, 16  ;;  %v3185_v30 = vmax.f32 %v3153_v28, 0.0  ;;  %v3154_v51 = vadd.f32 %v10955_v33, %v13238_v49 }
 0x244   : > { %v3531_v20 = vshll.u32 %v13400_v25, 16  ;;  %v3183_v10 = vmax.f32 %v3151_v13, 0.0  ;;  %v3152_v0 = vadd.f32 %v10956_v11, %v13238_v49  ;;  %v3536_v61 = vshll.u32 %v13402_v39, 16  ;;  %v3316_v59 = vld [vmem:[#allocation2 + $0x120] sm:$0xff] }
 0x245   : > { %v3521_v34 = vrot.slane %v3519_v35, 1  ;;  %3274 = vst.msk [vmem:[#allocation2 + $0x151] sm:$0xff] %vm3191_vm9, %v3185_v30  ;;  %v3186_v43 = vmax.f32 %v3154_v51, 0.0  ;;  %v3526_v6 = vrot.slane %v3524_v37, 1  ;;  %v3529_v16 = vshrl.u32 %v13400_v25, 16  ;;  %v3313_v33 = vld [vmem:[#allocation2 + $0x108] sm:$0xff] }
 0x246   : > { %v3533_v22 = vrot.slane %v3531_v20, 1  ;;  %3272 = vst.msk [vmem:[#allocation2 + $0x139] sm:$0xff] %vm3191_vm9, %v3183_v10  ;;  %v3184_v14 = vmax.f32 %v3152_v0, 0.0  ;;  %v10243_v1 = vpop.f32.mrb[28].mxu0  ;;  %v3538_v31 = vrot.slane %v3536_v61, 1  ;;  %v3317_v50 = vld [vmem:[#allocation2 + $0x128] sm:$0xff] }
 0x247   : > { %v3522_v9 = vor.u32 %v3521_v34, %v3517_v46  ;;  %v3318_v58 = vld [vmem:[#allocation2 + $0x130] sm:$0x3]  ;;  %3275 = vst.msk [vmem:[#allocation2 + $0x159] sm:$0xff] %vm3191_vm9, %v3186_v43  ;;  %v10957_v54 = vadd.f32 %v10243_v1, %v13227_v42  ;;  %v3074_v41 = vpop.f32.mrb[29].mxu0  ;;  %v3315_v13 = vld [vmem:[#allocation2 + $0x118] sm:$0x3]  ;;  %v13436_v11 = vpack.c.bf16 %v3317_v50, %v3316_v59 }
 0x248   : > { %v3534_v28 = vor.u32 %v3533_v22, %v3529_v16  ;;  %v3314_v12 = vld [vmem:[#allocation2 + $0x110] sm:$0xff]  ;;  %v13438_v35 = vpack.c.bf16 %v3318_v58, %v3318_v58  ;;  %3273 = vst.msk [vmem:[#allocation2 + $0x141] sm:$0xff] %vm3191_vm9, %v3184_v14  ;;  %v10958_v46 = vadd.f32 %v3074_v41, %v13229_v56  ;;  %v10244_v30 = vpop.f32.mrb[30].mxu0  ;;  %v13447_v42 = vpack.c.bf16 %v3315_v13, %v3315_v13 }
 0x249   : > { %v13443_v51 = vsel %vm3407_vm11, %v3522_v9, %v3526_v6  ;;  %v13445_v37 = vpack.c.bf16 %v3314_v12, %v3313_v33  ;;  %v3157_v20 = vadd.f32 %v10957_v54, %v13238_v49  ;;  %v10959_v10 = vadd.f32 %v10244_v30, %v13231_v32  ;;  %v3077_v0 = vpop.f32.mrb[31].mxu0 }
 0x24a   : > { %10266 = vmatmul.mubr.msk.bf16.gmra.mrb[48].mxu1 %vm3191_vm9, %v13443_v51  ;;  %v13454_v34 = vsel %vm3407_vm11, %v3534_v28, %v3538_v31  ;;  %v3155_v56 = vadd.f32 %v10958_v46, %v13238_v49  ;;  %v10960_v61 = vadd.f32 %v3077_v0, %v13233_v57  ;;  %v3548_v22 = vshll.u32 %v13447_v42, 16 }
 0x24b   : > { %10269 = vmatprep.mubr.msk.bf16.mxu1 %vm3191_vm9, %v13454_v34  ;;  %v3541_v43 = vshrl.u32 %v13445_v37, 16  ;;  %v3543_v6 = vshll.u32 %v13445_v37, 16  ;;  %v3189_v16 = vmax.f32 %v3157_v20, 0.0  ;;  %v3158_v32 = vadd.f32 %v10959_v10, %v13238_v49 }
 0x24c   : > { %v3555_v59 = vshll.u32 %v13436_v11, 16  ;;  %v3187_v14 = vmax.f32 %v3155_v56, 0.0  ;;  %v3156_v1 = vadd.f32 %v10960_v61, %v13238_v49  ;;  %v3560_v57 = vshll.u32 %v13438_v35, 16  ;;  %v3322_v33 = vld [vmem:[#allocation2 + $0x150] sm:$0xff] }
 0x24d   : > { %v3545_v9 = vrot.slane %v3543_v6, 1  ;;  %3278 = vst.msk [vmem:[#allocation2 + $0x181] sm:$0xff] %vm3191_vm9, %v3189_v16  ;;  %v3190_v31 = vmax.f32 %v3158_v32, 0.0  ;;  %v3553_v50 = vshrl.u32 %v13436_v11, 16  ;;  %v3550_v28 = vrot.slane %v3548_v22, 1  ;;  %v3319_v30 = vld [vmem:[#allocation2 + $0x138] sm:$0xff] }
 0x24e   : > { %v3557_v58 = vrot.slane %v3555_v59, 1  ;;  %3276 = vst.msk [vmem:[#allocation2 + $0x169] sm:$0xff] %vm3191_vm9, %v3187_v14  ;;  %v3188_v54 = vmax.f32 %v3156_v1, 0.0  ;;  %v3323_v12 = vld [vmem:[#allocation2 + $0x158] sm:$0xff]  ;;  %v3324_v13 = vld [vmem:[#allocation2 + $0x160] sm:$0x3] }
 0x24f   : > { %v3546_v41 = vor.u32 %v3545_v9, %v3541_v43  ;;  %3279 = vst.msk [vmem:[#allocation2 + $0x189] sm:$0xff] %vm3191_vm9, %v3190_v31  ;;  %v3562_v46 = vrot.slane %v3560_v57, 1  ;;  %v3320_v20 = vld [vmem:[#allocation2 + $0x140] sm:$0xff]  ;;  %v3321_v10 = vld [vmem:[#allocation2 + $0x148] sm:$0x3]  ;;  %v13471_v0 = vpack.c.bf16 %v3323_v12, %v3322_v33  ;;  %v13473_v56 = vpack.c.bf16 %v3324_v13, %v3324_v13 }
 0x250   : > { %v3558_v49 = vor.u32 %v3557_v58, %v3553_v50  ;;  %3277 = vst.msk [vmem:[#allocation2 + $0x171] sm:$0xff] %vm3191_vm9, %v3188_v54  ;;  %v13479_v43 = vpack.c.bf16 %v3320_v20, %v3319_v30  ;;  %v13481_v6 = vpack.c.bf16 %v3321_v10, %v3321_v10 }
 0x251   : > { %v13477_v61 = vsel %vm3407_vm11, %v3546_v41, %v3550_v28  ;;  %v3579_v32 = vshll.u32 %v13471_v0, 16  ;;  %v3577_v14 = vshrl.u32 %v13471_v0, 16  ;;  %v3584_v9 = vshll.u32 %v13473_v56, 16 }
 0x252   : > { %10270 = vmatmul.mubr.msk.bf16.gmra.mrb[52].mxu1 %vm3191_vm9, %v13477_v61  ;;  %v13486_v16 = vsel %vm3407_vm11, %v3558_v49, %v3562_v46  ;;  %v3567_v22 = vshll.u32 %v13479_v43, 16  ;;  %v3572_v59 = vshll.u32 %v13481_v6, 16  ;;  %v3565_v57 = vshrl.u32 %v13479_v43, 16 }
 0x253   : > { %10273 = vmatprep.mubr.msk.bf16.mxu1 %vm3191_vm9, %v13486_v16  ;;  %v3581_v1 = vrot.slane %v3579_v32, 1  ;;  %v3586_v41 = vrot.slane %v3584_v9, 1  ;;  %v11776_v9 = vld [vmem:[%s14883_s3 + $0x28] sm:$0xff]  }
 0x254   : > { %v3569_v31 = vrot.slane %v3567_v22, 1  ;;  %v3574_v54 = vrot.slane %v3572_v59, 1 }
 0x255   : > { %v3582_v50 = vor.u32 %v3581_v1, %v3577_v14  ;;  %v3325_v28 = vld [vmem:[#allocation2 + $0x168] sm:$0xff] }
 0x256   : > { %v3570_v58 = vor.u32 %v3569_v31, %v3565_v57  ;;  %v11777_v57 = vld [vmem:[%s14883_s3 + $0x30] sm:$0xff]   ;;  %v4060_v31 = vrot.slane %v13174_v38, 1 }
 0x257   : > { %v3326_v33 = vld [vmem:[#allocation2 + $0x170] sm:$0xff]  ;;  %v3327_v12 = vld [vmem:[#allocation2 + $0x178] sm:$0x3]  ;;  %v13506_v30 = vsel %vm3407_vm11, %v3582_v50, %v3586_v41  ;;  %v4065_v41 = vrot.slane %v13256_v27, 1 }
 0x258   : > { %v13497_v13 = vsel %vm3407_vm11, %v3570_v58, %v3574_v54  ;;  %v13499_v49 = vpack.c.bf16 %v3326_v33, %v3325_v28  ;;  %v13501_v46 = vpack.c.bf16 %v3327_v12, %v3327_v12  ;;  %v4062_v58 = vrot.slane %v13260_v45, 1 }
 0x259   : > { %v4063_v54 = vrot.slane %v13262_v63, 1  ;;  %v4066_v28 = vrot.slane %v13264_v44, 1  ;;  %v11779_v63 = vld [vmem:[%s14883_s3 + $0x40] sm:$0xff]   ;;  %v4068_v44 = vrot.slane %v13292_v5, 1  ;;  %v4069_v12 = vrot.slane %v13303_v47, 1 }
 0x25a   : > { %10274 = vmatmul.mubr.msk.bf16.gmra.mrb[56].mxu1 %vm3191_vm9, %v13497_v13  ;;  %v3591_v20 = vshll.u32 %v13499_v49, 16  ;;  %v3596_v10 = vshll.u32 %v13501_v46, 16  ;;  %v3589_v32 = vshrl.u32 %v13499_v49, 16  ;;  %v4074_v47 = vrot.slane %v13337_v36, 1 }
 0x25b   : > { %10277 = vmatprep.mubr.msk.bf16.mxu1 %vm3191_vm9, %v13506_v30  ;;  %v13569_v38 = vsel %vm4058_vm12, %v4062_v58, %v4063_v54  ;;  %v13574_v33 = vsel %vm4058_vm12, %v4065_v41, %v4066_v28  ;;  %v4086_v54 = vrot.slane %v13409_v7, 1  ;;  %v4089_v41 = vrot.slane %v13400_v25, 1 }
 0x25c   : > { %v3593_v22 = vrot.slane %v3591_v20, 1  ;;  %v3598_v14 = vrot.slane %v3596_v10, 1  ;;  %v4071_v20 = vrot.slane %v13285_v18, 1  ;;  %v4072_v10 = vrot.slane %v13294_v53, 1 }
 0x25d   : > { %v4077_v53 = vrot.slane %v13327_v60, 1 }
 0x25e   : > { %v3594_v59 = vor.u32 %v3593_v22, %v3589_v32  ;;  %v13586_v32 = vsel %vm4058_vm12, %v4068_v44, %v4069_v12  ;;  %v13591_v22 = vsel %vm4058_vm12, %v4071_v20, %v4072_v10  ;;  %v4092_v44 = vrot.slane %v13445_v37, 1 }
 0x25f   : > { %v4095_v12 = vrot.slane %v13436_v11, 1 }
 0x260   : > { %v13514_v1 = vsel %vm3407_vm11, %v3594_v59, %v3598_v14  ;;  %v4075_v59 = vrot.slane %v13339_v55, 1  ;;  %v4078_v14 = vrot.slane %v13329_v29, 1  ;;  %v4081_v55 = vrot.slane %v13375_v2, 1 }
 0x261   : > { %v4084_v29 = vrot.slane %v13366_v48, 1  ;;  %v4087_v2 = vrot.slane %v13411_v8, 1  ;;  %v4090_v48 = vrot.slane %v13402_v39, 1  ;;  %v4093_v8 = vrot.slane %v13447_v42, 1 }
 0x262   : > { %10278 = vmatmul.mubr.msk.bf16.gmra.mrb[60].mxu1 %vm3191_vm9, %v13514_v1  ;;  %v4096_v39 = vrot.slane %v13438_v35, 1  ;;  %v4099_v42 = vrot.slane %v13481_v6, 1  ;;  %v4102_v35 = vrot.slane %v13473_v56, 1  ;;  %v4105_v6 = vrot.slane %v13501_v46, 1  ;;  %v11780_v56 = vld [vmem:[%s14883_s3 + $0x48] sm:$0xff]   ;;  %v11781_v46 = vld [vmem:[%s14883_s3 + $0x50] sm:$0xff]  }
 0x263   : > { %10285 = vmatprep.mubr.msk.bf16.mxu1 %vm3191_vm9, %v13172_v52  ;;  %v13628_v28 = vsel %vm4058_vm12, %v4086_v54, %v4087_v2  ;;  %v13642_v20 = vsel %vm4058_vm12, %v4092_v44, %v4093_v8  ;;  %v11783_v54 = vld [vmem:[%s14883_s3 + $0x60] sm:$0xff]  }
 0x264   : > { %v13647_v10 = vsel %vm4058_vm12, %v4095_v12, %v4096_v39 }
 0x26a   : > { %10286 = vmatmul.mubr.msk.bf16.vlgmr.msra.gmra.mrb[32].mxu1 %vm3191_vm9, %v13260_v45 }
 0x26b   : > { %10318 = vmatpush3.bf16.msra.mxu1 %v13318_v3  ;;  %10289 = vmatprep.mubr.msk.bf16.mxu1 %vm3191_vm9, %v13256_v27  ;;  %v4059_v3 = vrot.slane %v13172_v52, 1  ;;  %v11778_v52 = vld [vmem:[%s14883_s3 + $0x38] sm:$0xff]  }
 0x26c   : > { %10319 = vmatprep.subr.bf16.mxu1 %v11776_v9 }
 0x26d   : > { %v4061_v50 = vsel %vm4058_vm12, %v4059_v3, %v4060_v31  ;;  %v4080_v3 = vrot.slane %v13373_v26, 1  ;;  %v4083_v31 = vrot.slane %v13364_v17, 1 }
 0x26f   : > { %10320 = vmatpush3.bf16.msra.mxu1 %v11776_v9  ;;  %v13600_v9 = vsel %vm4058_vm12, %v4074_v47, %v4075_v59  ;;  %v13619_v58 = vsel %vm4058_vm12, %v4083_v31, %v4084_v29  ;;  %v4098_v47 = vrot.slane %v13479_v43, 1  ;;  %v4101_v59 = vrot.slane %v13471_v0, 1  ;;  %v11782_v29 = vld [vmem:[%s14883_s3 + $0x58] sm:$0xff]  }
 0x270   : > { %10353 = vmatprep.subr.bf16.mxu1 %v11777_v57 }
 0x272   : > { %10290 = vmatmul.mubr.msk.bf16.gmra.mrb[36].mxu1 %vm3191_vm9, %v13292_v5 }
 0x273   : > { %10293 = vmatprep.mubr.msk.bf16.mxu1 %vm3191_vm9, %v13285_v18 }
 0x27a   : > { %10294 = vmatmul.mubr.msk.bf16.gmra.mrb[40].mxu1 %vm3191_vm9, %v13337_v36 }
 0x27b   : > { %10297 = vmatprep.mubr.msk.bf16.mxu1 %vm3191_vm9, %v13327_v60 }
 0x282   : > { %10298 = vmatmul.mubr.msk.bf16.gmra.mrb[44].mxu1 %vm3191_vm9, %v13373_v26 }
 0x283   : > { %10301 = vmatprep.mubr.msk.bf16.mxu1 %vm3191_vm9, %v13364_v17 }
 0x28a   : > { %10302 = vmatmul.mubr.msk.bf16.gmra.mrb[48].mxu1 %vm3191_vm9, %v13409_v7 }
 0x28b   : > { %10305 = vmatprep.mubr.msk.bf16.mxu1 %vm3191_vm9, %v13400_v25 }
 0x292   : > { %10306 = vmatmul.mubr.msk.bf16.gmra.mrb[52].mxu1 %vm3191_vm9, %v13445_v37 }
 0x293   : > { %10309 = vmatprep.mubr.msk.bf16.mxu1 %vm3191_vm9, %v13436_v11 }
 0x29a   : > { %10310 = vmatmul.mubr.msk.bf16.gmra.mrb[56].mxu1 %vm3191_vm9, %v13479_v43 }
 0x29b   : > { %10313 = vmatprep.mubr.msk.bf16.mxu1 %vm3191_vm9, %v13471_v0 }
 0x2a2   : > { %10314 = vmatmul.mubr.msk.bf16.gmra.mrb[60].mxu1 %vm3191_vm9, %v13499_v49 }
 0x2a3   : > { %10321 = vmatprep.mubr.msk.bf16.mxu1 %vm3191_vm9, %v4061_v50  ;;  %v13614_v50 = vsel %vm4058_vm12, %v4080_v3, %v4081_v55  ;;  %v4104_v3 = vrot.slane %v13499_v49, 1 }
 0x2a5   : > { %v13668_v55 = vsel %vm4058_vm12, %v4104_v3, %v4105_v6  ;;  %v11786_v6 = vld [vmem:[%s14883_s3 + $0x78] sm:$0xff]  }
 0x2aa   : > { %10322 = vmatmul.mubr.msk.bf16.vlgmr.msra.gmra.mrb[32].mxu1 %vm3191_vm9, %v13569_v38 }
 0x2ab   : > { %10354 = vmatpush3.bf16.msra.mxu1 %v11777_v57  ;;  %10325 = vmatprep.mubr.msk.bf16.mxu1 %vm3191_vm9, %v13574_v33  ;;  %v13605_v57 = vsel %vm4058_vm12, %v4077_v53, %v4078_v14  ;;  %v13656_v53 = vsel %vm4058_vm12, %v4098_v47, %v4099_v42  ;;  %v13661_v14 = vsel %vm4058_vm12, %v4101_v59, %v4102_v35  ;;  %v11784_v42 = vld [vmem:[%s14883_s3 + $0x68] sm:$0xff]   ;;  %v11785_v59 = vld [vmem:[%s14883_s3 + $0x70] sm:$0xff]  }
 0x2ac   : > { %10355 = vmatprep.subr.bf16.mxu1 %v11778_v52 }
 0x2af   : > { %10356 = vmatpush3.bf16.msra.mxu1 %v11778_v52  ;;  %v13633_v52 = vsel %vm4058_vm12, %v4089_v41, %v4090_v48 }
 0x2b0   : > { %10389 = vmatprep.subr.bf16.mxu1 %v11779_v63 }
 0x2b2   : > { %10326 = vmatmul.mubr.msk.bf16.gmra.mrb[36].mxu1 %vm3191_vm9, %v13586_v32 }
 0x2b3   : > { %10329 = vmatprep.mubr.msk.bf16.mxu1 %vm3191_vm9, %v13591_v22 }
 0x2ba   : > { %10330 = vmatmul.mubr.msk.bf16.gmra.mrb[40].mxu1 %vm3191_vm9, %v13600_v9 }
 0x2bb   : > { %10333 = vmatprep.mubr.msk.bf16.mxu1 %vm3191_vm9, %v13605_v57 }
 0x2c2   : > { %10334 = vmatmul.mubr.msk.bf16.gmra.mrb[44].mxu1 %vm3191_vm9, %v13614_v50 }
 0x2c3   : > { %10337 = vmatprep.mubr.msk.bf16.mxu1 %vm3191_vm9, %v13619_v58 }
 0x2ca   : > { %10338 = vmatmul.mubr.msk.bf16.gmra.mrb[48].mxu1 %vm3191_vm9, %v13628_v28 }
 0x2cb   : > { %10341 = vmatprep.mubr.msk.bf16.mxu1 %vm3191_vm9, %v13633_v52 }
 0x2d2   : > { %10342 = vmatmul.mubr.msk.bf16.gmra.mrb[52].mxu1 %vm3191_vm9, %v13642_v20 }
 0x2d3   : > { %10345 = vmatprep.mubr.msk.bf16.mxu1 %vm3191_vm9, %v13647_v10 }
 0x2da   : > { %10346 = vmatmul.mubr.msk.bf16.gmra.mrb[56].mxu1 %vm3191_vm9, %v13656_v53 }
 0x2db   : > { %10349 = vmatprep.mubr.msk.bf16.mxu1 %vm3191_vm9, %v13661_v14 }
 0x2e2   : > { %10350 = vmatmul.mubr.msk.bf16.gmra.mrb[60].mxu1 %vm3191_vm9, %v13668_v55 }
 0x2e3   : > { %10357 = vmatprep.mubr.msk.bf16.mxu1 %vm3191_vm9, %v13260_v45  ;;  %v3329_v45 = vld [vmem:[#allocation2 + $0x188] sm:$0xff] }
 0x2ea   : > { %10358 = vmatmul.mubr.msk.bf16.vlgmr.msra.gmra.mrb[32].mxu1 %vm3191_vm9, %v13256_v27 }
 0x2eb   : > { %10390 = vmatpush3.bf16.msra.mxu1 %v11779_v63  ;;  %10361 = vmatprep.mubr.msk.bf16.mxu1 %vm3191_vm9, %v13292_v5  ;;  %v3328_v63 = vld [vmem:[#allocation2 + $0x180] sm:$0xff] }
 0x2ec   : > { %10391 = vmatprep.subr.bf16.mxu1 %v11780_v56  ;;  %v13708_v31 = vpack.c.bf16 %v3329_v45, %v3328_v63 }
 0x2ee   : > { %v4570_v2 = vshll.u32 %v13708_v31, 16  ;;  %v4568_v44 = vshrl.u32 %v13708_v31, 16 }
 0x2ef   : > { %10392 = vmatpush3.bf16.msra.mxu1 %v11780_v56  ;;  %v11787_v56 = vld [vmem:[%s14883_s3 + $0x80] sm:$0xff]  }
 0x2f0   : > { %10425 = vmatprep.subr.bf16.mxu1 %v11781_v46  ;;  %v4572_v48 = vrot.slane %v4570_v2, 1 }
 0x2f2   : > { %10362 = vmatmul.mubr.msk.bf16.gmra.mrb[36].mxu1 %vm3191_vm9, %v13285_v18  ;;  %v4573_v12 = vor.u32 %v4572_v48, %v4568_v44 }
 0x2f3   : > { %10365 = vmatprep.mubr.msk.bf16.mxu1 %vm3191_vm9, %v13337_v36 }
 0x2fa   : > { %10366 = vmatmul.mubr.msk.bf16.gmra.mrb[40].mxu1 %vm3191_vm9, %v13327_v60 }
 0x2fb   : > { %10369 = vmatprep.mubr.msk.bf16.mxu1 %vm3191_vm9, %v13373_v26 }
 0x302   : > { %10370 = vmatmul.mubr.msk.bf16.gmra.mrb[44].mxu1 %vm3191_vm9, %v13364_v17 }
 0x303   : > { %10373 = vmatprep.mubr.msk.bf16.mxu1 %vm3191_vm9, %v13409_v7 }
 0x30a   : > { %10374 = vmatmul.mubr.msk.bf16.gmra.mrb[48].mxu1 %vm3191_vm9, %v13400_v25 }
 0x30b   : > { %10377 = vmatprep.mubr.msk.bf16.mxu1 %vm3191_vm9, %v13445_v37 }
 0x312   : > { %10378 = vmatmul.mubr.msk.bf16.gmra.mrb[52].mxu1 %vm3191_vm9, %v13436_v11 }
 0x313   : > { %10381 = vmatprep.mubr.msk.bf16.mxu1 %vm3191_vm9, %v13479_v43 }
 0x31a   : > { %10382 = vmatmul.mubr.msk.bf16.gmra.mrb[56].mxu1 %vm3191_vm9, %v13471_v0 }
 0x31b   : > { %10385 = vmatprep.mubr.msk.bf16.mxu1 %vm3191_vm9, %v13499_v49 }
 0x322   : > { %10386 = vmatmul.mubr.msk.bf16.gmra.mrb[60].mxu1 %vm3191_vm9, %v13708_v31 }
 0x323   : > { %10393 = vmatprep.mubr.msk.bf16.mxu1 %vm3191_vm9, %v13290_v19  ;;  %v3330_v19 = vld [vmem:[#allocation2 + $0x190] sm:$0x3] }
 0x324   : > { %v3367_v41 = vpack.c.bf16 %v3330_v19, %v3330_v19 }
 0x326   : > { %v4575_v8 = vshll.u32 %v3367_v41, 16  ;;  %v4790_v35 = vrot.slane %v3367_v41, 1 }
 0x328   : > { %v4577_v39 = vrot.slane %v4575_v8, 1 }
 0x32a   : > { %10394 = vmatmul.mubr.msk.bf16.vlgmr.msra.gmra.mrb[32].mxu1 %vm3191_vm9, %v13301_v4  ;;  %v13751_v47 = vsel %vm3407_vm11, %v4573_v12, %v4577_v39 }
 0x32b   : > { %10426 = vmatpush3.bf16.msra.mxu1 %v11781_v46  ;;  %10397 = vmatprep.mubr.msk.bf16.mxu1 %vm3191_vm9, %v13335_v15 }
 0x32c   : > { %10427 = vmatprep.subr.bf16.mxu1 %v11782_v29 }
 0x32f   : > { %10428 = vmatpush3.bf16.msra.mxu1 %v11782_v29 }
 0x330   : > { %10461 = vmatprep.subr.bf16.mxu1 %v11783_v54 }
 0x332   : > { %10398 = vmatmul.mubr.msk.bf16.gmra.mrb[36].mxu1 %vm3191_vm9, %v13346_v24 }
 0x333   : > { %10401 = vmatprep.mubr.msk.bf16.mxu1 %vm3191_vm9, %v13371_v62 }
 0x33a   : > { %10402 = vmatmul.mubr.msk.bf16.gmra.mrb[40].mxu1 %vm3191_vm9, %v13382_v23 }
 0x33b   : > { %10405 = vmatprep.mubr.msk.bf16.mxu1 %vm3191_vm9, %v13407_v40 }
 0x342   : > { %10406 = vmatmul.mubr.msk.bf16.gmra.mrb[44].mxu1 %vm3191_vm9, %v13418_v21 }
 0x343   : > { %10409 = vmatprep.mubr.msk.bf16.mxu1 %vm3191_vm9, %v13443_v51 }
 0x34a   : > { %10410 = vmatmul.mubr.msk.bf16.gmra.mrb[48].mxu1 %vm3191_vm9, %v13454_v34 }
 0x34b   : > { %10413 = vmatprep.mubr.msk.bf16.mxu1 %vm3191_vm9, %v13477_v61 }
 0x352   : > { %10414 = vmatmul.mubr.msk.bf16.gmra.mrb[52].mxu1 %vm3191_vm9, %v13486_v16 }
 0x353   : > { %10417 = vmatprep.mubr.msk.bf16.mxu1 %vm3191_vm9, %v13497_v13 }
 0x35a   : > { %10418 = vmatmul.mubr.msk.bf16.gmra.mrb[56].mxu1 %vm3191_vm9, %v13506_v30 }
 0x35b   : > { %10421 = vmatprep.mubr.msk.bf16.mxu1 %vm3191_vm9, %v13514_v1 }
 0x362   : > { %10422 = vmatmul.mubr.msk.bf16.gmra.mrb[60].mxu1 %vm3191_vm9, %v13751_v47 }
 0x363   : > { %10429 = vmatprep.mubr.msk.bf16.mxu1 %vm3191_vm9, %v13569_v38  ;;  %v4789_v38 = vrot.slane %v13708_v31, 1 }
 0x365   : > { %v13793_v3 = vsel %vm4058_vm12, %v4789_v38, %v4790_v35 }
 0x36a   : > { %10430 = vmatmul.mubr.msk.bf16.vlgmr.msra.gmra.mrb[32].mxu1 %vm3191_vm9, %v13574_v33 }
 0x36b   : > { %10462 = vmatpush3.bf16.msra.mxu1 %v11783_v54  ;;  %10433 = vmatprep.mubr.msk.bf16.mxu1 %vm3191_vm9, %v13586_v32 }
 0x36c   : > { %10463 = vmatprep.subr.bf16.mxu1 %v11784_v42 }
 0x36f   : > { %10464 = vmatpush3.bf16.msra.mxu1 %v11784_v42 }
 0x370   : > { %10497 = vmatprep.subr.bf16.mxu1 %v11785_v59 }
 0x372   : > { %10434 = vmatmul.mubr.msk.bf16.gmra.mrb[36].mxu1 %vm3191_vm9, %v13591_v22 }
 0x373   : > { %10437 = vmatprep.mubr.msk.bf16.mxu1 %vm3191_vm9, %v13600_v9 }
 0x37a   : > { %10438 = vmatmul.mubr.msk.bf16.gmra.mrb[40].mxu1 %vm3191_vm9, %v13605_v57 }
 0x37b   : > { %10441 = vmatprep.mubr.msk.bf16.mxu1 %vm3191_vm9, %v13614_v50 }
 0x382   : > { %10442 = vmatmul.mubr.msk.bf16.gmra.mrb[44].mxu1 %vm3191_vm9, %v13619_v58 }
 0x383   : > { %10445 = vmatprep.mubr.msk.bf16.mxu1 %vm3191_vm9, %v13628_v28 }
 0x38a   : > { %10446 = vmatmul.mubr.msk.bf16.gmra.mrb[48].mxu1 %vm3191_vm9, %v13633_v52 }
 0x38b   : > { %10449 = vmatprep.mubr.msk.bf16.mxu1 %vm3191_vm9, %v13642_v20 }
 0x392   : > { %10450 = vmatmul.mubr.msk.bf16.gmra.mrb[52].mxu1 %vm3191_vm9, %v13647_v10 }
 0x393   : > { %10453 = vmatprep.mubr.msk.bf16.mxu1 %vm3191_vm9, %v13656_v53 }
 0x39a   : > { %10454 = vmatmul.mubr.msk.bf16.gmra.mrb[56].mxu1 %vm3191_vm9, %v13661_v14 }
 0x39b   : > { %10457 = vmatprep.mubr.msk.bf16.mxu1 %vm3191_vm9, %v13668_v55 }
 0x3a2   : > { %10458 = vmatmul.mubr.msk.bf16.gmra.mrb[60].mxu1 %vm3191_vm9, %v13793_v3 }
 0x3a3   : > { %10465 = vmatprep.mubr.msk.bf16.mxu1 %vm3191_vm9, %v13256_v27  ;;  %v3331_v27 = vld [vmem:[#allocation2 + $0x198] sm:$0xff] }
 0x3aa   : > { %10466 = vmatmul.mubr.msk.bf16.vlgmr.msra.gmra.mrb[32].mxu1 %vm3191_vm9, %v13292_v5 }
 0x3ab   : > { %10498 = vmatpush3.bf16.msra.mxu1 %v11785_v59  ;;  %10469 = vmatprep.mubr.msk.bf16.mxu1 %vm3191_vm9, %v13285_v18  ;;  %v3332_v18 = vld [vmem:[#allocation2 + $0x1a0] sm:$0xff] }
 0x3ac   : > { %10499 = vmatprep.subr.bf16.mxu1 %v11786_v6  ;;  %v3368_v5 = vpack.c.bf16 %v3332_v18, %v3331_v27 }
 0x3af   : > { %10500 = vmatpush3.bf16.msra.mxu1 %v11786_v6 }
 0x3b0   : > { %10533 = vmatprep.subr.bf16.mxu1 %v11787_v56 }
 0x3b2   : > { %10470 = vmatmul.mubr.msk.bf16.gmra.mrb[36].mxu1 %vm3191_vm9, %v13337_v36  ;;  %v11790_v36 = vld [vmem:[%s14885_s5 + $0x18] sm:$0xff]  }
 0x3b3   : > { %10473 = vmatprep.mubr.msk.bf16.mxu1 %vm3191_vm9, %v13327_v60  ;;  %v11789_v60 = vld [vmem:[%s14885_s5 + $0x10] sm:$0xff]  }
 0x3b4   : > { %10569 = vmatprep.subr.bf16.mxu0 %v11789_v60 }
 0x3b5   : > { %10570 = vmatpush3.bf16.msra.mxu0 %v11789_v60 }
 0x3b6   : > { %10571 = vmatprep.subr.bf16.mxu0 %v11790_v36 }
 0x3b9   : > { %10572 = vmatpush3.bf16.msra.mxu0 %v11790_v36 }
 0x3ba   : > { %10474 = vmatmul.mubr.msk.bf16.gmra.mrb[40].mxu1 %vm3191_vm9, %v13373_v26 }
 0x3bb   : > { %10477 = vmatprep.mubr.msk.bf16.mxu1 %vm3191_vm9, %v13364_v17  ;;  %v11788_v17 = vld [vmem:[%s14883_s3 + $0x88] sm:$0xff]  }
 0x3c2   : > { %10478 = vmatmul.mubr.msk.bf16.gmra.mrb[44].mxu1 %vm3191_vm9, %v13409_v7 }
 0x3c3   : > { %10481 = vmatprep.mubr.msk.bf16.mxu1 %vm3191_vm9, %v13400_v25 }
 0x3ca   : > { %10482 = vmatmul.mubr.msk.bf16.gmra.mrb[48].mxu1 %vm3191_vm9, %v13445_v37  ;;  %v5958_v37 = vld [vmem:[#allocation3] sm:$0xff] }
 0x3cb   : > { %10485 = vmatprep.mubr.msk.bf16.mxu1 %vm3191_vm9, %v13436_v11 }
 0x3d2   : > { %10486 = vmatmul.mubr.msk.bf16.gmra.mrb[52].mxu1 %vm3191_vm9, %v13479_v43 }
 0x3d3   : > { %10489 = vmatprep.mubr.msk.bf16.mxu1 %vm3191_vm9, %v13471_v0  ;;  %v5960_v0 = vld [vmem:[#allocation3 + $0x10] sm:$0x3] }
 0x3d4   : > { %v13909_v43 = vpack.c.bf16 %v5960_v0, %v5960_v0 }
 0x3da   : > { %10490 = vmatmul.mubr.msk.bf16.gmra.mrb[56].mxu1 %vm3191_vm9, %v13499_v49 }
 0x3db   : > { %10493 = vmatprep.mubr.msk.bf16.mxu1 %vm3191_vm9, %v13708_v31 }
 0x3e2   : > { %10494 = vmatmul.mubr.msk.bf16.gmra.mrb[60].mxu1 %vm3191_vm9, %v3368_v5 }
 0x3e3   : > { %10501 = vmatprep.mubr.msk.bf16.mxu1 %vm3191_vm9, %v13301_v4  ;;  %v3333_v4 = vld [vmem:[#allocation2 + $0x1a8] sm:$0x3] }
 0x3ea   : > { %10502 = vmatmul.mubr.msk.bf16.vlgmr.msra.gmra.mrb[32].mxu1 %vm3191_vm9, %v13335_v15  ;;  %v3369_v15 = vpack.c.bf16 %v3333_v4, %v3333_v4 }
 0x3eb   : > { %10534 = vmatpush3.bf16.msra.mxu1 %v11787_v56  ;;  %10505 = vmatprep.mubr.msk.bf16.mxu1 %vm3191_vm9, %v13346_v24  ;;  %v5210_v24 = vshll.u32 %v3368_v5, 16 }
 0x3ec   : > { %10535 = vmatprep.subr.bf16.mxu1 %v11788_v17  ;;  %v5430_v11 = vrot.slane %v3369_v15, 1 }
 0x3ed   : > { %v5212_v26 = vrot.slane %v5210_v24, 1 }
 0x3ef   : > { %10536 = vmatpush3.bf16.msra.mxu1 %v11788_v17 }
 0x3f2   : > { %10506 = vmatmul.mubr.msk.bf16.gmra.mrb[36].mxu1 %vm3191_vm9, %v13371_v62  ;;  %v5208_v62 = vshrl.u32 %v3368_v5, 16 }
 0x3f3   : > { %10509 = vmatprep.mubr.msk.bf16.mxu1 %vm3191_vm9, %v13382_v23  ;;  %v5215_v23 = vshll.u32 %v3369_v15, 16 }
 0x3f4   : > { %v5213_v25 = vor.u32 %v5212_v26, %v5208_v62 }
 0x3fa   : > { %10510 = vmatmul.mubr.msk.bf16.gmra.mrb[40].mxu1 %vm3191_vm9, %v13407_v40  ;;  %v5217_v40 = vrot.slane %v5215_v23, 1 }
 0x3fb   : > { %10513 = vmatprep.mubr.msk.bf16.mxu1 %vm3191_vm9, %v13418_v21  ;;  %v5429_v21 = vrot.slane %v3368_v5, 1 }
 0x3fc   : > { %v5218_v7 = vsel %vm3407_vm11, %v5213_v25, %v5217_v40 }
 0x402   : > { %10514 = vmatmul.mubr.msk.bf16.gmra.mrb[44].mxu1 %vm3191_vm9, %v13443_v51  ;;  %v5431_v51 = vsel %vm4058_vm12, %v5429_v21, %v5430_v11 }
 0x403   : > { %10517 = vmatprep.mubr.msk.bf16.mxu1 %vm3191_vm9, %v13454_v34  ;;  %v5959_v34 = vld [vmem:[#allocation3 + $0x8] sm:$0xff] }
 0x40a   : > { %10518 = vmatmul.mubr.msk.bf16.gmra.mrb[48].mxu1 %vm3191_vm9, %v13477_v61  ;;  %v13907_v61 = vpack.c.bf16 %v5959_v34, %v5958_v37 }
 0x40b   : > { %10521 = vmatprep.mubr.msk.bf16.mxu1 %vm3191_vm9, %v13486_v16  ;;  %v13914_v16 = vld [vmem:[%s14885_s5] sm:$0xff]  }
 0x40c   : > { %v6088_v49 = vshll.u32 %v13907_v61, 16  ;;  %10605 = vmatprep.subr.bf16.mxu0 %v13914_v16 }
 0x412   : > { %10522 = vmatmul.mubr.msk.bf16.gmra.mrb[52].mxu1 %vm3191_vm9, %v13497_v13  ;;  %v6086_v13 = vshrl.u32 %v13907_v61, 16 }
 0x413   : > { %10525 = vmatprep.mubr.msk.bf16.mxu1 %vm3191_vm9, %v13506_v30  ;;  %v6093_v30 = vshll.u32 %v13909_v43, 16 }
 0x41a   : > { %10526 = vmatmul.mubr.msk.bf16.gmra.mrb[56].mxu1 %vm3191_vm9, %v13514_v1  ;;  %v6090_v1 = vrot.slane %v6088_v49, 1 }
 0x41b   : > { %10529 = vmatprep.mubr.msk.bf16.mxu1 %vm3191_vm9, %v13751_v47 }
 0x422   : > { %10530 = vmatmul.mubr.msk.bf16.gmra.mrb[60].mxu1 %vm3191_vm9, %v5218_v7 }
 0x423   : > { %10537 = vmatprep.mubr.msk.bf16.mxu1 %vm3191_vm9, %v13574_v33  ;;  %v6095_v33 = vrot.slane %v6093_v30, 1 }
 0x42a   : > { %10538 = vmatmul.mubr.msk.bf16.vlgmr.msra.gmra.mrb[32].mxu1 %vm3191_vm9, %v13586_v32  ;;  %v6091_v32 = vor.u32 %v6090_v1, %v6086_v13 }
 0x42b   : > { %10541 = vmatprep.mubr.msk.bf16.mxu1 %vm3191_vm9, %v13591_v22 }
 0x42c   : > { %v6096_v22 = vsel %vm3407_vm11, %v6091_v32, %v6095_v33 }
 0x42d   : > { %10573 = vmatprep.mubr.msk.bf16.mxu0 %vm3191_vm9, %v6096_v22 }
 0x432   : > { %10542 = vmatmul.mubr.msk.bf16.gmra.mrb[36].mxu1 %vm3191_vm9, %v13600_v9  ;;  %v13928_v9 = vld [vmem:[%s14884_s4] ss:$0 sm:$0xff] }
 0x433   : > { %10545 = vmatprep.mubr.msk.bf16.mxu1 %vm3191_vm9, %v13605_v57 }
 0x43a   : > { %10546 = vmatmul.mubr.msk.bf16.gmra.mrb[40].mxu1 %vm3191_vm9, %v13614_v50 }
 0x43b   : > { %10549 = vmatprep.mubr.msk.bf16.mxu1 %vm3191_vm9, %v13619_v58 }
 0x442   : > { %10550 = vmatmul.mubr.msk.bf16.gmra.mrb[44].mxu1 %vm3191_vm9, %v13628_v28 }
 0x443   : > { %10553 = vmatprep.mubr.msk.bf16.mxu1 %vm3191_vm9, %v13633_v52 }
 0x44a   : > { %10554 = vmatmul.mubr.msk.bf16.gmra.mrb[48].mxu1 %vm3191_vm9, %v13642_v20 }
 0x44b   : > { %10557 = vmatprep.mubr.msk.bf16.mxu1 %vm3191_vm9, %v13647_v10 }
 0x452   : > { %10558 = vmatmul.mubr.msk.bf16.gmra.mrb[52].mxu1 %vm3191_vm9, %v13656_v53 }
 0x453   : > { %10561 = vmatprep.mubr.msk.bf16.mxu1 %vm3191_vm9, %v13661_v14 }
 0x45a   : > { %10562 = vmatmul.mubr.msk.bf16.gmra.mrb[56].mxu1 %vm3191_vm9, %v13668_v55 }
 0x45b   : > { %10565 = vmatprep.mubr.msk.bf16.mxu1 %vm3191_vm9, %v13793_v3 }
 0x462   : > { %10566 = vmatmul.mubr.msk.bf16.gmra.mrb[60].mxu1 %vm3191_vm9, %v5431_v51 }
 0x4fd   : > { %v10539_v57 = vpop.f32.mrb[32].mxu1 }
 0x4fe   : > { %v5648_v50 = vadd.f32 %v10539_v57, %v13928_v9  ;;  %v5481_v58 = vpop.f32.mrb[33].mxu1 }
 0x4ff   : > { %v5646_v28 = vadd.f32 %v13928_v9, %v5481_v58  ;;  %v10540_v52 = vpop.f32.mrb[34].mxu1 }
 0x500   : > { %v5680_v20 = vmax.f32 %v5648_v50, 0.0  ;;  %v5649_v10 = vadd.f32 %v10540_v52, %v13928_v9  ;;  %v5484_v53 = vpop.f32.mrb[35].mxu1 }
 0x501   : > { %v5678_v14 = vmax.f32 %v5646_v28, 0.0  ;;  %v5647_v55 = vadd.f32 %v13928_v9, %v5484_v53  ;;  %v11792_v28 = vld [vmem:[%s14885_s5 + $0x8] sm:$0xff]  }
 0x502   : > { %v9412_v46 = vpack.c.bf16 %v5680_v20, %v5680_v20  ;;  %5928 = vst.msk [vmem:[#allocation3 + $0x31] sm:$0xff] %vm3191_vm9, %v5680_v20  ;;  %v5681_v45 = vmax.f32 %v5649_v10, 0.0 }
 0x503   : > { %v9410_v63 = vpack.c.bf16 %v5678_v14, %v5678_v14  ;;  %5926 = vst.msk [vmem:[#allocation3 + $0x19] sm:$0xff] %vm3191_vm9, %v5678_v14  ;;  %v5679_v31 = vmax.f32 %v5647_v55, 0.0 }
 0x504   : > { %5841 = vst.msk [vmem:[%s13937_s21 + $0x8] sm:$0xf] %vm5838_vm13, %v9412_v46  ;;  %v9413_v29 = vpack.c.bf16 %v5681_v45, %v5681_v45 }
 0x505   : > { %5929 = vst.msk [vmem:[#allocation3 + $0x39] sm:$0xff] %vm3191_vm9, %v5681_v45  ;;  %v9411_v54 = vpack.c.bf16 %v5679_v31, %v5679_v31  ;;  %5927 = vst.msk [vmem:[#allocation3 + $0x21] sm:$0xff] %vm3191_vm9, %v5679_v31  ;;  %v10543_v19 = vpop.f32.mrb[36].mxu1 }
 0x506   : > { %5839 = vst.msk [vmem:[%s13937_s21] sm:$0xf] %vm5838_vm13, %v9410_v63  ;;  %5842 = vst.msk [vmem:[%s13937_s21 + $0xc] sm:$0xf] %vm5838_vm13, %v9413_v29  ;;  %v5652_v2 = vadd.f32 %v10543_v19, %v13928_v9  ;;  %v5497_v41 = vpop.f32.mrb[37].mxu1 }
 0x507   : > { %5840 = vst.msk [vmem:[%s13937_s21 + $0x4] sm:$0xf] %vm5838_vm13, %v9411_v54  ;;  %v5650_v48 = vadd.f32 %v13928_v9, %v5497_v41  ;;  %v10544_v44 = vpop.f32.mrb[38].mxu1 }
 0x508   : > { %v5684_v8 = vmax.f32 %v5652_v2, 0.0  ;;  %v5653_v12 = vadd.f32 %v10544_v44, %v13928_v9  ;;  %v5500_v39 = vpop.f32.mrb[39].mxu1 }
 0x509   : > { %v5682_v47 = vmax.f32 %v5650_v48, 0.0  ;;  %v5651_v42 = vadd.f32 %v13928_v9, %v5500_v39  ;;  %v5964_v6 = vld [vmem:[#allocation3 + $0x30] sm:$0xff] }
 0x50a   : > { %v9416_v59 = vpack.c.bf16 %v5684_v8, %v5684_v8  ;;  %5932 = vst.msk [vmem:[#allocation3 + $0x61] sm:$0xff] %vm3191_vm9, %v5684_v8  ;;  %v5685_v38 = vmax.f32 %v5653_v12, 0.0  ;;  %v5961_v5 = vld [vmem:[#allocation3 + $0x18] sm:$0xff] }
 0x50b   : > { %v9414_v35 = vpack.c.bf16 %v5682_v47, %v5682_v47  ;;  %5930 = vst.msk [vmem:[#allocation3 + $0x49] sm:$0xff] %vm3191_vm9, %v5682_v47  ;;  %v5683_v3 = vmax.f32 %v5651_v42, 0.0 }
 0x50c   : > { %v5965_v56 = vld [vmem:[#allocation3 + $0x38] sm:$0xff]  ;;  %v5966_v27 = vld [vmem:[#allocation3 + $0x40] sm:$0x3]  ;;  %5845 = vst.msk [vmem:[%s13937_s21 + $0x18] sm:$0xf] %vm5838_vm13, %v9416_v59  ;;  %v9417_v18 = vpack.c.bf16 %v5685_v38, %v5685_v38 }
 0x50d   : > { %5933 = vst.msk [vmem:[#allocation3 + $0x69] sm:$0xff] %vm3191_vm9, %v5685_v38  ;;  %v5962_v60 = vld [vmem:[#allocation3 + $0x20] sm:$0xff]  ;;  %v5963_v36 = vld [vmem:[#allocation3 + $0x28] sm:$0x3]  ;;  %v13958_v17 = vpack.c.bf16 %v5965_v56, %v5964_v6  ;;  %v13960_v4 = vpack.c.bf16 %v5966_v27, %v5966_v27  ;;  %v9415_v15 = vpack.c.bf16 %v5683_v3, %v5683_v3  ;;  %5931 = vst.msk [vmem:[#allocation3 + $0x51] sm:$0xff] %vm3191_vm9, %v5683_v3  ;;  %v10547_v24 = vpop.f32.mrb[40].mxu1 }
 0x50e   : > { %5843 = vst.msk [vmem:[%s13937_s21 + $0x10] sm:$0xf] %vm5838_vm13, %v9414_v35  ;;  %v13965_v62 = vpack.c.bf16 %v5962_v60, %v5961_v5  ;;  %v13967_v26 = vpack.c.bf16 %v5963_v36, %v5963_v36  ;;  %5846 = vst.msk [vmem:[%s13937_s21 + $0x1c] sm:$0xf] %vm5838_vm13, %v9417_v18  ;;  %v5656_v23 = vadd.f32 %v10547_v24, %v13928_v9  ;;  %v5513_v25 = vpop.f32.mrb[41].mxu1 }
 0x50f   : > { %v6112_v40 = vshll.u32 %v13958_v17, 16  ;;  %5844 = vst.msk [vmem:[%s13937_s21 + $0x14] sm:$0xf] %vm5838_vm13, %v9415_v15  ;;  %v5654_v7 = vadd.f32 %v13928_v9, %v5513_v25  ;;  %v10548_v21 = vpop.f32.mrb[42].mxu1  ;;  %v6110_v37 = vshrl.u32 %v13958_v17, 16  ;;  %v6117_v30 = vshll.u32 %v13960_v4, 16 }
 0x510   : > { %v6100_v11 = vshll.u32 %v13965_v62, 16  ;;  %v6105_v51 = vshll.u32 %v13967_v26, 16  ;;  %v5688_v34 = vmax.f32 %v5656_v23, 0.0  ;;  %v5657_v0 = vadd.f32 %v10548_v21, %v13928_v9  ;;  %v5516_v13 = vpop.f32.mrb[43].mxu1 }
 0x511   : > { %v6114_v49 = vrot.slane %v6112_v40, 1  ;;  %v5686_v1 = vmax.f32 %v5654_v7, 0.0  ;;  %v5655_v33 = vadd.f32 %v13928_v9, %v5516_v13  ;;  %v6098_v32 = vshrl.u32 %v13965_v62, 16  ;;  %v5970_v14 = vld [vmem:[#allocation3 + $0x60] sm:$0xff] }
 0x512   : > { %v6102_v22 = vrot.slane %v6100_v11, 1  ;;  %v9420_v57 = vpack.c.bf16 %v5688_v34, %v5688_v34  ;;  %5936 = vst.msk [vmem:[#allocation3 + $0x91] sm:$0xff] %vm3191_vm9, %v5688_v34  ;;  %v5689_v50 = vmax.f32 %v5657_v0, 0.0  ;;  %v6107_v53 = vrot.slane %v6105_v51, 1  ;;  %v5967_v31 = vld [vmem:[#allocation3 + $0x48] sm:$0xff] }
 0x513   : > { %v6115_v58 = vor.u32 %v6114_v49, %v6110_v37  ;;  %v9418_v52 = vpack.c.bf16 %v5686_v1, %v5686_v1  ;;  %5934 = vst.msk [vmem:[#allocation3 + $0x79] sm:$0xff] %vm3191_vm9, %v5686_v1  ;;  %v5687_v20 = vmax.f32 %v5655_v33, 0.0  ;;  %v6119_v63 = vrot.slane %v6117_v30, 1 }
 0x514   : > { %v6103_v10 = vor.u32 %v6102_v22, %v6098_v32  ;;  %v5971_v55 = vld [vmem:[#allocation3 + $0x68] sm:$0xff]  ;;  %v5972_v46 = vld [vmem:[#allocation3 + $0x70] sm:$0x3]  ;;  %5849 = vst.msk [vmem:[%s13937_s21 + $0x28] sm:$0xf] %vm5838_vm13, %v9420_v57  ;;  %v9421_v45 = vpack.c.bf16 %v5689_v50, %v5689_v50 }
 0x515   : > { %5937 = vst.msk [vmem:[#allocation3 + $0x99] sm:$0xff] %vm3191_vm9, %v5689_v50  ;;  %v5968_v29 = vld [vmem:[#allocation3 + $0x50] sm:$0xff]  ;;  %v5969_v54 = vld [vmem:[#allocation3 + $0x58] sm:$0x3]  ;;  %v13991_v19 = vpack.c.bf16 %v5971_v55, %v5970_v14  ;;  %v13993_v2 = vpack.c.bf16 %v5972_v46, %v5972_v46  ;;  %v9419_v41 = vpack.c.bf16 %v5687_v20, %v5687_v20  ;;  %5935 = vst.msk [vmem:[#allocation3 + $0x81] sm:$0xff] %vm3191_vm9, %v5687_v20  ;;  %v10551_v48 = vpop.f32.mrb[44].mxu1 }
 0x516   : > { %5847 = vst.msk [vmem:[%s13937_s21 + $0x20] sm:$0xf] %vm5838_vm13, %v9418_v52  ;;  %v13999_v44 = vsel %vm3407_vm11, %v6103_v10, %v6107_v53  ;;  %v14001_v8 = vpack.c.bf16 %v5968_v29, %v5967_v31  ;;  %v14003_v12 = vpack.c.bf16 %v5969_v54, %v5969_v54  ;;  %5850 = vst.msk [vmem:[%s13937_s21 + $0x2c] sm:$0xf] %vm5838_vm13, %v9421_v45  ;;  %v5529_v47 = vpop.f32.mrb[45].mxu1 }
 0x517   : > { %v5660_v39 = vadd.f32 %v10551_v48, %v13928_v9  ;;  %10574 = vmatmul.mubr.msk.bf16.vlgmr.msra.gmra.mrb[32].mxu0 %vm3191_vm9, %v13999_v44  ;;  %v14011_v42 = vsel %vm3407_vm11, %v6115_v58, %v6119_v63  ;;  %v6136_v59 = vshll.u32 %v13991_v19, 16  ;;  %5848 = vst.msk [vmem:[%s13937_s21 + $0x24] sm:$0xf] %vm5838_vm13, %v9419_v41  ;;  %v5658_v38 = vadd.f32 %v13928_v9, %v5529_v47  ;;  %v10552_v35 = vpop.f32.mrb[46].mxu1 }
 0x518   : > { %10606 = vmatpush3.bf16.msra.mxu0 %v13914_v16  ;;  %10577 = vmatprep.mubr.msk.bf16.mxu0 %vm3191_vm9, %v14011_v42  ;;  %v6124_v3 = vshll.u32 %v14001_v8, 16  ;;  %v6129_v6 = vshll.u32 %v14003_v12, 16  ;;  %v6134_v56 = vshrl.u32 %v13991_v19, 16  ;;  %v5661_v18 = vadd.f32 %v10552_v35, %v13928_v9  ;;  %v5532_v5 = vpop.f32.mrb[47].mxu1  ;;  %v14028_v16 = vld [vmem:[%s14885_s5 + $0x20] sm:$0xff]  }
 0x519   : > { %v5692_v27 = vmax.f32 %v5660_v39, 0.0  ;;  %v6138_v60 = vrot.slane %v6136_v59, 1  ;;  %v6141_v36 = vshll.u32 %v13993_v2, 16  ;;  %10607 = vmatprep.subr.bf16.mxu0 %v11792_v28  ;;  %v5690_v15 = vmax.f32 %v5658_v38, 0.0  ;;  %v5976_v0 = vld [vmem:[#allocation3 + $0x90] sm:$0xff] }
 0x51a   : > { %v5659_v24 = vadd.f32 %v13928_v9, %v5532_v5  ;;  %v6122_v23 = vshrl.u32 %v14001_v8, 16  ;;  %v6126_v25 = vrot.slane %v6124_v3, 1  ;;  %v5693_v7 = vmax.f32 %v5661_v18, 0.0  ;;  %v5973_v33 = vld [vmem:[#allocation3 + $0x78] sm:$0xff] }
 0x51b   : > { %v9424_v40 = vpack.c.bf16 %v5692_v27, %v5692_v27  ;;  %5940 = vst.msk [vmem:[#allocation3 + $0xc1] sm:$0xff] %vm3191_vm9, %v5692_v27  ;;  %v6139_v21 = vor.u32 %v6138_v60, %v6134_v56  ;;  %v9422_v11 = vpack.c.bf16 %v5690_v15, %v5690_v15  ;;  %5938 = vst.msk [vmem:[#allocation3 + $0xa9] sm:$0xff] %vm3191_vm9, %v5690_v15  ;;  %v6131_v34 = vrot.slane %v6129_v6, 1 }
 0x51c   : > { %v5691_v51 = vmax.f32 %v5659_v24, 0.0  ;;  %v6127_v37 = vor.u32 %v6126_v25, %v6122_v23  ;;  %v5977_v13 = vld [vmem:[#allocation3 + $0x98] sm:$0xff]  ;;  %v5978_v49 = vld [vmem:[#allocation3 + $0xa0] sm:$0x3]  ;;  %10608 = vmatpush3.bf16.msra.mxu0 %v11792_v28  ;;  %v9425_v30 = vpack.c.bf16 %v5693_v7, %v5693_v7  ;;  %5941 = vst.msk [vmem:[#allocation3 + $0xc9] sm:$0xff] %vm3191_vm9, %v5693_v7  ;;  %v6143_v1 = vrot.slane %v6141_v36, 1 }
 0x51d   : > { %5853 = vst.msk [vmem:[%s13937_s21 + $0x38] sm:$0xf] %vm5838_vm13, %v9424_v40  ;;  %v5974_v32 = vld [vmem:[#allocation3 + $0x80] sm:$0xff]  ;;  %v5975_v22 = vld [vmem:[#allocation3 + $0x88] sm:$0x3]  ;;  %v14037_v57 = vpack.c.bf16 %v5977_v13, %v5976_v0  ;;  %v14039_v50 = vpack.c.bf16 %v5978_v49, %v5978_v49  ;;  %10641 = vmatprep.subr.bf16.mxu0 %v14028_v16  ;;  %v10555_v28 = vpop.f32.mrb[48].mxu1 }
 0x51e   : > { %5851 = vst.msk [vmem:[%s13937_s21 + $0x30] sm:$0xf] %vm5838_vm13, %v9422_v11  ;;  %v9423_v58 = vpack.c.bf16 %v5691_v51, %v5691_v51  ;;  %v14046_v52 = vsel %vm3407_vm11, %v6127_v37, %v6131_v34  ;;  %v14048_v20 = vpack.c.bf16 %v5974_v32, %v5973_v33  ;;  %v14050_v10 = vpack.c.bf16 %v5975_v22, %v5975_v22  ;;  %v5545_v14 = vpop.f32.mrb[49].mxu1 }
 0x51f   : > { %5939 = vst.msk [vmem:[#allocation3 + $0xb1] sm:$0xff] %vm3191_vm9, %v5691_v51  ;;  %v5664_v53 = vadd.f32 %v10555_v28, %v13928_v9  ;;  %10578 = vmatmul.mubr.msk.bf16.gmra.mrb[36].mxu0 %vm3191_vm9, %v14046_v52  ;;  %v14058_v55 = vsel %vm3407_vm11, %v6139_v21, %v6143_v1  ;;  %v6160_v46 = vshll.u32 %v14037_v57, 16  ;;  %v5662_v45 = vadd.f32 %v13928_v9, %v5545_v14  ;;  %v10556_v63 = vpop.f32.mrb[50].mxu1 }
 0x520   : > { %5854 = vst.msk [vmem:[%s13937_s21 + $0x3c] sm:$0xf] %vm5838_vm13, %v9425_v30  ;;  %5852 = vst.msk [vmem:[%s13937_s21 + $0x34] sm:$0xf] %vm5838_vm13, %v9423_v58  ;;  %10581 = vmatprep.mubr.msk.bf16.mxu0 %vm3191_vm9, %v14058_v55  ;;  %v6148_v31 = vshll.u32 %v14048_v20, 16  ;;  %v6153_v29 = vshll.u32 %v14050_v10, 16  ;;  %v5665_v48 = vadd.f32 %v10556_v63, %v13928_v9 }
 0x521   : > { %v6158_v54 = vshrl.u32 %v14037_v57, 16  ;;  %v5696_v41 = vmax.f32 %v5664_v53, 0.0  ;;  %v5548_v39 = vpop.f32.mrb[51].mxu1  ;;  %v6162_v47 = vrot.slane %v6160_v46, 1  ;;  %v6165_v59 = vshll.u32 %v14039_v50, 16 }
 0x522   : > { %v5694_v38 = vmax.f32 %v5662_v45, 0.0  ;;  %v5663_v35 = vadd.f32 %v13928_v9, %v5548_v39  ;;  %v6146_v3 = vshrl.u32 %v14048_v20, 16  ;;  %v6150_v6 = vrot.slane %v6148_v31, 1  ;;  %v5982_v24 = vld [vmem:[#allocation3 + $0xc0] sm:$0xff]  ;;  %v5979_v21 = vld [vmem:[#allocation3 + $0xa8] sm:$0xff] }
 0x523   : > { %v9428_v56 = vpack.c.bf16 %v5696_v41, %v5696_v41  ;;  %5944 = vst.msk [vmem:[#allocation3 + $0xf1] sm:$0xff] %vm3191_vm9, %v5696_v41  ;;  %v5697_v27 = vmax.f32 %v5665_v48, 0.0  ;;  %v6163_v18 = vor.u32 %v6162_v47, %v6158_v54  ;;  %v6155_v15 = vrot.slane %v6153_v29, 1  ;;  %v5983_v23 = vld [vmem:[#allocation3 + $0xc8] sm:$0xff]  ;;  %v5984_v25 = vld [vmem:[#allocation3 + $0xd0] sm:$0x3] }
 0x524   : > { %v9426_v5 = vpack.c.bf16 %v5694_v38, %v5694_v38  ;;  %5942 = vst.msk [vmem:[#allocation3 + $0xd9] sm:$0xff] %vm3191_vm9, %v5694_v38  ;;  %v5695_v60 = vmax.f32 %v5663_v35, 0.0  ;;  %v6151_v36 = vor.u32 %v6150_v6, %v6146_v3  ;;  %v6167_v7 = vrot.slane %v6165_v59, 1 }
 0x525   : > { %5857 = vst.msk [vmem:[%s13937_s21 + $0x48] sm:$0xf] %vm5838_vm13, %v9428_v56  ;;  %v9429_v40 = vpack.c.bf16 %v5697_v27, %v5697_v27  ;;  %v14078_v37 = vpack.c.bf16 %v5983_v23, %v5982_v24  ;;  %v14080_v34 = vpack.c.bf16 %v5984_v25, %v5984_v25  ;;  %v10559_v13 = vpop.f32.mrb[52].mxu1 }
 0x526   : > { %5945 = vst.msk [vmem:[#allocation3 + $0xf9] sm:$0xff] %vm3191_vm9, %v5697_v27  ;;  %v5980_v11 = vld [vmem:[#allocation3 + $0xb0] sm:$0xff]  ;;  %v5981_v51 = vld [vmem:[#allocation3 + $0xb8] sm:$0x3]  ;;  %v9427_v0 = vpack.c.bf16 %v5695_v60, %v5695_v60  ;;  %5943 = vst.msk [vmem:[#allocation3 + $0xe1] sm:$0xff] %vm3191_vm9, %v5695_v60  ;;  %v14086_v49 = vsel %vm3407_vm11, %v6151_v36, %v6155_v15  ;;  %v5668_v33 = vadd.f32 %v10559_v13, %v13928_v9  ;;  %v5561_v32 = vpop.f32.mrb[53].mxu1 }
 0x527   : > { %5855 = vst.msk [vmem:[%s13937_s21 + $0x40] sm:$0xf] %vm5838_vm13, %v9426_v5  ;;  %v14088_v30 = vpack.c.bf16 %v5980_v11, %v5979_v21  ;;  %v14090_v1 = vpack.c.bf16 %v5981_v51, %v5981_v51  ;;  %5858 = vst.msk [vmem:[%s13937_s21 + $0x4c] sm:$0xf] %vm5838_vm13, %v9429_v40  ;;  %10582 = vmatmul.mubr.msk.bf16.gmra.mrb[40].mxu0 %vm3191_vm9, %v14086_v49  ;;  %v14098_v22 = vsel %vm3407_vm11, %v6163_v18, %v6167_v7  ;;  %v10560_v53 = vpop.f32.mrb[54].mxu1 }
 0x528   : > { %v6184_v58 = vshll.u32 %v14078_v37, 16  ;;  %5856 = vst.msk [vmem:[%s13937_s21 + $0x44] sm:$0xf] %vm5838_vm13, %v9427_v0  ;;  %v5666_v28 = vadd.f32 %v13928_v9, %v5561_v32  ;;  %10585 = vmatprep.mubr.msk.bf16.mxu0 %vm3191_vm9, %v14098_v22  ;;  %v6182_v45 = vshrl.u32 %v14078_v37, 16  ;;  %v5700_v63 = vmax.f32 %v5668_v33, 0.0  ;;  %v5564_v29 = vpop.f32.mrb[55].mxu1 }
 0x529   : > { %v6172_v14 = vshll.u32 %v14088_v30, 16  ;;  %v6177_v46 = vshll.u32 %v14090_v1, 16  ;;  %v5669_v31 = vadd.f32 %v10560_v53, %v13928_v9  ;;  %v6189_v41 = vshll.u32 %v14080_v34, 16 }
 0x52a   : > { %v6186_v54 = vrot.slane %v6184_v58, 1  ;;  %v5698_v48 = vmax.f32 %v5666_v28, 0.0  ;;  %v5667_v39 = vadd.f32 %v13928_v9, %v5564_v29  ;;  %v6170_v47 = vshrl.u32 %v14088_v30, 16  ;;  %5948 = vst.msk [vmem:[#allocation3 + $0x121] sm:$0xff] %vm3191_vm9, %v5700_v63  ;;  %v5988_v5 = vld [vmem:[#allocation3 + $0xf0] sm:$0xff] }
 0x52b   : > { %v6174_v59 = vrot.slane %v6172_v14, 1  ;;  %v9432_v38 = vpack.c.bf16 %v5700_v63, %v5700_v63  ;;  %v5701_v35 = vmax.f32 %v5669_v31, 0.0  ;;  %v6179_v18 = vrot.slane %v6177_v46, 1  ;;  %v5985_v23 = vld [vmem:[#allocation3 + $0xd8] sm:$0xff] }
 0x52c   : > { %v6187_v3 = vor.u32 %v6186_v54, %v6182_v45  ;;  %v9430_v6 = vpack.c.bf16 %v5698_v48, %v5698_v48  ;;  %5946 = vst.msk [vmem:[#allocation3 + $0x109] sm:$0xff] %vm3191_vm9, %v5698_v48  ;;  %v5699_v56 = vmax.f32 %v5667_v39, 0.0  ;;  %v6191_v24 = vrot.slane %v6189_v41, 1 }
 0x52d   : > { %v6175_v27 = vor.u32 %v6174_v59, %v6170_v47  ;;  %v5989_v60 = vld [vmem:[#allocation3 + $0xf8] sm:$0xff]  ;;  %v5990_v36 = vld [vmem:[#allocation3 + $0x100] sm:$0x3]  ;;  %5861 = vst.msk [vmem:[%s13937_s21 + $0x58] sm:$0xf] %vm5838_vm13, %v9432_v38  ;;  %v9433_v15 = vpack.c.bf16 %v5701_v35, %v5701_v35  ;;  %v10563_v51 = vpop.f32.mrb[56].mxu1 }
 0x52e   : > { %5949 = vst.msk [vmem:[#allocation3 + $0x129] sm:$0xff] %vm3191_vm9, %v5701_v35  ;;  %v5986_v25 = vld [vmem:[#allocation3 + $0xe0] sm:$0xff]  ;;  %v5987_v40 = vld [vmem:[#allocation3 + $0xe8] sm:$0x3]  ;;  %v14118_v7 = vpack.c.bf16 %v5989_v60, %v5988_v5  ;;  %v14120_v21 = vpack.c.bf16 %v5990_v36, %v5990_v36  ;;  %v9431_v11 = vpack.c.bf16 %v5699_v56, %v5699_v56  ;;  %5947 = vst.msk [vmem:[#allocation3 + $0x111] sm:$0xff] %vm3191_vm9, %v5699_v56  ;;  %v5577_v58 = vpop.f32.mrb[57].mxu1 }
 0x52f   : > { %5859 = vst.msk [vmem:[%s13937_s21 + $0x50] sm:$0xf] %vm5838_vm13, %v9430_v6  ;;  %v14126_v0 = vsel %vm3407_vm11, %v6175_v27, %v6179_v18  ;;  %v14128_v13 = vpack.c.bf16 %v5986_v25, %v5985_v23  ;;  %v14130_v33 = vpack.c.bf16 %v5987_v40, %v5987_v40  ;;  %5862 = vst.msk [vmem:[%s13937_s21 + $0x5c] sm:$0xf] %vm5838_vm13, %v9433_v15  ;;  %v10564_v46 = vpop.f32.mrb[58].mxu1 }
 0x530   : > { %v5672_v32 = vadd.f32 %v10563_v51, %v13928_v9  ;;  %10586 = vmatmul.mubr.msk.bf16.gmra.mrb[44].mxu0 %vm3191_vm9, %v14126_v0  ;;  %v14138_v28 = vsel %vm3407_vm11, %v6187_v3, %v6191_v24  ;;  %v6208_v53 = vshll.u32 %v14118_v7, 16  ;;  %5860 = vst.msk [vmem:[%s13937_s21 + $0x54] sm:$0xf] %vm5838_vm13, %v9431_v11  ;;  %v5670_v14 = vadd.f32 %v13928_v9, %v5577_v58  ;;  %v5580_v41 = vpop.f32.mrb[59].mxu1 }
 0x531   : > { %10589 = vmatprep.mubr.msk.bf16.mxu0 %vm3191_vm9, %v14138_v28  ;;  %v6196_v45 = vshll.u32 %v14128_v13, 16  ;;  %v6201_v63 = vshll.u32 %v14130_v33, 16  ;;  %v6206_v31 = vshrl.u32 %v14118_v7, 16  ;;  %v5673_v54 = vadd.f32 %v10564_v46, %v13928_v9  ;;  %v5994_v36 = vld [vmem:[#allocation3 + $0x120] sm:$0xff] }
 0x532   : > { %v5704_v29 = vmax.f32 %v5672_v32, 0.0  ;;  %v6210_v48 = vrot.slane %v6208_v53, 1  ;;  %v6213_v39 = vshll.u32 %v14120_v21, 16  ;;  %v5702_v47 = vmax.f32 %v5670_v14, 0.0 }
 0x533   : > { %v5671_v59 = vadd.f32 %v13928_v9, %v5580_v41  ;;  %v6194_v38 = vshrl.u32 %v14128_v13, 16  ;;  %v6198_v35 = vrot.slane %v6196_v45, 1  ;;  %v5705_v6 = vmax.f32 %v5673_v54, 0.0  ;;  %v5991_v40 = vld [vmem:[#allocation3 + $0x108] sm:$0xff] }
 0x534   : > { %v9436_v3 = vpack.c.bf16 %v5704_v29, %v5704_v29  ;;  %5952 = vst.msk [vmem:[#allocation3 + $0x151] sm:$0xff] %vm3191_vm9, %v5704_v29  ;;  %v6211_v56 = vor.u32 %v6210_v48, %v6206_v31  ;;  %v9434_v27 = vpack.c.bf16 %v5702_v47, %v5702_v47  ;;  %5950 = vst.msk [vmem:[#allocation3 + $0x139] sm:$0xff] %vm3191_vm9, %v5702_v47  ;;  %v6203_v60 = vrot.slane %v6201_v63, 1 }
 0x535   : > { %v5703_v18 = vmax.f32 %v5671_v59, 0.0  ;;  %v6199_v5 = vor.u32 %v6198_v35, %v6194_v38  ;;  %v5995_v15 = vld [vmem:[#allocation3 + $0x128] sm:$0xff]  ;;  %v5996_v24 = vld [vmem:[#allocation3 + $0x130] sm:$0x3]  ;;  %v9437_v23 = vpack.c.bf16 %v5705_v6, %v5705_v6  ;;  %5953 = vst.msk [vmem:[#allocation3 + $0x159] sm:$0xff] %vm3191_vm9, %v5705_v6  ;;  %v6215_v25 = vrot.slane %v6213_v39, 1 }
 0x536   : > { %5865 = vst.msk [vmem:[%s13937_s21 + $0x68] sm:$0xf] %vm5838_vm13, %v9436_v3  ;;  %v5992_v11 = vld [vmem:[#allocation3 + $0x110] sm:$0xff]  ;;  %v5993_v51 = vld [vmem:[#allocation3 + $0x118] sm:$0x3]  ;;  %v14158_v32 = vpack.c.bf16 %v5995_v15, %v5994_v36  ;;  %v14160_v58 = vpack.c.bf16 %v5996_v24, %v5996_v24  ;;  %v10567_v14 = vpop.f32.mrb[60].mxu1 }
 0x537   : > { %5863 = vst.msk [vmem:[%s13937_s21 + $0x60] sm:$0xf] %vm5838_vm13, %v9434_v27  ;;  %v9435_v53 = vpack.c.bf16 %v5703_v18, %v5703_v18  ;;  %v14166_v46 = vsel %vm3407_vm11, %v6199_v5, %v6203_v60  ;;  %v14168_v45 = vpack.c.bf16 %v5992_v11, %v5991_v40  ;;  %v14170_v63 = vpack.c.bf16 %v5993_v51, %v5993_v51  ;;  %v5593_v29 = vpop.f32.mrb[61].mxu1 }
 0x538   : > { %5951 = vst.msk [vmem:[#allocation3 + $0x141] sm:$0xff] %vm3191_vm9, %v5703_v18  ;;  %v5676_v31 = vadd.f32 %v10567_v14, %v13928_v9  ;;  %10590 = vmatmul.mubr.msk.bf16.gmra.mrb[48].mxu0 %vm3191_vm9, %v14166_v46  ;;  %v14178_v54 = vsel %vm3407_vm11, %v6211_v56, %v6215_v25  ;;  %v6232_v41 = vshll.u32 %v14158_v32, 16  ;;  %v5674_v48 = vadd.f32 %v13928_v9, %v5593_v29  ;;  %v10568_v39 = vpop.f32.mrb[62].mxu1 }
 0x539   : > { %5866 = vst.msk [vmem:[%s13937_s21 + $0x6c] sm:$0xf] %vm5838_vm13, %v9437_v23  ;;  %5864 = vst.msk [vmem:[%s13937_s21 + $0x64] sm:$0xf] %vm5838_vm13, %v9435_v53  ;;  %10593 = vmatprep.mubr.msk.bf16.mxu0 %vm3191_vm9, %v14178_v54  ;;  %v6220_v47 = vshll.u32 %v14168_v45, 16  ;;  %v6225_v59 = vshll.u32 %v14170_v63, 16  ;;  %v5677_v3 = vadd.f32 %v10568_v39, %v13928_v9 }
 0x53a   : > { %v6230_v38 = vshrl.u32 %v14158_v32, 16  ;;  %v5708_v35 = vmax.f32 %v5676_v31, 0.0  ;;  %v5596_v6 = vpop.f32.mrb[63].mxu1  ;;  %v6234_v56 = vrot.slane %v6232_v41, 1  ;;  %v6237_v27 = vshll.u32 %v14160_v58, 16 }
 0x53b   : > { %v5706_v18 = vmax.f32 %v5674_v48, 0.0  ;;  %v5675_v5 = vadd.f32 %v13928_v9, %v5596_v6  ;;  %v6218_v60 = vshrl.u32 %v14168_v45, 16  ;;  %v6222_v36 = vrot.slane %v6220_v47, 1  ;;  %v6000_v53 = vld [vmem:[#allocation3 + $0x150] sm:$0xff]  ;;  %v5997_v41 = vld [vmem:[#allocation3 + $0x138] sm:$0xff] }
 0x53c   : > { %v9440_v15 = vpack.c.bf16 %v5708_v35, %v5708_v35  ;;  %5956 = vst.msk [vmem:[#allocation3 + $0x181] sm:$0xff] %vm3191_vm9, %v5708_v35  ;;  %v5709_v24 = vmax.f32 %v5677_v3, 0.0  ;;  %v6235_v23 = vor.u32 %v6234_v56, %v6230_v38  ;;  %v6227_v51 = vrot.slane %v6225_v59, 1  ;;  %v6001_v14 = vld [vmem:[#allocation3 + $0x158] sm:$0xff]  ;;  %v6002_v31 = vld [vmem:[#allocation3 + $0x160] sm:$0x3] }
 0x53d   : > { %v9438_v25 = vpack.c.bf16 %v5706_v18, %v5706_v18  ;;  %5954 = vst.msk [vmem:[#allocation3 + $0x169] sm:$0xff] %vm3191_vm9, %v5706_v18  ;;  %v5707_v40 = vmax.f32 %v5675_v5, 0.0  ;;  %v6223_v11 = vor.u32 %v6222_v36, %v6218_v60  ;;  %v6239_v29 = vrot.slane %v6237_v27, 1 }
 0x53e   : > { %5869 = vst.msk [vmem:[%s13937_s21 + $0x78] sm:$0xf] %vm5838_vm13, %v9440_v15  ;;  %v9441_v9 = vpack.c.bf16 %v5709_v24, %v5709_v24  ;;  %v14198_v47 = vpack.c.bf16 %v6001_v14, %v6000_v53  ;;  %v14200_v38 = vpack.c.bf16 %v6002_v31, %v6002_v31 }
 0x53f   : > { %5957 = vst.msk [vmem:[#allocation3 + $0x189] sm:$0xff] %vm3191_vm9, %v5709_v24  ;;  %v5998_v48 = vld [vmem:[#allocation3 + $0x140] sm:$0xff]  ;;  %v5999_v39 = vld [vmem:[#allocation3 + $0x148] sm:$0x3]  ;;  %v9439_v59 = vpack.c.bf16 %v5707_v40, %v5707_v40  ;;  %5955 = vst.msk [vmem:[#allocation3 + $0x171] sm:$0xff] %vm3191_vm9, %v5707_v40  ;;  %v14206_v35 = vsel %vm3407_vm11, %v6223_v11, %v6227_v51  ;;  %v14217_v56 = vsel %vm3407_vm11, %v6235_v23, %v6239_v29 }
 0x540   : > { %5867 = vst.msk [vmem:[%s13937_s21 + $0x70] sm:$0xf] %vm5838_vm13, %v9438_v25  ;;  %v14208_v3 = vpack.c.bf16 %v5998_v48, %v5997_v41  ;;  %v14210_v6 = vpack.c.bf16 %v5999_v39, %v5999_v39  ;;  %5870 = vst.msk [vmem:[%s13937_s21 + $0x7c] sm:$0xf] %vm5838_vm13, %v9441_v9  ;;  %10594 = vmatmul.mubr.msk.bf16.gmra.mrb[52].mxu0 %vm3191_vm9, %v14206_v35  ;;  %v6256_v27 = vshll.u32 %v14198_v47, 16  ;;  %v6254_v60 = vshrl.u32 %v14198_v47, 16 }
 0x541   : > { %5868 = vst.msk [vmem:[%s13937_s21 + $0x74] sm:$0xf] %vm5838_vm13, %v9439_v59  ;;  %10597 = vmatprep.mubr.msk.bf16.mxu0 %vm3191_vm9, %v14217_v56  ;;  %v6261_v15 = vshll.u32 %v14200_v38, 16 }
 0x542   : > { %v6244_v18 = vshll.u32 %v14208_v3, 16  ;;  %v6249_v5 = vshll.u32 %v14210_v6, 16  ;;  %v6258_v36 = vrot.slane %v6256_v27, 1  ;;  %v6242_v24 = vshrl.u32 %v14208_v3, 16 }
 0x543   : > { %v6263_v51 = vrot.slane %v6261_v15, 1  ;;  %v11794_v15 = vld [vmem:[%s14885_s5 + $0x28] sm:$0xff]  }
 0x544   : > { %v6246_v23 = vrot.slane %v6244_v18, 1  ;;  %v6259_v25 = vor.u32 %v6258_v36, %v6254_v60  ;;  %v6251_v11 = vrot.slane %v6249_v5, 1  ;;  %v6003_v53 = vld [vmem:[#allocation3 + $0x168] sm:$0xff] }
 0x546   : > { %v6247_v40 = vor.u32 %v6246_v23, %v6242_v24  ;;  %v6004_v14 = vld [vmem:[#allocation3 + $0x170] sm:$0xff]  ;;  %v6005_v31 = vld [vmem:[#allocation3 + $0x178] sm:$0x3]  ;;  %v14239_v48 = vsel %vm3407_vm11, %v6259_v25, %v6263_v51  ;;  %v11795_v24 = vld [vmem:[%s14885_s5 + $0x30] sm:$0xff]   ;;  %v6736_v23 = vrot.slane %v13909_v43, 1  ;;  %v6741_v51 = vrot.slane %v13958_v17, 1 }
 0x547   : > { %v14232_v29 = vpack.c.bf16 %v6004_v14, %v6003_v53  ;;  %v14234_v41 = vpack.c.bf16 %v6005_v31, %v6005_v31  ;;  %v6742_v53 = vrot.slane %v13960_v4, 1  ;;  %v11797_v4 = vld [vmem:[%s14885_s5 + $0x40] sm:$0xff]   ;;  %v6745_v31 = vrot.slane %v14003_v12, 1 }
 0x548   : > { %v14230_v9 = vsel %vm3407_vm11, %v6247_v40, %v6251_v11  ;;  %v6738_v40 = vrot.slane %v13965_v62, 1  ;;  %v6739_v11 = vrot.slane %v13967_v26, 1  ;;  %v6744_v26 = vrot.slane %v14001_v8, 1 }
 0x549   : > { %10598 = vmatmul.mubr.msk.bf16.gmra.mrb[56].mxu0 %vm3191_vm9, %v14230_v9  ;;  %v6268_v39 = vshll.u32 %v14232_v29, 16  ;;  %v6273_v59 = vshll.u32 %v14234_v41, 16  ;;  %v6266_v27 = vshrl.u32 %v14232_v29, 16  ;;  %v14307_v14 = vsel %vm4058_vm12, %v6741_v51, %v6742_v53 }
 0x54a   : > { %10601 = vmatprep.mubr.msk.bf16.mxu0 %vm3191_vm9, %v14239_v48  ;;  %v14302_v43 = vsel %vm4058_vm12, %v6738_v40, %v6739_v11  ;;  %v6750_v12 = vrot.slane %v14048_v20, 1  ;;  %v6762_v11 = vrot.slane %v14128_v13, 1  ;;  %v6765_v51 = vrot.slane %v14118_v7, 1 }
 0x54b   : > { %v6270_v18 = vrot.slane %v6268_v39, 1  ;;  %v6275_v60 = vrot.slane %v6273_v59, 1  ;;  %v6747_v39 = vrot.slane %v13991_v19, 1  ;;  %v6748_v59 = vrot.slane %v13993_v2, 1 }
 0x54c   : > { %v6753_v2 = vrot.slane %v14037_v57, 1 }
 0x54d   : > { %v6271_v5 = vor.u32 %v6270_v18, %v6266_v27  ;;  %v14319_v27 = vsel %vm4058_vm12, %v6744_v26, %v6745_v31  ;;  %v14324_v18 = vsel %vm4058_vm12, %v6747_v39, %v6748_v59  ;;  %v6768_v26 = vrot.slane %v14168_v45, 1 }
 0x54e   : > { %v6771_v31 = vrot.slane %v14158_v32, 1 }
 0x54f   : > { %v14247_v36 = vsel %vm3407_vm11, %v6271_v5, %v6275_v60  ;;  %v6751_v5 = vrot.slane %v14050_v10, 1  ;;  %v6754_v60 = vrot.slane %v14039_v50, 1  ;;  %v6757_v10 = vrot.slane %v14090_v1, 1 }
 0x550   : > { %v6760_v50 = vrot.slane %v14080_v34, 1  ;;  %v6763_v1 = vrot.slane %v14130_v33, 1  ;;  %v6766_v34 = vrot.slane %v14120_v21, 1  ;;  %v6769_v33 = vrot.slane %v14170_v63, 1 }
 0x551   : > { %10602 = vmatmul.mubr.msk.bf16.gmra.mrb[60].mxu0 %vm3191_vm9, %v14247_v36  ;;  %v6772_v21 = vrot.slane %v14160_v58, 1  ;;  %v6775_v63 = vrot.slane %v14210_v6, 1  ;;  %v6778_v58 = vrot.slane %v14200_v38, 1  ;;  %v6781_v6 = vrot.slane %v14234_v41, 1  ;;  %v11798_v38 = vld [vmem:[%s14885_s5 + $0x48] sm:$0xff]   ;;  %v11799_v41 = vld [vmem:[%s14885_s5 + $0x50] sm:$0xff]  }
 0x552   : > { %10609 = vmatprep.mubr.msk.bf16.mxu0 %vm3191_vm9, %v13907_v61  ;;  %v14361_v53 = vsel %vm4058_vm12, %v6762_v11, %v6763_v1  ;;  %v14375_v39 = vsel %vm4058_vm12, %v6768_v26, %v6769_v33  ;;  %v11801_v11 = vld [vmem:[%s14885_s5 + $0x60] sm:$0xff]  }
 0x553   : > { %v14380_v59 = vsel %vm4058_vm12, %v6771_v31, %v6772_v21 }
 0x559   : > { %10610 = vmatmul.mubr.msk.bf16.vlgmr.msra.gmra.mrb[32].mxu0 %vm3191_vm9, %v13965_v62 }
 0x55a   : > { %10642 = vmatpush3.bf16.msra.mxu0 %v14028_v16  ;;  %10613 = vmatprep.mubr.msk.bf16.mxu0 %vm3191_vm9, %v13958_v17  ;;  %v6735_v16 = vrot.slane %v13907_v61, 1  ;;  %v11796_v61 = vld [vmem:[%s14885_s5 + $0x38] sm:$0xff]  }
 0x55b   : > { %10643 = vmatprep.subr.bf16.mxu0 %v11794_v15 }
 0x55c   : > { %v6737_v25 = vsel %vm4058_vm12, %v6735_v16, %v6736_v23  ;;  %v6756_v16 = vrot.slane %v14088_v30, 1  ;;  %v6759_v23 = vrot.slane %v14078_v37, 1 }
 0x55e   : > { %10644 = vmatpush3.bf16.msra.mxu0 %v11794_v15  ;;  %v14333_v15 = vsel %vm4058_vm12, %v6750_v12, %v6751_v5  ;;  %v14352_v40 = vsel %vm4058_vm12, %v6759_v23, %v6760_v50  ;;  %v6774_v12 = vrot.slane %v14208_v3, 1  ;;  %v6777_v5 = vrot.slane %v14198_v47, 1  ;;  %v11800_v50 = vld [vmem:[%s14885_s5 + $0x58] sm:$0xff]  }
 0x55f   : > { %10677 = vmatprep.subr.bf16.mxu0 %v11795_v24 }
 0x561   : > { %10614 = vmatmul.mubr.msk.bf16.gmra.mrb[36].mxu0 %vm3191_vm9, %v14001_v8 }
 0x562   : > { %10617 = vmatprep.mubr.msk.bf16.mxu0 %vm3191_vm9, %v13991_v19 }
 0x569   : > { %10618 = vmatmul.mubr.msk.bf16.gmra.mrb[40].mxu0 %vm3191_vm9, %v14048_v20 }
 0x56a   : > { %10621 = vmatprep.mubr.msk.bf16.mxu0 %vm3191_vm9, %v14037_v57 }
 0x571   : > { %10622 = vmatmul.mubr.msk.bf16.gmra.mrb[44].mxu0 %vm3191_vm9, %v14088_v30 }
 0x572   : > { %10625 = vmatprep.mubr.msk.bf16.mxu0 %vm3191_vm9, %v14078_v37 }
 0x579   : > { %10626 = vmatmul.mubr.msk.bf16.gmra.mrb[48].mxu0 %vm3191_vm9, %v14128_v13 }
 0x57a   : > { %10629 = vmatprep.mubr.msk.bf16.mxu0 %vm3191_vm9, %v14118_v7 }
 0x581   : > { %10630 = vmatmul.mubr.msk.bf16.gmra.mrb[52].mxu0 %vm3191_vm9, %v14168_v45 }
 0x582   : > { %10633 = vmatprep.mubr.msk.bf16.mxu0 %vm3191_vm9, %v14158_v32 }
 0x589   : > { %10634 = vmatmul.mubr.msk.bf16.gmra.mrb[56].mxu0 %vm3191_vm9, %v14208_v3 }
 0x58a   : > { %10637 = vmatprep.mubr.msk.bf16.mxu0 %vm3191_vm9, %v14198_v47 }
 0x591   : > { %10638 = vmatmul.mubr.msk.bf16.gmra.mrb[60].mxu0 %vm3191_vm9, %v14232_v29 }
 0x592   : > { %10645 = vmatprep.mubr.msk.bf16.mxu0 %vm3191_vm9, %v6737_v25  ;;  %v14347_v25 = vsel %vm4058_vm12, %v6756_v16, %v6757_v10  ;;  %v6780_v16 = vrot.slane %v14232_v29, 1 }
 0x594   : > { %v14401_v10 = vsel %vm4058_vm12, %v6780_v16, %v6781_v6  ;;  %v11804_v6 = vld [vmem:[%s14885_s5 + $0x78] sm:$0xff]  }
 0x599   : > { %10646 = vmatmul.mubr.msk.bf16.vlgmr.msra.gmra.mrb[32].mxu0 %vm3191_vm9, %v14302_v43 }
 0x59a   : > { %10678 = vmatpush3.bf16.msra.mxu0 %v11795_v24  ;;  %10649 = vmatprep.mubr.msk.bf16.mxu0 %vm3191_vm9, %v14307_v14  ;;  %v14338_v24 = vsel %vm4058_vm12, %v6753_v2, %v6754_v60  ;;  %v14389_v2 = vsel %vm4058_vm12, %v6774_v12, %v6775_v63  ;;  %v14394_v60 = vsel %vm4058_vm12, %v6777_v5, %v6778_v58  ;;  %v11802_v63 = vld [vmem:[%s14885_s5 + $0x68] sm:$0xff]   ;;  %v11803_v5 = vld [vmem:[%s14885_s5 + $0x70] sm:$0xff]  }
 0x59b   : > { %10679 = vmatprep.subr.bf16.mxu0 %v11796_v61 }
 0x59e   : > { %10680 = vmatpush3.bf16.msra.mxu0 %v11796_v61  ;;  %v14366_v61 = vsel %vm4058_vm12, %v6765_v51, %v6766_v34 }
 0x59f   : > { %10713 = vmatprep.subr.bf16.mxu0 %v11797_v4 }
 0x5a1   : > { %10650 = vmatmul.mubr.msk.bf16.gmra.mrb[36].mxu0 %vm3191_vm9, %v14319_v27 }
 0x5a2   : > { %10653 = vmatprep.mubr.msk.bf16.mxu0 %vm3191_vm9, %v14324_v18 }
 0x5a9   : > { %10654 = vmatmul.mubr.msk.bf16.gmra.mrb[40].mxu0 %vm3191_vm9, %v14333_v15 }
 0x5aa   : > { %10657 = vmatprep.mubr.msk.bf16.mxu0 %vm3191_vm9, %v14338_v24 }
 0x5b1   : > { %10658 = vmatmul.mubr.msk.bf16.gmra.mrb[44].mxu0 %vm3191_vm9, %v14347_v25 }
 0x5b2   : > { %10661 = vmatprep.mubr.msk.bf16.mxu0 %vm3191_vm9, %v14352_v40 }
 0x5b9   : > { %10662 = vmatmul.mubr.msk.bf16.gmra.mrb[48].mxu0 %vm3191_vm9, %v14361_v53 }
 0x5ba   : > { %10665 = vmatprep.mubr.msk.bf16.mxu0 %vm3191_vm9, %v14366_v61 }
 0x5c1   : > { %10666 = vmatmul.mubr.msk.bf16.gmra.mrb[52].mxu0 %vm3191_vm9, %v14375_v39 }
 0x5c2   : > { %10669 = vmatprep.mubr.msk.bf16.mxu0 %vm3191_vm9, %v14380_v59 }
 0x5c9   : > { %10670 = vmatmul.mubr.msk.bf16.gmra.mrb[56].mxu0 %vm3191_vm9, %v14389_v2 }
 0x5ca   : > { %10673 = vmatprep.mubr.msk.bf16.mxu0 %vm3191_vm9, %v14394_v60 }
 0x5d1   : > { %10674 = vmatmul.mubr.msk.bf16.gmra.mrb[60].mxu0 %vm3191_vm9, %v14401_v10 }
 0x5d2   : > { %10681 = vmatprep.mubr.msk.bf16.mxu0 %vm3191_vm9, %v13965_v62  ;;  %v6007_v62 = vld [vmem:[#allocation3 + $0x188] sm:$0xff] }
 0x5d9   : > { %10682 = vmatmul.mubr.msk.bf16.vlgmr.msra.gmra.mrb[32].mxu0 %vm3191_vm9, %v13958_v17 }
 0x5da   : > { %10714 = vmatpush3.bf16.msra.mxu0 %v11797_v4  ;;  %10685 = vmatprep.mubr.msk.bf16.mxu0 %vm3191_vm9, %v14001_v8  ;;  %v6006_v4 = vld [vmem:[#allocation3 + $0x180] sm:$0xff] }
 0x5db   : > { %10715 = vmatprep.subr.bf16.mxu0 %v11798_v38  ;;  %v14441_v23 = vpack.c.bf16 %v6007_v62, %v6006_v4 }
 0x5dd   : > { %v7246_v1 = vshll.u32 %v14441_v23, 16  ;;  %v7244_v26 = vshrl.u32 %v14441_v23, 16 }
 0x5de   : > { %10716 = vmatpush3.bf16.msra.mxu0 %v11798_v38  ;;  %v11805_v38 = vld [vmem:[%s14885_s5 + $0x80] sm:$0xff]  }
 0x5df   : > { %10749 = vmatprep.subr.bf16.mxu0 %v11799_v41  ;;  %v7248_v34 = vrot.slane %v7246_v1, 1 }
 0x5e1   : > { %10686 = vmatmul.mubr.msk.bf16.gmra.mrb[36].mxu0 %vm3191_vm9, %v13991_v19  ;;  %v7249_v31 = vor.u32 %v7248_v34, %v7244_v26 }
 0x5e2   : > { %10689 = vmatprep.mubr.msk.bf16.mxu0 %vm3191_vm9, %v14048_v20 }
 0x5e9   : > { %10690 = vmatmul.mubr.msk.bf16.gmra.mrb[40].mxu0 %vm3191_vm9, %v14037_v57 }
 0x5ea   : > { %10693 = vmatprep.mubr.msk.bf16.mxu0 %vm3191_vm9, %v14088_v30 }
 0x5f1   : > { %10694 = vmatmul.mubr.msk.bf16.gmra.mrb[44].mxu0 %vm3191_vm9, %v14078_v37 }
 0x5f2   : > { %10697 = vmatprep.mubr.msk.bf16.mxu0 %vm3191_vm9, %v14128_v13 }
 0x5f9   : > { %10698 = vmatmul.mubr.msk.bf16.gmra.mrb[48].mxu0 %vm3191_vm9, %v14118_v7 }
 0x5fa   : > { %10701 = vmatprep.mubr.msk.bf16.mxu0 %vm3191_vm9, %v14168_v45 }
 0x601   : > { %10702 = vmatmul.mubr.msk.bf16.gmra.mrb[52].mxu0 %vm3191_vm9, %v14158_v32 }
 0x602   : > { %10705 = vmatprep.mubr.msk.bf16.mxu0 %vm3191_vm9, %v14208_v3 }
 0x609   : > { %10706 = vmatmul.mubr.msk.bf16.gmra.mrb[56].mxu0 %vm3191_vm9, %v14198_v47 }
 0x60a   : > { %10709 = vmatprep.mubr.msk.bf16.mxu0 %vm3191_vm9, %v14232_v29 }
 0x611   : > { %10710 = vmatmul.mubr.msk.bf16.gmra.mrb[60].mxu0 %vm3191_vm9, %v14441_v23 }
 0x612   : > { %10717 = vmatprep.mubr.msk.bf16.mxu0 %vm3191_vm9, %v13999_v44  ;;  %v6008_v44 = vld [vmem:[#allocation3 + $0x190] sm:$0x3] }
 0x613   : > { %v6045_v51 = vpack.c.bf16 %v6008_v44, %v6008_v44 }
 0x615   : > { %v7251_v33 = vshll.u32 %v6045_v51, 16  ;;  %v7466_v58 = vrot.slane %v6045_v51, 1 }
 0x617   : > { %v7253_v21 = vrot.slane %v7251_v33, 1 }
 0x619   : > { %10718 = vmatmul.mubr.msk.bf16.vlgmr.msra.gmra.mrb[32].mxu0 %vm3191_vm9, %v14011_v42  ;;  %v14484_v12 = vsel %vm3407_vm11, %v7249_v31, %v7253_v21 }
 0x61a   : > { %10750 = vmatpush3.bf16.msra.mxu0 %v11799_v41  ;;  %10721 = vmatprep.mubr.msk.bf16.mxu0 %vm3191_vm9, %v14046_v52 }
 0x61b   : > { %10751 = vmatprep.subr.bf16.mxu0 %v11800_v50 }
 0x61e   : > { %10752 = vmatpush3.bf16.msra.mxu0 %v11800_v50 }
 0x61f   : > { %10785 = vmatprep.subr.bf16.mxu0 %v11801_v11 }
 0x621   : > { %10722 = vmatmul.mubr.msk.bf16.gmra.mrb[36].mxu0 %vm3191_vm9, %v14058_v55 }
 0x622   : > { %10725 = vmatprep.mubr.msk.bf16.mxu0 %vm3191_vm9, %v14086_v49 }
 0x629   : > { %10726 = vmatmul.mubr.msk.bf16.gmra.mrb[40].mxu0 %vm3191_vm9, %v14098_v22 }
 0x62a   : > { %10729 = vmatprep.mubr.msk.bf16.mxu0 %vm3191_vm9, %v14126_v0 }
 0x631   : > { %10730 = vmatmul.mubr.msk.bf16.gmra.mrb[44].mxu0 %vm3191_vm9, %v14138_v28 }
 0x632   : > { %10733 = vmatprep.mubr.msk.bf16.mxu0 %vm3191_vm9, %v14166_v46 }
 0x639   : > { %10734 = vmatmul.mubr.msk.bf16.gmra.mrb[48].mxu0 %vm3191_vm9, %v14178_v54 }
 0x63a   : > { %10737 = vmatprep.mubr.msk.bf16.mxu0 %vm3191_vm9, %v14206_v35 }
 0x641   : > { %10738 = vmatmul.mubr.msk.bf16.gmra.mrb[52].mxu0 %vm3191_vm9, %v14217_v56 }
 0x642   : > { %10741 = vmatprep.mubr.msk.bf16.mxu0 %vm3191_vm9, %v14230_v9 }
 0x649   : > { %10742 = vmatmul.mubr.msk.bf16.gmra.mrb[56].mxu0 %vm3191_vm9, %v14239_v48 }
 0x64a   : > { %10745 = vmatprep.mubr.msk.bf16.mxu0 %vm3191_vm9, %v14247_v36 }
 0x651   : > { %10746 = vmatmul.mubr.msk.bf16.gmra.mrb[60].mxu0 %vm3191_vm9, %v14484_v12 }
 0x652   : > { %10753 = vmatprep.mubr.msk.bf16.mxu0 %vm3191_vm9, %v14302_v43  ;;  %v7465_v43 = vrot.slane %v14441_v23, 1 }
 0x654   : > { %v14526_v16 = vsel %vm4058_vm12, %v7465_v43, %v7466_v58 }
 0x659   : > { %10754 = vmatmul.mubr.msk.bf16.vlgmr.msra.gmra.mrb[32].mxu0 %vm3191_vm9, %v14307_v14 }
 0x65a   : > { %10786 = vmatpush3.bf16.msra.mxu0 %v11801_v11  ;;  %10757 = vmatprep.mubr.msk.bf16.mxu0 %vm3191_vm9, %v14319_v27 }
 0x65b   : > { %10787 = vmatprep.subr.bf16.mxu0 %v11802_v63 }
 0x65e   : > { %10788 = vmatpush3.bf16.msra.mxu0 %v11802_v63 }
 0x65f   : > { %10821 = vmatprep.subr.bf16.mxu0 %v11803_v5 }
 0x661   : > { %10758 = vmatmul.mubr.msk.bf16.gmra.mrb[36].mxu0 %vm3191_vm9, %v14324_v18 }
 0x662   : > { %10761 = vmatprep.mubr.msk.bf16.mxu0 %vm3191_vm9, %v14333_v15 }
 0x669   : > { %10762 = vmatmul.mubr.msk.bf16.gmra.mrb[40].mxu0 %vm3191_vm9, %v14338_v24 }
 0x66a   : > { %10765 = vmatprep.mubr.msk.bf16.mxu0 %vm3191_vm9, %v14347_v25 }
 0x671   : > { %10766 = vmatmul.mubr.msk.bf16.gmra.mrb[44].mxu0 %vm3191_vm9, %v14352_v40 }
 0x672   : > { %10769 = vmatprep.mubr.msk.bf16.mxu0 %vm3191_vm9, %v14361_v53 }
 0x679   : > { %10770 = vmatmul.mubr.msk.bf16.gmra.mrb[48].mxu0 %vm3191_vm9, %v14366_v61 }
 0x67a   : > { %10773 = vmatprep.mubr.msk.bf16.mxu0 %vm3191_vm9, %v14375_v39 }
 0x681   : > { %10774 = vmatmul.mubr.msk.bf16.gmra.mrb[52].mxu0 %vm3191_vm9, %v14380_v59 }
 0x682   : > { %10777 = vmatprep.mubr.msk.bf16.mxu0 %vm3191_vm9, %v14389_v2 }
 0x689   : > { %10778 = vmatmul.mubr.msk.bf16.gmra.mrb[56].mxu0 %vm3191_vm9, %v14394_v60 }
 0x68a   : > { %10781 = vmatprep.mubr.msk.bf16.mxu0 %vm3191_vm9, %v14401_v10 }
 0x691   : > { %10782 = vmatmul.mubr.msk.bf16.gmra.mrb[60].mxu0 %vm3191_vm9, %v14526_v16 }
 0x692   : > { %10789 = vmatprep.mubr.msk.bf16.mxu0 %vm3191_vm9, %v13958_v17  ;;  %v6009_v17 = vld [vmem:[#allocation3 + $0x198] sm:$0xff] }
 0x699   : > { %10790 = vmatmul.mubr.msk.bf16.vlgmr.msra.gmra.mrb[32].mxu0 %vm3191_vm9, %v14001_v8 }
 0x69a   : > { %10822 = vmatpush3.bf16.msra.mxu0 %v11803_v5  ;;  %10793 = vmatprep.mubr.msk.bf16.mxu0 %vm3191_vm9, %v13991_v19  ;;  %v6010_v19 = vld [vmem:[#allocation3 + $0x1a0] sm:$0xff] }
 0x69b   : > { %10823 = vmatprep.subr.bf16.mxu0 %v11804_v6  ;;  %v6046_v8 = vpack.c.bf16 %v6010_v19, %v6009_v17 }
 0x69e   : > { %10824 = vmatpush3.bf16.msra.mxu0 %v11804_v6 }
 0x69f   : > { %10857 = vmatprep.subr.bf16.mxu0 %v11805_v38 }
 0x6a1   : > { %10794 = vmatmul.mubr.msk.bf16.gmra.mrb[36].mxu0 %vm3191_vm9, %v14048_v20  ;;  %v11808_v20 = vld [vmem:[%s14887_s7 + $0x8] sm:$0xff]  }
 0x6a2   : > { %10797 = vmatprep.mubr.msk.bf16.mxu0 %vm3191_vm9, %v14037_v57  ;;  %v11807_v57 = vld [vmem:[%s14887_s7] sm:$0xff]  }
 0x6a3   : > { %10893 = vmatprep.subr.bf16.mxu1 %v11807_v57 }
 0x6a4   : > { %10894 = vmatpush3.bf16.msra.mxu1 %v11807_v57 }
 0x6a5   : > { %10895 = vmatprep.subr.bf16.mxu1 %v11808_v20 }
 0x6a8   : > { %10896 = vmatpush3.bf16.msra.mxu1 %v11808_v20 }
 0x6a9   : > { %10798 = vmatmul.mubr.msk.bf16.gmra.mrb[40].mxu0 %vm3191_vm9, %v14088_v30 }
 0x6aa   : > { %10801 = vmatprep.mubr.msk.bf16.mxu0 %vm3191_vm9, %v14078_v37  ;;  %v11806_v37 = vld [vmem:[%s14885_s5 + $0x88] sm:$0xff]  }
 0x6b1   : > { %10802 = vmatmul.mubr.msk.bf16.gmra.mrb[44].mxu0 %vm3191_vm9, %v14128_v13 }
 0x6b2   : > { %10805 = vmatprep.mubr.msk.bf16.mxu0 %vm3191_vm9, %v14118_v7 }
 0x6b9   : > { %10806 = vmatmul.mubr.msk.bf16.gmra.mrb[48].mxu0 %vm3191_vm9, %v14168_v45  ;;  %v14643_v45 = vld [vmem:[%s14886_s6] ss:$0 sm:$0xff] }
 0x6ba   : > { %10809 = vmatprep.mubr.msk.bf16.mxu0 %vm3191_vm9, %v14158_v32 }
 0x6c1   : > { %10810 = vmatmul.mubr.msk.bf16.gmra.mrb[52].mxu0 %vm3191_vm9, %v14208_v3 }
 0x6c2   : > { %10813 = vmatprep.mubr.msk.bf16.mxu0 %vm3191_vm9, %v14198_v47 }
 0x6c9   : > { %10814 = vmatmul.mubr.msk.bf16.gmra.mrb[56].mxu0 %vm3191_vm9, %v14232_v29 }
 0x6ca   : > { %10817 = vmatprep.mubr.msk.bf16.mxu0 %vm3191_vm9, %v14441_v23 }
 0x6d1   : > { %10818 = vmatmul.mubr.msk.bf16.gmra.mrb[60].mxu0 %vm3191_vm9, %v6046_v8 }
 0x6d2   : > { %10825 = vmatprep.mubr.msk.bf16.mxu0 %vm3191_vm9, %v14011_v42  ;;  %v6011_v42 = vld [vmem:[#allocation3 + $0x1a8] sm:$0x3] }
 0x6d9   : > { %10826 = vmatmul.mubr.msk.bf16.vlgmr.msra.gmra.mrb[32].mxu0 %vm3191_vm9, %v14046_v52  ;;  %v6047_v52 = vpack.c.bf16 %v6011_v42, %v6011_v42 }
 0x6da   : > { %10858 = vmatpush3.bf16.msra.mxu0 %v11805_v38  ;;  %10829 = vmatprep.mubr.msk.bf16.mxu0 %vm3191_vm9, %v14058_v55  ;;  %v7886_v55 = vshll.u32 %v6046_v8, 16 }
 0x6db   : > { %10859 = vmatprep.subr.bf16.mxu0 %v11806_v37  ;;  %v8106_v32 = vrot.slane %v6047_v52, 1 }
 0x6dc   : > { %v7888_v30 = vrot.slane %v7886_v55, 1 }
 0x6de   : > { %10860 = vmatpush3.bf16.msra.mxu0 %v11806_v37 }
 0x6e1   : > { %10830 = vmatmul.mubr.msk.bf16.gmra.mrb[36].mxu0 %vm3191_vm9, %v14086_v49  ;;  %v7884_v49 = vshrl.u32 %v6046_v8, 16 }
 0x6e2   : > { %10833 = vmatprep.mubr.msk.bf16.mxu0 %vm3191_vm9, %v14098_v22  ;;  %v7891_v22 = vshll.u32 %v6047_v52, 16 }
 0x6e3   : > { %v7889_v7 = vor.u32 %v7888_v30, %v7884_v49 }
 0x6e9   : > { %10834 = vmatmul.mubr.msk.bf16.gmra.mrb[40].mxu0 %vm3191_vm9, %v14126_v0  ;;  %v7893_v0 = vrot.slane %v7891_v22, 1 }
 0x6ea   : > { %10837 = vmatprep.mubr.msk.bf16.mxu0 %vm3191_vm9, %v14138_v28  ;;  %v8105_v28 = vrot.slane %v6046_v8, 1 }
 0x6eb   : > { %v7894_v13 = vsel %vm3407_vm11, %v7889_v7, %v7893_v0 }
 0x6f1   : > { %10838 = vmatmul.mubr.msk.bf16.gmra.mrb[44].mxu0 %vm3191_vm9, %v14166_v46  ;;  %v8107_v46 = vsel %vm4058_vm12, %v8105_v28, %v8106_v32 }
 0x6f2   : > { %10841 = vmatprep.mubr.msk.bf16.mxu0 %vm3191_vm9, %v14178_v54 }
 0x6f9   : > { %10842 = vmatmul.mubr.msk.bf16.gmra.mrb[48].mxu0 %vm3191_vm9, %v14206_v35 }
 0x6fa   : > { %10845 = vmatprep.mubr.msk.bf16.mxu0 %vm3191_vm9, %v14217_v56 }
 0x701   : > { %10846 = vmatmul.mubr.msk.bf16.gmra.mrb[52].mxu0 %vm3191_vm9, %v14230_v9 }
 0x702   : > { %10849 = vmatprep.mubr.msk.bf16.mxu0 %vm3191_vm9, %v14239_v48 }
 0x709   : > { %10850 = vmatmul.mubr.msk.bf16.gmra.mrb[56].mxu0 %vm3191_vm9, %v14247_v36 }
 0x70a   : > { %10853 = vmatprep.mubr.msk.bf16.mxu0 %vm3191_vm9, %v14484_v12 }
 0x711   : > { %10854 = vmatmul.mubr.msk.bf16.gmra.mrb[60].mxu0 %vm3191_vm9, %v7894_v13 }
 0x712   : > { %10861 = vmatprep.mubr.msk.bf16.mxu0 %vm3191_vm9, %v14307_v14 }
 0x719   : > { %10862 = vmatmul.mubr.msk.bf16.vlgmr.msra.gmra.mrb[32].mxu0 %vm3191_vm9, %v14319_v27 }
 0x71a   : > { %10865 = vmatprep.mubr.msk.bf16.mxu0 %vm3191_vm9, %v14324_v18 }
 0x721   : > { %10866 = vmatmul.mubr.msk.bf16.gmra.mrb[36].mxu0 %vm3191_vm9, %v14333_v15 }
 0x722   : > { %10869 = vmatprep.mubr.msk.bf16.mxu0 %vm3191_vm9, %v14338_v24 }
 0x729   : > { %10870 = vmatmul.mubr.msk.bf16.gmra.mrb[40].mxu0 %vm3191_vm9, %v14347_v25 }
 0x72a   : > { %10873 = vmatprep.mubr.msk.bf16.mxu0 %vm3191_vm9, %v14352_v40 }
 0x731   : > { %10874 = vmatmul.mubr.msk.bf16.gmra.mrb[44].mxu0 %vm3191_vm9, %v14361_v53 }
 0x732   : > { %10877 = vmatprep.mubr.msk.bf16.mxu0 %vm3191_vm9, %v14366_v61 }
 0x739   : > { %10878 = vmatmul.mubr.msk.bf16.gmra.mrb[48].mxu0 %vm3191_vm9, %v14375_v39 }
 0x73a   : > { %10881 = vmatprep.mubr.msk.bf16.mxu0 %vm3191_vm9, %v14380_v59 }
 0x741   : > { %10882 = vmatmul.mubr.msk.bf16.gmra.mrb[52].mxu0 %vm3191_vm9, %v14389_v2 }
 0x742   : > { %10885 = vmatprep.mubr.msk.bf16.mxu0 %vm3191_vm9, %v14394_v60 }
 0x749   : > { %10886 = vmatmul.mubr.msk.bf16.gmra.mrb[56].mxu0 %vm3191_vm9, %v14401_v10 }
 0x74a   : > { %10889 = vmatprep.mubr.msk.bf16.mxu0 %vm3191_vm9, %v14526_v16 }
 0x751   : > { %10890 = vmatmul.mubr.msk.bf16.gmra.mrb[60].mxu0 %vm3191_vm9, %v8107_v46 }
 0x7ec   : > { %v10863_v54 = vpop.f32.mrb[32].mxu0 }
 0x7ed   : > { %v8324_v47 = vadd.f32 %v10863_v54, %v14643_v45  ;;  %v8157_v35 = vpop.f32.mrb[33].mxu0 }
 0x7ee   : > { %v8322_v3 = vadd.f32 %v14643_v45, %v8157_v35  ;;  %v10864_v56 = vpop.f32.mrb[34].mxu0 }
 0x7ef   : > { %v8325_v9 = vadd.f32 %v10864_v56, %v14643_v45  ;;  %v8160_v29 = vpop.f32.mrb[35].mxu0  ;;  %v8356_v36 = vmax.f32 %v8324_v47, 0.0 }
 0x7f0   : > { %v8323_v48 = vadd.f32 %v14643_v45, %v8160_v29  ;;  %v8354_v27 = vmax.f32 %v8322_v3, 0.0 }
 0x7f1   : > { %v8357_v14 = vmax.f32 %v8325_v9, 0.0 }
 0x7f2   : > { %v8355_v18 = vmax.f32 %v8323_v48, 0.0 }
 0x7f3   : > { %v8387_v15 = vpack.c.bf16 %v8357_v14, %v8356_v36 }
 0x7f4   : > { %v8386_v24 = vpack.c.bf16 %v8355_v18, %v8354_v27  ;;  %v10867_v25 = vpop.f32.mrb[36].mxu0 }
 0x7f5   : > { %v8328_v40 = vadd.f32 %v10867_v25, %v14643_v45  ;;  %v8173_v53 = vpop.f32.mrb[37].mxu0 }
 0x7f6   : > { %v8326_v61 = vadd.f32 %v14643_v45, %v8173_v53  ;;  %v10868_v39 = vpop.f32.mrb[38].mxu0  ;;  %10897 = vmatprep.mubr.msk.bf16.mxu1 %vm3191_vm9, %v8386_v24 }
 0x7f7   : > { %v8329_v59 = vadd.f32 %v10868_v39, %v14643_v45  ;;  %v8176_v2 = vpop.f32.mrb[39].mxu0  ;;  %10898 = vmatmul.mubr.msk.bf16.vlgmr.msra.gmra.mrb[64].mxu1 %vm3191_vm9, %v8387_v15  ;;  %v8360_v10 = vmax.f32 %v8328_v40, 0.0 }
 0x7f8   : > { %v8327_v60 = vadd.f32 %v14643_v45, %v8176_v2  ;;  %v8358_v62 = vmax.f32 %v8326_v61, 0.0 }
 0x7f9   : > { %v8361_v41 = vmax.f32 %v8329_v59, 0.0 }
 0x7fa   : > { %v8359_v4 = vmax.f32 %v8327_v60, 0.0 }
 0x7fb   : > { %v8389_v23 = vpack.c.bf16 %v8361_v41, %v8360_v10 }
 0x7fc   : > { %v8388_v50 = vpack.c.bf16 %v8359_v4, %v8358_v62  ;;  %v10871_v11 = vpop.f32.mrb[40].mxu0 }
 0x7fd   : > { %v8332_v44 = vadd.f32 %v10871_v11, %v14643_v45  ;;  %v8189_v1 = vpop.f32.mrb[41].mxu0 }
 0x7fe   : > { %v8330_v51 = vadd.f32 %v14643_v45, %v8189_v1  ;;  %v10872_v34 = vpop.f32.mrb[42].mxu0  ;;  %10901 = vmatprep.mubr.msk.bf16.mxu1 %vm3191_vm9, %v8388_v50 }
 0x7ff   : > { %v8333_v26 = vadd.f32 %v10872_v34, %v14643_v45  ;;  %v8192_v33 = vpop.f32.mrb[43].mxu0  ;;  %10902 = vmatmul.mubr.msk.bf16.gmra.mrb[68].mxu1 %vm3191_vm9, %v8389_v23  ;;  %v8364_v21 = vmax.f32 %v8332_v44, 0.0 }
 0x800   : > { %v8331_v31 = vadd.f32 %v14643_v45, %v8192_v33  ;;  %v8362_v63 = vmax.f32 %v8330_v51, 0.0 }
 0x801   : > { %v8365_v12 = vmax.f32 %v8333_v26, 0.0 }
 0x802   : > { %v8363_v5 = vmax.f32 %v8331_v31, 0.0 }
 0x803   : > { %v8391_v43 = vpack.c.bf16 %v8365_v12, %v8364_v21 }
 0x804   : > { %v8390_v58 = vpack.c.bf16 %v8363_v5, %v8362_v63  ;;  %v10875_v16 = vpop.f32.mrb[44].mxu0 }
 0x805   : > { %v8336_v6 = vadd.f32 %v10875_v16, %v14643_v45  ;;  %v8205_v38 = vpop.f32.mrb[45].mxu0 }
 0x806   : > { %v8334_v17 = vadd.f32 %v14643_v45, %v8205_v38  ;;  %v10876_v19 = vpop.f32.mrb[46].mxu0  ;;  %10905 = vmatprep.mubr.msk.bf16.mxu1 %vm3191_vm9, %v8390_v58 }
 0x807   : > { %v8337_v8 = vadd.f32 %v10876_v19, %v14643_v45  ;;  %v8208_v57 = vpop.f32.mrb[47].mxu0  ;;  %10906 = vmatmul.mubr.msk.bf16.gmra.mrb[72].mxu1 %vm3191_vm9, %v8391_v43  ;;  %v8368_v37 = vmax.f32 %v8336_v6, 0.0 }
 0x808   : > { %v8335_v20 = vadd.f32 %v14643_v45, %v8208_v57  ;;  %v8366_v52 = vmax.f32 %v8334_v17, 0.0 }
 0x809   : > { %v8369_v42 = vmax.f32 %v8337_v8, 0.0 }
 0x80a   : > { %v8367_v55 = vmax.f32 %v8335_v20, 0.0 }
 0x80b   : > { %v8393_v49 = vpack.c.bf16 %v8369_v42, %v8368_v37 }
 0x80c   : > { %v8392_v30 = vpack.c.bf16 %v8367_v55, %v8366_v52  ;;  %v10879_v22 = vpop.f32.mrb[48].mxu0 }
 0x80d   : > { %v8340_v7 = vadd.f32 %v10879_v22, %v14643_v45  ;;  %v8221_v0 = vpop.f32.mrb[49].mxu0 }
 0x80e   : > { %v8338_v13 = vadd.f32 %v14643_v45, %v8221_v0  ;;  %v10880_v28 = vpop.f32.mrb[50].mxu0  ;;  %10909 = vmatprep.mubr.msk.bf16.mxu1 %vm3191_vm9, %v8392_v30 }
 0x80f   : > { %v8341_v32 = vadd.f32 %v10880_v28, %v14643_v45  ;;  %v8224_v46 = vpop.f32.mrb[51].mxu0  ;;  %10910 = vmatmul.mubr.msk.bf16.gmra.mrb[76].mxu1 %vm3191_vm9, %v8393_v49  ;;  %v8372_v47 = vmax.f32 %v8340_v7, 0.0 }
 0x810   : > { %v8339_v54 = vadd.f32 %v14643_v45, %v8224_v46  ;;  %v8370_v3 = vmax.f32 %v8338_v13, 0.0 }
 0x811   : > { %v8373_v35 = vmax.f32 %v8341_v32, 0.0 }
 0x812   : > { %v8371_v56 = vmax.f32 %v8339_v54, 0.0 }
 0x813   : > { %v8395_v9 = vpack.c.bf16 %v8373_v35, %v8372_v47 }
 0x814   : > { %v8394_v29 = vpack.c.bf16 %v8371_v56, %v8370_v3  ;;  %v10883_v48 = vpop.f32.mrb[52].mxu0 }
 0x815   : > { %v8344_v36 = vadd.f32 %v10883_v48, %v14643_v45  ;;  %v8237_v14 = vpop.f32.mrb[53].mxu0 }
 0x816   : > { %v8342_v27 = vadd.f32 %v14643_v45, %v8237_v14  ;;  %v10884_v18 = vpop.f32.mrb[54].mxu0  ;;  %10913 = vmatprep.mubr.msk.bf16.mxu1 %vm3191_vm9, %v8394_v29 }
 0x817   : > { %v8345_v15 = vadd.f32 %v10884_v18, %v14643_v45  ;;  %v8240_v24 = vpop.f32.mrb[55].mxu0  ;;  %10914 = vmatmul.mubr.msk.bf16.gmra.mrb[80].mxu1 %vm3191_vm9, %v8395_v9  ;;  %v8376_v40 = vmax.f32 %v8344_v36, 0.0 }
 0x818   : > { %v8343_v25 = vadd.f32 %v14643_v45, %v8240_v24  ;;  %v8374_v61 = vmax.f32 %v8342_v27, 0.0 }
 0x819   : > { %v8377_v53 = vmax.f32 %v8345_v15, 0.0 }
 0x81a   : > { %v8375_v39 = vmax.f32 %v8343_v25, 0.0 }
 0x81b   : > { %v8397_v59 = vpack.c.bf16 %v8377_v53, %v8376_v40 }
 0x81c   : > { %v8396_v2 = vpack.c.bf16 %v8375_v39, %v8374_v61  ;;  %v10887_v60 = vpop.f32.mrb[56].mxu0 }
 0x81d   : > { %v8348_v10 = vadd.f32 %v10887_v60, %v14643_v45  ;;  %v8253_v41 = vpop.f32.mrb[57].mxu0 }
 0x81e   : > { %v8346_v62 = vadd.f32 %v14643_v45, %v8253_v41  ;;  %v10888_v4 = vpop.f32.mrb[58].mxu0  ;;  %10917 = vmatprep.mubr.msk.bf16.mxu1 %vm3191_vm9, %v8396_v2 }
 0x81f   : > { %v8349_v23 = vadd.f32 %v10888_v4, %v14643_v45  ;;  %v8256_v50 = vpop.f32.mrb[59].mxu0  ;;  %10918 = vmatmul.mubr.msk.bf16.gmra.mrb[84].mxu1 %vm3191_vm9, %v8397_v59  ;;  %v8380_v44 = vmax.f32 %v8348_v10, 0.0 }
 0x820   : > { %v8347_v11 = vadd.f32 %v14643_v45, %v8256_v50  ;;  %v8378_v51 = vmax.f32 %v8346_v62, 0.0 }
 0x821   : > { %v8381_v1 = vmax.f32 %v8349_v23, 0.0 }
 0x822   : > { %v8379_v34 = vmax.f32 %v8347_v11, 0.0 }
 0x823   : > { %v8399_v26 = vpack.c.bf16 %v8381_v1, %v8380_v44 }
 0x824   : > { %v8398_v33 = vpack.c.bf16 %v8379_v34, %v8378_v51  ;;  %v10891_v31 = vpop.f32.mrb[60].mxu0 }
 0x825   : > { %v8352_v21 = vadd.f32 %v10891_v31, %v14643_v45  ;;  %v8269_v12 = vpop.f32.mrb[61].mxu0 }
 0x826   : > { %v8350_v63 = vadd.f32 %v14643_v45, %v8269_v12  ;;  %v10892_v5 = vpop.f32.mrb[62].mxu0  ;;  %10921 = vmatprep.mubr.msk.bf16.mxu1 %vm3191_vm9, %v8398_v33 }
 0x827   : > { %v8353_v43 = vadd.f32 %v10892_v5, %v14643_v45  ;;  %v8272_v58 = vpop.f32.mrb[63].mxu0  ;;  %10922 = vmatmul.mubr.msk.bf16.gmra.mrb[88].mxu1 %vm3191_vm9, %v8399_v26  ;;  %v8384_v6 = vmax.f32 %v8352_v21, 0.0 }
 0x828   : > { %v8351_v16 = vadd.f32 %v14643_v45, %v8272_v58  ;;  %v8382_v17 = vmax.f32 %v8350_v63, 0.0 }
 0x829   : > { %v8385_v38 = vmax.f32 %v8353_v43, 0.0 }
 0x82a   : > { %v8383_v19 = vmax.f32 %v8351_v16, 0.0 }
 0x82b   : > { %v8401_v8 = vpack.c.bf16 %v8385_v38, %v8384_v6 }
 0x82c   : > { %v8400_v57 = vpack.c.bf16 %v8383_v19, %v8382_v17 }
 0x82e   : > { %10925 = vmatprep.mubr.msk.bf16.mxu1 %vm3191_vm9, %v8400_v57 }
 0x82f   : > { %10926 = vmatmul.mubr.msk.bf16.gmra.mrb[92].mxu1 %vm3191_vm9, %v8401_v8 }
 0x830   : > { %11827 = shalt.err (!%p11824_p3)
}
 0x831   : > { %s11828_s21 = scalar_lea.hbm %s14697_s28, 2048  ;;  %s11832_s27 = scalar_lea.hbm %s14889_s9, 4096 }
 0x832   : > { %p11829_p4 = scmp.ne.s32.totalorder %s14697_s28, %s11828_s21  ;;  %p11833_p9 = scmp.lt.u32.totalorder %s14697_s28, %s14889_s9 }
 0x833   : > { %p11834_p10 = scmp.lt.u32.totalorder %s11832_s27, %s11828_s21  ;;  %p11836_p12 = scmp.lt.u32.totalorder %s11828_s21, %s14697_s28 }
 0x834   : > { %p11830_p7 = pnand %p11829_p4, %p12011_p5 }
 0x835   : > { %p11835_p11 = por %p11834_p10, %p11833_p9 }
 0x836   : > { %p11831_p8 = pneg %p11830_p7 }
 0x837   : > { %p11837_p13 = por %p11836_p12, %p11835_p11 }
 0x839   : > { %p11838_p0 = pnand %p11837_p13, %p11831_p8 }
 0x83b   : > { %11841 = shalt.err (!%p11838_p0)
}
 0x83c   : > { %s11913_s0 = smov 64   ;;  %s11914_s12 = smov 4   ;;  %v14730_v45 = vld [vmem:[%s14888_s8] ss:$0 sm:$0xff]  ;;  %vm8634_vm14 = vcmask 130048  }
 0x83d   : > { %11698 = dma.vmem_to_hbm [thread:$0]  (%p12011_p5), %s14700_s29, 2048, %s14697_s28, %s8668_s30, %s11913_s0, %s11913_s0, %s11914_s12  }
 0x83e   : > { %s8801_s25 = sshll.u32 %s13923_s11, 8  ;;  %s9443_s28 = sshll.u32 %s11994_s17, 12 }
 0x83f   : > { %s14734_s21 = scalar_lea.vmem [#allocation6], %s8801_s25  ;;  %s14828_s20 = scalar_lea.hbm %s14890_s10, %s9443_s28 }
 0x840   : > { %s8702_s29 = sshll.u32 %s14734_s21, 4  ;;  %s8673_s17 = scalar_lea.sflag [#allocation7], %s13923_s11  ;;  %s14830_s29 = int_to_ptr.vmem [resolvable:$true] %s8702_s29 }
 0x841   : > { %s11842_s0 = scalar_lea.vmem %s14830_s29, 4096  ;;  %s11915_s12 = smov [#allocation6]  }
 0x842   : > { %p11843_p1 = scmp.ne.s32.totalorder %s14830_s29, %s11842_s0  ;;  %s11846_s25 = sshll.u32 %s11915_s12, 4  ;;  %s11847_s25 = int_to_ptr.vmem [resolvable:$false] %s11846_s25 }
 0x843   : > { %s11848_s26 = scalar_lea.vmem %s11847_s25, 8192  ;;  %p11849_p4 = scmp.lt.s32.totalorder %s14830_s29, %s11847_s25 }
 0x844   : > { %p11844_p2 = pnand %p11843_p1, %p12011_p5  ;;  %p11850_p7 = scmp.lt.s32.totalorder %s11848_s26, %s11842_s0 }
 0x846   : > { %p11845_p3 = pneg %p11844_p2  ;;  %p11851_p8 = por %p11850_p7, %p11849_p4 }
 0x848   : > { %p11852_p9 = pnand %p11851_p8, %p11845_p3 }
 0x8ca   : > { %v10899_v20 = vpop.f32.mrb[64].mxu1 }
 0x8cb   : > { %v8516_v37 = vadd.f32 %v10899_v20, %v14730_v45  ;;  %v8507_v42 = vpop.f32.mrb[65].mxu1 }
 0x8cc   : > { %v8508_v52 = vadd.f32 %v14730_v45, %v8507_v42  ;;  %v10900_v55 = vpop.f32.mrb[66].mxu1 }
 0x8cd   : > { %8637 = vst.msk [vmem:[%s14734_s21 + $0x10] sm:$0xff] %vm8634_vm14, %v8516_v37  ;;  %v8519_v49 = vadd.f32 %v10900_v55, %v14730_v45  ;;  %v8510_v30 = vpop.f32.mrb[67].mxu1 }
 0x8ce   : > { %8635 = vst.msk [vmem:[%s14734_s21] sm:$0xff] %vm8634_vm14, %v8508_v52  ;;  %v8511_v22 = vadd.f32 %v14730_v45, %v8510_v30 }
 0x8cf   : > { %8638 = vst.msk [vmem:[%s14734_s21 + $0x18] sm:$0xff] %vm8634_vm14, %v8519_v49 }
 0x8d0   : > { %8636 = vst.msk [vmem:[%s14734_s21 + $0x8] sm:$0xff] %vm8634_vm14, %v8511_v22 }
 0x8d2   : > { %v10903_v7 = vpop.f32.mrb[68].mxu1 }
 0x8d3   : > { %v8532_v0 = vadd.f32 %v10903_v7, %v14730_v45  ;;  %v8523_v13 = vpop.f32.mrb[69].mxu1 }
 0x8d4   : > { %v8524_v28 = vadd.f32 %v14730_v45, %v8523_v13  ;;  %v10904_v32 = vpop.f32.mrb[70].mxu1 }
 0x8d5   : > { %8641 = vst.msk [vmem:[%s14734_s21 + $0x30] sm:$0xff] %vm8634_vm14, %v8532_v0  ;;  %v8535_v46 = vadd.f32 %v10904_v32, %v14730_v45  ;;  %v8526_v54 = vpop.f32.mrb[71].mxu1 }
 0x8d6   : > { %8639 = vst.msk [vmem:[%s14734_s21 + $0x20] sm:$0xff] %vm8634_vm14, %v8524_v28  ;;  %v8527_v47 = vadd.f32 %v14730_v45, %v8526_v54 }
 0x8d7   : > { %8642 = vst.msk [vmem:[%s14734_s21 + $0x38] sm:$0xff] %vm8634_vm14, %v8535_v46 }
 0x8d8   : > { %8640 = vst.msk [vmem:[%s14734_s21 + $0x28] sm:$0xff] %vm8634_vm14, %v8527_v47 }
 0x8da   : > { %v10907_v35 = vpop.f32.mrb[72].mxu1 }
 0x8db   : > { %v8548_v3 = vadd.f32 %v10907_v35, %v14730_v45  ;;  %v8539_v56 = vpop.f32.mrb[73].mxu1 }
 0x8dc   : > { %v8540_v9 = vadd.f32 %v14730_v45, %v8539_v56  ;;  %v10908_v29 = vpop.f32.mrb[74].mxu1 }
 0x8dd   : > { %8645 = vst.msk [vmem:[%s14734_s21 + $0x50] sm:$0xff] %vm8634_vm14, %v8548_v3  ;;  %v8551_v48 = vadd.f32 %v10908_v29, %v14730_v45  ;;  %v8542_v36 = vpop.f32.mrb[75].mxu1 }
 0x8de   : > { %8643 = vst.msk [vmem:[%s14734_s21 + $0x40] sm:$0xff] %vm8634_vm14, %v8540_v9  ;;  %v8543_v14 = vadd.f32 %v14730_v45, %v8542_v36 }
 0x8df   : > { %8646 = vst.msk [vmem:[%s14734_s21 + $0x58] sm:$0xff] %vm8634_vm14, %v8551_v48 }
 0x8e0   : > { %8644 = vst.msk [vmem:[%s14734_s21 + $0x48] sm:$0xff] %vm8634_vm14, %v8543_v14 }
 0x8e2   : > { %v10911_v27 = vpop.f32.mrb[76].mxu1 }
 0x8e3   : > { %v8564_v18 = vadd.f32 %v10911_v27, %v14730_v45  ;;  %v8555_v15 = vpop.f32.mrb[77].mxu1 }
 0x8e4   : > { %v8556_v24 = vadd.f32 %v14730_v45, %v8555_v15  ;;  %v10912_v25 = vpop.f32.mrb[78].mxu1 }
 0x8e5   : > { %8649 = vst.msk [vmem:[%s14734_s21 + $0x70] sm:$0xff] %vm8634_vm14, %v8564_v18  ;;  %v8567_v40 = vadd.f32 %v10912_v25, %v14730_v45  ;;  %v8558_v53 = vpop.f32.mrb[79].mxu1 }
 0x8e6   : > { %8647 = vst.msk [vmem:[%s14734_s21 + $0x60] sm:$0xff] %vm8634_vm14, %v8556_v24  ;;  %v8559_v61 = vadd.f32 %v14730_v45, %v8558_v53 }
 0x8e7   : > { %8650 = vst.msk [vmem:[%s14734_s21 + $0x78] sm:$0xff] %vm8634_vm14, %v8567_v40 }
 0x8e8   : > { %8648 = vst.msk [vmem:[%s14734_s21 + $0x68] sm:$0xff] %vm8634_vm14, %v8559_v61 }
 0x8ea   : > { %v10915_v39 = vpop.f32.mrb[80].mxu1 }
 0x8eb   : > { %v8580_v59 = vadd.f32 %v10915_v39, %v14730_v45  ;;  %v8571_v2 = vpop.f32.mrb[81].mxu1 }
 0x8ec   : > { %v8572_v60 = vadd.f32 %v14730_v45, %v8571_v2  ;;  %v10916_v10 = vpop.f32.mrb[82].mxu1 }
 0x8ed   : > { %8653 = vst.msk [vmem:[%s14734_s21 + $0x90] sm:$0xff] %vm8634_vm14, %v8580_v59  ;;  %v8583_v41 = vadd.f32 %v10916_v10, %v14730_v45  ;;  %v8574_v62 = vpop.f32.mrb[83].mxu1 }
 0x8ee   : > { %8651 = vst.msk [vmem:[%s14734_s21 + $0x80] sm:$0xff] %vm8634_vm14, %v8572_v60  ;;  %v8575_v4 = vadd.f32 %v14730_v45, %v8574_v62 }
 0x8ef   : > { %8654 = vst.msk [vmem:[%s14734_s21 + $0x98] sm:$0xff] %vm8634_vm14, %v8583_v41 }
 0x8f0   : > { %8652 = vst.msk [vmem:[%s14734_s21 + $0x88] sm:$0xff] %vm8634_vm14, %v8575_v4 }
 0x8f2   : > { %v10919_v23 = vpop.f32.mrb[84].mxu1 }
 0x8f3   : > { %v8596_v50 = vadd.f32 %v10919_v23, %v14730_v45  ;;  %v8587_v11 = vpop.f32.mrb[85].mxu1 }
 0x8f4   : > { %v8588_v44 = vadd.f32 %v14730_v45, %v8587_v11  ;;  %v10920_v1 = vpop.f32.mrb[86].mxu1 }
 0x8f5   : > { %8657 = vst.msk [vmem:[%s14734_s21 + $0xb0] sm:$0xff] %vm8634_vm14, %v8596_v50  ;;  %v8599_v51 = vadd.f32 %v10920_v1, %v14730_v45  ;;  %v8590_v34 = vpop.f32.mrb[87].mxu1 }
 0x8f6   : > { %8655 = vst.msk [vmem:[%s14734_s21 + $0xa0] sm:$0xff] %vm8634_vm14, %v8588_v44  ;;  %v8591_v26 = vadd.f32 %v14730_v45, %v8590_v34 }
 0x8f7   : > { %8658 = vst.msk [vmem:[%s14734_s21 + $0xb8] sm:$0xff] %vm8634_vm14, %v8599_v51 }
 0x8f8   : > { %8656 = vst.msk [vmem:[%s14734_s21 + $0xa8] sm:$0xff] %vm8634_vm14, %v8591_v26 }
 0x8fa   : > { %v10923_v33 = vpop.f32.mrb[88].mxu1 }
 0x8fb   : > { %v8612_v31 = vadd.f32 %v10923_v33, %v14730_v45  ;;  %v8603_v21 = vpop.f32.mrb[89].mxu1 }
 0x8fc   : > { %v8604_v12 = vadd.f32 %v14730_v45, %v8603_v21  ;;  %v10924_v63 = vpop.f32.mrb[90].mxu1 }
 0x8fd   : > { %8661 = vst.msk [vmem:[%s14734_s21 + $0xd0] sm:$0xff] %vm8634_vm14, %v8612_v31  ;;  %v8615_v5 = vadd.f32 %v10924_v63, %v14730_v45  ;;  %v8606_v43 = vpop.f32.mrb[91].mxu1 }
 0x8fe   : > { %8659 = vst.msk [vmem:[%s14734_s21 + $0xc0] sm:$0xff] %vm8634_vm14, %v8604_v12  ;;  %v8607_v58 = vadd.f32 %v14730_v45, %v8606_v43 }
 0x8ff   : > { %8662 = vst.msk [vmem:[%s14734_s21 + $0xd8] sm:$0xff] %vm8634_vm14, %v8615_v5 }
 0x900   : > { %8660 = vst.msk [vmem:[%s14734_s21 + $0xc8] sm:$0xff] %vm8634_vm14, %v8607_v58 }
 0x902   : > { %v10927_v16 = vpop.f32.mrb[92].mxu1 }
 0x903   : > { %v8628_v6 = vadd.f32 %v10927_v16, %v14730_v45  ;;  %v8619_v38 = vpop.f32.mrb[93].mxu1 }
 0x904   : > { %v8620_v17 = vadd.f32 %v14730_v45, %v8619_v38  ;;  %v10928_v19 = vpop.f32.mrb[94].mxu1 }
 0x905   : > { %8665 = vst.msk [vmem:[%s14734_s21 + $0xf0] sm:$0xff] %vm8634_vm14, %v8628_v6  ;;  %v8631_v8 = vadd.f32 %v10928_v19, %v14730_v45  ;;  %v8622_v57 = vpop.f32.mrb[95].mxu1 }
 0x906   : > { %8663 = vst.msk [vmem:[%s14734_s21 + $0xe0] sm:$0xff] %vm8634_vm14, %v8620_v17  ;;  %v8623_v20 = vadd.f32 %v14730_v45, %v8622_v57 }
 0x907   : > { %8666 = vst.msk [vmem:[%s14734_s21 + $0xf8] sm:$0xff] %vm8634_vm14, %v8631_v8 }
 0x908   : > { %8664 = vst.msk [vmem:[%s14734_s21 + $0xe8] sm:$0xff] %vm8634_vm14, %v8623_v20 }
 0x909   : > { %11855 = shalt.err (!%p11852_p9)
}
 0x90a   : > { %s11856_s18 = scalar_lea.hbm %s14828_s20, 4096  ;;  %s11860_s30 = scalar_lea.hbm %s14890_s10, 8192 }
 0x90b   : > { %p11857_p10 = scmp.ne.s32.totalorder %s14828_s20, %s11856_s18  ;;  %p11861_p13 = scmp.lt.u32.totalorder %s14828_s20, %s14890_s10 }
 0x90c   : > { %p11862_p0 = scmp.lt.u32.totalorder %s11860_s30, %s11856_s18  ;;  %p11864_p2 = scmp.lt.u32.totalorder %s11856_s18, %s14828_s20 }
 0x90d   : > { %p11858_p11 = pnand %p11857_p10, %p12011_p5 }
 0x90e   : > { %p11863_p1 = por %p11862_p0, %p11861_p13 }
 0x90f   : > { %p11859_p12 = pneg %p11858_p11 }
 0x910   : > { %p11865_p3 = por %p11864_p2, %p11863_p1 }
 0x912   : > { %p11866_p4 = pnand %p11865_p3, %p11859_p12 }
 0x914   : > { %11869 = shalt.err (!%p11866_p4)
}
 0x915   : > { %s11916_s0 = smov 128   ;;  %s11917_s25 = smov 8  }
 0x916   : > { %11699 = dma.vmem_to_hbm [thread:$0]  (%p12011_p5), %s14830_s29, 4096, %s14828_s20, %s8673_s17, %s11916_s0, %s11916_s0, %s11917_s25  }
 0x917 PF: > { %p11709_p7 = scmp.ge.s32.totalorder %s11908_s16, 2  ;;  %s8717_s26 = sand.u32 1, %s11896_s13  }
 0x918   : > { %s8718_s18 = scalar_lea.sflag [#allocation5], %s8717_s26 }
 0x919   : > { %p11703_p8 = pnand %p11709_p7, %p12015_p6 }
 0x91b   : > { %11887 = dma.done.wait (!%p11703_p8), %s8718_s18, 2048  }
 0x91c   : > { %11889 = vsyncadd (!%p11703_p8), %s8718_s18, 4294965248  ;;  %s8727_s21 = scalar_lea.sflag [#allocation7], %s8717_s26 }
 0x91d   : > { %11891 = dma.done.wait (!%p11703_p8), %s8727_s21, 4096  }
 0x91e   : > { %11893 = vsyncadd (!%p11703_p8), %s8727_s21, 4294963200  ;;  %p24_p5 = scmp.ge.s32.totalorder %s11998_s19, 4   ;;  %s14991_s13 = smov %s11900_s14 }
 0x91f   : > { %s14992_s14 = smov %s11904_s15  ;;  %s14993_s15 = smov %s12009_s22 }
 0x920   : > { %s14994_s16 = smov %s11998_s19  ;;  %26 = sbr.rel (!%p24_p5) target bundleno = 7 (0x7), region = 110 }
 0x927   :  { %8732 = vsyncpa [#allocation5], 1 }
 0x928   :  { %8734 = vsyncpa [#allocation5 + $0x1], 1 }
 0x929   :  { %8735 = vsyncpa [#allocation7], 1 }
 0x92a   :  { %8737 = vsyncpa [#allocation7 + $0x1], 1 }

</bundles_post_ra>
